<compile_context>
chip_gen: v7x
topology: tpu7x:2x2x1
jax: 0.10.0
libtpu: 0.0.40
codegen_flags: <defaults>
</compile_context>

<pallas_src>
import functools
import math

import jax
import jax.numpy as jnp
from jax import lax
from jax.experimental import pallas as pl
from jax.experimental.pallas import tpu as pltpu


# ----------------------------------------------------------------------------
# Fused MTSD forward kernel
# ----------------------------------------------------------------------------
def _mtsd_fused_kernel(xps_ref, w1_ref, b1_ref, w2p_ref, b2_ref, w3_ref, b3_ref,
                       wqkv_ref, bqkv_ref, cop_ref, wfc_ref, bfc_ref, o_ref,
                       *, planes, cin, kw1, w1out, inv_dk):
    seq = cop_ref.shape[0]                  # 62
    d_model = w3_ref.shape[1]               # 2 * planes
    n_mix = w2p_ref.shape[2]                # 3 * 2 * planes (packed conv2 branches)

    # ---- conv1: (1, kw1) width conv, stride 2, computed on the VPU -----------
    # xps was parity-split in the wrapper: xps[ci, t % 2, h, w + t // 2] == x[ci, h, 2w + t]
    acc1 = [jnp.zeros((seq, w1out), jnp.float32) for _ in range(planes)]
    for ci in range(cin):
        for par in range(2):
            slab = xps_ref[ci, par, :, :].astype(jnp.float32)     # (seq, W//2)
            for t in range(par, kw1, 2):
                sh = t // 2
                xs = slab[:, sh:sh + w1out]                       # (seq, w1out)
                for co in range(planes):
                    acc1[co] = acc1[co] + w1_ref[(co * cin + ci) * kw1 + t] * xs

    # ---- conv2: three dilated branches (output width 1 each) as ONE matmul ---
    # against zero-expanded, branch-packed weights, accumulated over conv1 channels.
    acc2 = jnp.zeros((seq, n_mix), jnp.float32)
    for co in range(planes):
        y1c = jnp.maximum(acc1[co] + b1_ref[co], 0.0)             # relu(conv1)[co]
        acc2 = acc2 + jnp.dot(y1c, w2p_ref[co, :, :],
                              preferred_element_type=jnp.float32)
    y2 = jnp.maximum(acc2 + b2_ref[...], 0.0)                     # (seq, 3*D) relu(conv2)

    # ---- conv3: (1, 3) conv over the 3 branch columns == matmul --------------
    y3 = jnp.maximum(
        jnp.dot(y2, w3_ref[...], preferred_element_type=jnp.float32) + b3_ref[...],
        0.0)                                                      # (seq, D)

    # ---- Mixed self-attention (packed q|k|v), residual add, ReLU -------------
    qkv = (jnp.dot(y3, wqkv_ref[...], preferred_element_type=jnp.float32)
           + bqkv_ref[...])                                       # (seq, 3D)
    q = qkv[:, 0:d_model]
    k = qkv[:, d_model:2 * d_model]
    v = qkv[:, 2 * d_model:3 * d_model]
    logits = lax.dot_general(q, k, dimension_numbers=(((1,), (1,)), ((), ())),
                             preferred_element_type=jnp.float32)  # q @ k^T (seq, seq)
    scaled = logits * cop_ref[...] * inv_dk                       # copula-modulate, then scale
    m = jnp.max(scaled, axis=-1, keepdims=True)
    e = jnp.exp(scaled - m)
    # TODO(synk): nn.Dropout(0.1) on the attention weights is identity in eval mode.
    p = e * pl.reciprocal(jnp.sum(e, axis=-1, keepdims=True), approx=True)
    attn = jnp.dot(p, v, preferred_element_type=jnp.float32)      # (seq, D)
    out_att = jnp.maximum(attn + y3, 0.0)                         # residual + ReLU

    # ---- fc2(fc1(.)) folded into one affine map (no nonlinearity in between) -
    # o[n] = sum_{c,h} out_att[h, c] * wfc[c, n, h] + bfc[n]  (PyTorch NCHW flatten)
    o = bfc_ref[...]                                              # (num_classes, 1)
    for c in range(d_model):
        cc = jnp.dot(wfc_ref[c, :, :], out_att,
                     preferred_element_type=jnp.float32)          # (num_classes, D)
        o = o + cc[:, c:c + 1]
    o_ref[...] = o.astype(o_ref.dtype)


# ----------------------------------------------------------------------------
# MTSD forward wrapper (parameter re-packing is plain JAX glue on tiny tensors)
# ----------------------------------------------------------------------------
def mtsd_forward(params, x, *, dilations=(1, 2, 3), x_dtype=jnp.bfloat16):
    B, cin, H, W = x.shape
    assert B == 1, "attention_mode copula broadcast / flatten requires batch == 1"
    assert H == 62, "x_copula = x[:, 0, :, 0:62] requires input_height == 62"
    assert W >= 62 and W % 2 == 0
    planes, _, _, kw1 = params["conv1_w"].shape
    D = 2 * planes
    w1out = (W - kw1) // 2 + 1

    # conv1 input: parity-split the width axis so the stride-2 conv becomes
    # unit-stride slices inside the kernel.  (one cheap XLA transpose)
    xps = x.reshape(B, cin, H, W // 2, 2)[0].transpose(0, 3, 1, 2)    # (cin, 2, H, W//2)
    xps = xps.astype(x_dtype)

    # conv1 weights/bias -> flat SMEM scalar tables.
    w1s = params["conv1_w"].astype(jnp.float32).reshape(-1)           # (planes*cin*kw1,)
    b1s = params["conv1_b"].astype(jnp.float32)                       # (planes,)

    # conv2: each dilated branch has output width 1, so it is a plain contraction
    # over (in_channel, tap).  Expand taps to the full conv1 width with zeros and
    # pack the three branches along the output axis -> one matmul in the kernel.
    branch_params = [(params["conv2_l1_w"], params["conv2_l1_b"], dilations[0]),
                     (params["conv2_l2_w"], params["conv2_l2_b"], dilations[1]),
                     (params["conv2_l3_w"], params["conv2_l3_b"], dilations[2])]
    w2_cols, b2_cols = [], []
    for wl, bl, dil in branch_params:
        kwl = wl.shape[3]
        span = dil * (kwl - 1) + 1
        assert 0 <= w1out - span <= 1, (
            "fused kernel assumes each dilated conv2 branch has output width 1 "
            "(as in the reference MTSD configuration)")
        e = jnp.zeros((planes, w1out, D), jnp.float32)
        e = e.at[:, dil * jnp.arange(kwl), :].set(
            jnp.transpose(wl[:, :, 0, :], (1, 2, 0)).astype(jnp.float32))
        w2_cols.append(e)
        b2_cols.append(bl.astype(jnp.float32))
    w2p = jnp.concatenate(w2_cols, axis=2)                            # (planes, w1out, 3D)
    b2p = jnp.concatenate(b2_cols).reshape(1, 3 * D)

    # conv3: (1, 3) conv over the 3 branch columns -> (3D, D) matmul weight.
    w3 = params["conv3_w"]
    assert w3.shape[3] == 3, "conv3 kernel width must equal the number of branches"
    w3m = jnp.transpose(w3[:, :, 0, :], (2, 1, 0)).reshape(3 * D, D).astype(jnp.float32)
    b3r = params["conv3_b"].astype(jnp.float32).reshape(1, D)

    # attention: pack q|k|v projections into one weight / bias.
    wqkv = jnp.concatenate([params["q_w"].T, params["k_w"].T, params["v_w"].T],
                           axis=1).astype(jnp.float32)                # (D, 3D)
    bqkv = jnp.concatenate([params["q_b"], params["k_b"], params["v_b"]]
                           ).reshape(1, 3 * D).astype(jnp.float32)

    cop = x[0, 0, :, 0:62].astype(jnp.float32)                        # (62, 62)

    # fc2(fc1(.)) has no activation in between -> exact fold into one affine map.
    ncls = params["fc2_w"].shape[0]
    assert params["fc1_w"].shape[1] == D * H
    wfc = jnp.dot(params["fc2_w"], params["fc1_w"])                   # (ncls, D*H)
    bfc = jnp.dot(params["fc2_w"], params["fc1_b"]) + params["fc2_b"]
    wfc_stack = wfc.reshape(ncls, D, H).transpose(1, 0, 2).astype(jnp.float32)  # (D, ncls, H)
    bfc_col = bfc.astype(jnp.float32).reshape(ncls, 1)

    inv_dk = 1.0 / math.sqrt(D + 1e-07)
    kernel = functools.partial(_mtsd_fused_kernel, planes=planes, cin=cin,
                               kw1=kw1, w1out=w1out, inv_dk=inv_dk)

    vspec = pl.BlockSpec(memory_space=pltpu.MemorySpace.VMEM)
    sspec = pl.BlockSpec(memory_space=pltpu.MemorySpace.SMEM)
    out = pl.pallas_call(
        kernel,
        out_shape=jax.ShapeDtypeStruct((ncls, 1), jnp.float32),
        in_specs=[vspec, sspec, sspec] + [vspec] * 9,
        out_specs=vspec,
    )(xps, w1s, b1s, w2p, b2p, w3m, b3r, wqkv, bqkv, cop, wfc_stack, bfc_col)
    return out.reshape(1, ncls)


# ----------------------------------------------------------------------------
# Deterministic parameter initialization (PyTorch-default-like uniform bounds)
# ----------------------------------------------------------------------------
def init_params(key, *, num_classes, input_height, kernel_size, planes):
    p = planes
    ks_new = [85, 43, 29]
    keys = jax.random.split(key, 24)
    it = iter(keys)

    def u(shape, fan_in):
        bound = 1.0 / math.sqrt(fan_in)
        return jax.random.uniform(next(it), shape, jnp.float32, -bound, bound)

    params = {}
    params["conv1_w"] = u((p, 3, 1, kernel_size), 3 * kernel_size)
    params["conv1_b"] = u((p,), 3 * kernel_size)
    params["conv2_l1_w"] = u((2 * p, p, 1, ks_new[0]), p * ks_new[0])
    params["conv2_l1_b"] = u((2 * p,), p * ks_new[0])
    params["conv2_l2_w"] = u((2 * p, p, 1, ks_new[1]), p * ks_new[1])
    params["conv2_l2_b"] = u((2 * p,), p * ks_new[1])
    params["conv2_l3_w"] = u((2 * p, p, 1, ks_new[2]), p * ks_new[2])
    params["conv2_l3_b"] = u((2 * p,), p * ks_new[2])
    params["conv3_w"] = u((2 * p, 2 * p, 1, 3), 2 * p * 3)
    params["conv3_b"] = u((2 * p,), 2 * p * 3)
    params["q_w"] = u((2 * p, 2 * p), 2 * p)
    params["q_b"] = u((2 * p,), 2 * p)
    params["k_w"] = u((2 * p, 2 * p), 2 * p)
    params["k_b"] = u((2 * p,), 2 * p)
    params["v_w"] = u((2 * p, 2 * p), 2 * p)
    params["v_b"] = u((2 * p,), 2 * p)
    params["fc1_w"] = u((4 * p, input_height * 2 * p), input_height * 2 * p)
    params["fc1_b"] = u((4 * p,), input_height * 2 * p)
    params["fc2_w"] = u((num_classes, 4 * p), 4 * p)
    params["fc2_b"] = u((num_classes,), 4 * p)
    return params


if __name__ == "__main__":
    num_classes = 5
    planes = 4
    kernel_size = 4
    input_height = 62      # required by the x_copula[..., 0:62] broadcast in attention
    input_width = 172      # conv1 output width = (172-4)//2+1 = 85 = kernel_size_new[0]
    dilations = (1, 2, 3)  # every dilated branch then has output width 1
    batch = 1              # attention_mode path only type-checks for batch == 1

    key = jax.random.PRNGKey(0)
    kp, kx = jax.random.split(key)
    params = init_params(kp, num_classes=num_classes, input_height=input_height,
                         kernel_size=kernel_size, planes=planes)
    x = jax.random.normal(kx, (batch, 3, input_height, input_width), jnp.float32)

    fwd = jax.jit(functools.partial(mtsd_forward, dilations=dilations))
    out = jax.block_until_ready(fwd(params, x))
    assert out.shape == (batch, num_classes), out.shape
    assert bool(jnp.all(jnp.isfinite(out)))
    print("KERNEL_OK")
</pallas_src>

<mosaic_0001>
module attributes {stable_mosaic.version = 11 : i64} {
  func.func @_mtsd_fused_kernel(%arg0: memref<3x2x62x86xbf16, #tpu.memory_space<vmem>>, %arg1: memref<48xf32, #tpu.memory_space<smem>>, %arg2: memref<4xf32, #tpu.memory_space<smem>>, %arg3: memref<4x85x24xf32, #tpu.memory_space<vmem>>, %arg4: memref<1x24xf32, #tpu.memory_space<vmem>>, %arg5: memref<24x8xf32, #tpu.memory_space<vmem>>, %arg6: memref<1x8xf32, #tpu.memory_space<vmem>>, %arg7: memref<8x24xf32, #tpu.memory_space<vmem>>, %arg8: memref<1x24xf32, #tpu.memory_space<vmem>>, %arg9: memref<62x62xf32, #tpu.memory_space<vmem>>, %arg10: memref<8x5x62xf32, #tpu.memory_space<vmem>>, %arg11: memref<5x1xf32, #tpu.memory_space<vmem>>, %arg12: memref<5x1xf32, #tpu.memory_space<vmem>>) attributes {dimension_semantics = [], scalar_prefetch = 0 : i64, scratch_operands = 0 : i64, tpu.core_type = #tpu.core_type<tc>} {
    %cst = arith.constant 0.000000e+00 : f32
    %0 = vector.broadcast %cst : f32 to vector<62x85xf32>
    %cst_0 = arith.constant 0.000000e+00 : f32
    %1 = vector.broadcast %cst_0 : f32 to vector<62x85xf32>
    %cst_1 = arith.constant 0.000000e+00 : f32
    %2 = vector.broadcast %cst_1 : f32 to vector<62x85xf32>
    %cst_2 = arith.constant 0.000000e+00 : f32
    %3 = vector.broadcast %cst_2 : f32 to vector<62x85xf32>
    %c0 = arith.constant 0 : index
    %c0_3 = arith.constant 0 : index
    %c0_4 = arith.constant 0 : index
    %c0_5 = arith.constant 0 : index
    %4 = vector.load %arg0[%c0, %c0_3, %c0_4, %c0_5] : memref<3x2x62x86xbf16, #tpu.memory_space<vmem>>, vector<1x1x62x86xbf16>
    %5 = vector.shape_cast %4 : vector<1x1x62x86xbf16> to vector<62x86xbf16>
    %6 = arith.extf %5 : vector<62x86xbf16> to vector<62x86xf32>
    %7 = vector.extract_strided_slice %6 {offsets = [0, 0], sizes = [62, 85], strides = [1, 1]} : vector<62x86xf32> to vector<62x85xf32>
    %c0_6 = arith.constant 0 : index
    %8 = memref.load %arg1[%c0_6] : memref<48xf32, #tpu.memory_space<smem>>
    %9 = vector.broadcast %8 : f32 to vector<62x85xf32>
    %10 = arith.mulf %9, %7 : vector<62x85xf32>
    %11 = arith.addf %0, %10 : vector<62x85xf32>
    %c12 = arith.constant 12 : index
    %12 = memref.load %arg1[%c12] : memref<48xf32, #tpu.memory_space<smem>>
    %13 = vector.broadcast %12 : f32 to vector<62x85xf32>
    %14 = arith.mulf %13, %7 : vector<62x85xf32>
    %15 = arith.addf %1, %14 : vector<62x85xf32>
    %c24 = arith.constant 24 : index
    %16 = memref.load %arg1[%c24] : memref<48xf32, #tpu.memory_space<smem>>
    %17 = vector.broadcast %16 : f32 to vector<62x85xf32>
    %18 = arith.mulf %17, %7 : vector<62x85xf32>
    %19 = arith.addf %2, %18 : vector<62x85xf32>
    %c36 = arith.constant 36 : index
    %20 = memref.load %arg1[%c36] : memref<48xf32, #tpu.memory_space<smem>>
    %21 = vector.broadcast %20 : f32 to vector<62x85xf32>
    %22 = arith.mulf %21, %7 : vector<62x85xf32>
    %23 = arith.addf %3, %22 : vector<62x85xf32>
    %24 = vector.extract_strided_slice %6 {offsets = [0, 1], sizes = [62, 85], strides = [1, 1]} : vector<62x86xf32> to vector<62x85xf32>
    %c2 = arith.constant 2 : index
    %25 = memref.load %arg1[%c2] : memref<48xf32, #tpu.memory_space<smem>>
    %26 = vector.broadcast %25 : f32 to vector<62x85xf32>
    %27 = arith.mulf %26, %24 : vector<62x85xf32>
    %28 = arith.addf %11, %27 : vector<62x85xf32>
    %c14 = arith.constant 14 : index
    %29 = memref.load %arg1[%c14] : memref<48xf32, #tpu.memory_space<smem>>
    %30 = vector.broadcast %29 : f32 to vector<62x85xf32>
    %31 = arith.mulf %30, %24 : vector<62x85xf32>
    %32 = arith.addf %15, %31 : vector<62x85xf32>
    %c26 = arith.constant 26 : index
    %33 = memref.load %arg1[%c26] : memref<48xf32, #tpu.memory_space<smem>>
    %34 = vector.broadcast %33 : f32 to vector<62x85xf32>
    %35 = arith.mulf %34, %24 : vector<62x85xf32>
    %36 = arith.addf %19, %35 : vector<62x85xf32>
    %c38 = arith.constant 38 : index
    %37 = memref.load %arg1[%c38] : memref<48xf32, #tpu.memory_space<smem>>
    %38 = vector.broadcast %37 : f32 to vector<62x85xf32>
    %39 = arith.mulf %38, %24 : vector<62x85xf32>
    %40 = arith.addf %23, %39 : vector<62x85xf32>
    %c0_7 = arith.constant 0 : index
    %c1 = arith.constant 1 : index
    %c0_8 = arith.constant 0 : index
    %c0_9 = arith.constant 0 : index
    %41 = vector.load %arg0[%c0_7, %c1, %c0_8, %c0_9] : memref<3x2x62x86xbf16, #tpu.memory_space<vmem>>, vector<1x1x62x86xbf16>
    %42 = vector.shape_cast %41 : vector<1x1x62x86xbf16> to vector<62x86xbf16>
    %43 = arith.extf %42 : vector<62x86xbf16> to vector<62x86xf32>
    %44 = vector.extract_strided_slice %43 {offsets = [0, 0], sizes = [62, 85], strides = [1, 1]} : vector<62x86xf32> to vector<62x85xf32>
    %c1_10 = arith.constant 1 : index
    %45 = memref.load %arg1[%c1_10] : memref<48xf32, #tpu.memory_space<smem>>
    %46 = vector.broadcast %45 : f32 to vector<62x85xf32>
    %47 = arith.mulf %46, %44 : vector<62x85xf32>
    %48 = arith.addf %28, %47 : vector<62x85xf32>
    %c13 = arith.constant 13 : index
    %49 = memref.load %arg1[%c13] : memref<48xf32, #tpu.memory_space<smem>>
    %50 = vector.broadcast %49 : f32 to vector<62x85xf32>
    %51 = arith.mulf %50, %44 : vector<62x85xf32>
    %52 = arith.addf %32, %51 : vector<62x85xf32>
    %c25 = arith.constant 25 : index
    %53 = memref.load %arg1[%c25] : memref<48xf32, #tpu.memory_space<smem>>
    %54 = vector.broadcast %53 : f32 to vector<62x85xf32>
    %55 = arith.mulf %54, %44 : vector<62x85xf32>
    %56 = arith.addf %36, %55 : vector<62x85xf32>
    %c37 = arith.constant 37 : index
    %57 = memref.load %arg1[%c37] : memref<48xf32, #tpu.memory_space<smem>>
    %58 = vector.broadcast %57 : f32 to vector<62x85xf32>
    %59 = arith.mulf %58, %44 : vector<62x85xf32>
    %60 = arith.addf %40, %59 : vector<62x85xf32>
    %61 = vector.extract_strided_slice %43 {offsets = [0, 1], sizes = [62, 85], strides = [1, 1]} : vector<62x86xf32> to vector<62x85xf32>
    %c3 = arith.constant 3 : index
    %62 = memref.load %arg1[%c3] : memref<48xf32, #tpu.memory_space<smem>>
    %63 = vector.broadcast %62 : f32 to vector<62x85xf32>
    %64 = arith.mulf %63, %61 : vector<62x85xf32>
    %65 = arith.addf %48, %64 : vector<62x85xf32>
    %c15 = arith.constant 15 : index
    %66 = memref.load %arg1[%c15] : memref<48xf32, #tpu.memory_space<smem>>
    %67 = vector.broadcast %66 : f32 to vector<62x85xf32>
    %68 = arith.mulf %67, %61 : vector<62x85xf32>
    %69 = arith.addf %52, %68 : vector<62x85xf32>
    %c27 = arith.constant 27 : index
    %70 = memref.load %arg1[%c27] : memref<48xf32, #tpu.memory_space<smem>>
    %71 = vector.broadcast %70 : f32 to vector<62x85xf32>
    %72 = arith.mulf %71, %61 : vector<62x85xf32>
    %73 = arith.addf %56, %72 : vector<62x85xf32>
    %c39 = arith.constant 39 : index
    %74 = memref.load %arg1[%c39] : memref<48xf32, #tpu.memory_space<smem>>
    %75 = vector.broadcast %74 : f32 to vector<62x85xf32>
    %76 = arith.mulf %75, %61 : vector<62x85xf32>
    %77 = arith.addf %60, %76 : vector<62x85xf32>
    %c1_11 = arith.constant 1 : index
    %c0_12 = arith.constant 0 : index
    %c0_13 = arith.constant 0 : index
    %c0_14 = arith.constant 0 : index
    %78 = vector.load %arg0[%c1_11, %c0_12, %c0_13, %c0_14] : memref<3x2x62x86xbf16, #tpu.memory_space<vmem>>, vector<1x1x62x86xbf16>
    %79 = vector.shape_cast %78 : vector<1x1x62x86xbf16> to vector<62x86xbf16>
    %80 = arith.extf %79 : vector<62x86xbf16> to vector<62x86xf32>
    %81 = vector.extract_strided_slice %80 {offsets = [0, 0], sizes = [62, 85], strides = [1, 1]} : vector<62x86xf32> to vector<62x85xf32>
    %c4 = arith.constant 4 : index
    %82 = memref.load %arg1[%c4] : memref<48xf32, #tpu.memory_space<smem>>
    %83 = vector.broadcast %82 : f32 to vector<62x85xf32>
    %84 = arith.mulf %83, %81 : vector<62x85xf32>
    %85 = arith.addf %65, %84 : vector<62x85xf32>
    %c16 = arith.constant 16 : index
    %86 = memref.load %arg1[%c16] : memref<48xf32, #tpu.memory_space<smem>>
    %87 = vector.broadcast %86 : f32 to vector<62x85xf32>
    %88 = arith.mulf %87, %81 : vector<62x85xf32>
    %89 = arith.addf %69, %88 : vector<62x85xf32>
    %c28 = arith.constant 28 : index
    %90 = memref.load %arg1[%c28] : memref<48xf32, #tpu.memory_space<smem>>
    %91 = vector.broadcast %90 : f32 to vector<62x85xf32>
    %92 = arith.mulf %91, %81 : vector<62x85xf32>
    %93 = arith.addf %73, %92 : vector<62x85xf32>
    %c40 = arith.constant 40 : index
    %94 = memref.load %arg1[%c40] : memref<48xf32, #tpu.memory_space<smem>>
    %95 = vector.broadcast %94 : f32 to vector<62x85xf32>
    %96 = arith.mulf %95, %81 : vector<62x85xf32>
    %97 = arith.addf %77, %96 : vector<62x85xf32>
    %98 = vector.extract_strided_slice %80 {offsets = [0, 1], sizes = [62, 85], strides = [1, 1]} : vector<62x86xf32> to vector<62x85xf32>
    %c6 = arith.constant 6 : index
    %99 = memref.load %arg1[%c6] : memref<48xf32, #tpu.memory_space<smem>>
    %100 = vector.broadcast %99 : f32 to vector<62x85xf32>
    %101 = arith.mulf %100, %98 : vector<62x85xf32>
    %102 = arith.addf %85, %101 : vector<62x85xf32>
    %c18 = arith.constant 18 : index
    %103 = memref.load %arg1[%c18] : memref<48xf32, #tpu.memory_space<smem>>
    %104 = vector.broadcast %103 : f32 to vector<62x85xf32>
    %105 = arith.mulf %104, %98 : vector<62x85xf32>
    %106 = arith.addf %89, %105 : vector<62x85xf32>
    %c30 = arith.constant 30 : index
    %107 = memref.load %arg1[%c30] : memref<48xf32, #tpu.memory_space<smem>>
    %108 = vector.broadcast %107 : f32 to vector<62x85xf32>
    %109 = arith.mulf %108, %98 : vector<62x85xf32>
    %110 = arith.addf %93, %109 : vector<62x85xf32>
    %c42 = arith.constant 42 : index
    %111 = memref.load %arg1[%c42] : memref<48xf32, #tpu.memory_space<smem>>
    %112 = vector.broadcast %111 : f32 to vector<62x85xf32>
    %113 = arith.mulf %112, %98 : vector<62x85xf32>
    %114 = arith.addf %97, %113 : vector<62x85xf32>
    %c1_15 = arith.constant 1 : index
    %c1_16 = arith.constant 1 : index
    %c0_17 = arith.constant 0 : index
    %c0_18 = arith.constant 0 : index
    %115 = vector.load %arg0[%c1_15, %c1_16, %c0_17, %c0_18] : memref<3x2x62x86xbf16, #tpu.memory_space<vmem>>, vector<1x1x62x86xbf16>
    %116 = vector.shape_cast %115 : vector<1x1x62x86xbf16> to vector<62x86xbf16>
    %117 = arith.extf %116 : vector<62x86xbf16> to vector<62x86xf32>
    %118 = vector.extract_strided_slice %117 {offsets = [0, 0], sizes = [62, 85], strides = [1, 1]} : vector<62x86xf32> to vector<62x85xf32>
    %c5 = arith.constant 5 : index
    %119 = memref.load %arg1[%c5] : memref<48xf32, #tpu.memory_space<smem>>
    %120 = vector.broadcast %119 : f32 to vector<62x85xf32>
    %121 = arith.mulf %120, %118 : vector<62x85xf32>
    %122 = arith.addf %102, %121 : vector<62x85xf32>
    %c17 = arith.constant 17 : index
    %123 = memref.load %arg1[%c17] : memref<48xf32, #tpu.memory_space<smem>>
    %124 = vector.broadcast %123 : f32 to vector<62x85xf32>
    %125 = arith.mulf %124, %118 : vector<62x85xf32>
    %126 = arith.addf %106, %125 : vector<62x85xf32>
    %c29 = arith.constant 29 : index
    %127 = memref.load %arg1[%c29] : memref<48xf32, #tpu.memory_space<smem>>
    %128 = vector.broadcast %127 : f32 to vector<62x85xf32>
    %129 = arith.mulf %128, %118 : vector<62x85xf32>
    %130 = arith.addf %110, %129 : vector<62x85xf32>
    %c41 = arith.constant 41 : index
    %131 = memref.load %arg1[%c41] : memref<48xf32, #tpu.memory_space<smem>>
    %132 = vector.broadcast %131 : f32 to vector<62x85xf32>
    %133 = arith.mulf %132, %118 : vector<62x85xf32>
    %134 = arith.addf %114, %133 : vector<62x85xf32>
    %135 = vector.extract_strided_slice %117 {offsets = [0, 1], sizes = [62, 85], strides = [1, 1]} : vector<62x86xf32> to vector<62x85xf32>
    %c7 = arith.constant 7 : index
    %136 = memref.load %arg1[%c7] : memref<48xf32, #tpu.memory_space<smem>>
    %137 = vector.broadcast %136 : f32 to vector<62x85xf32>
    %138 = arith.mulf %137, %135 : vector<62x85xf32>
    %139 = arith.addf %122, %138 : vector<62x85xf32>
    %c19 = arith.constant 19 : index
    %140 = memref.load %arg1[%c19] : memref<48xf32, #tpu.memory_space<smem>>
    %141 = vector.broadcast %140 : f32 to vector<62x85xf32>
    %142 = arith.mulf %141, %135 : vector<62x85xf32>
    %143 = arith.addf %126, %142 : vector<62x85xf32>
    %c31 = arith.constant 31 : index
    %144 = memref.load %arg1[%c31] : memref<48xf32, #tpu.memory_space<smem>>
    %145 = vector.broadcast %144 : f32 to vector<62x85xf32>
    %146 = arith.mulf %145, %135 : vector<62x85xf32>
    %147 = arith.addf %130, %146 : vector<62x85xf32>
    %c43 = arith.constant 43 : index
    %148 = memref.load %arg1[%c43] : memref<48xf32, #tpu.memory_space<smem>>
    %149 = vector.broadcast %148 : f32 to vector<62x85xf32>
    %150 = arith.mulf %149, %135 : vector<62x85xf32>
    %151 = arith.addf %134, %150 : vector<62x85xf32>
    %c2_19 = arith.constant 2 : index
    %c0_20 = arith.constant 0 : index
    %c0_21 = arith.constant 0 : index
    %c0_22 = arith.constant 0 : index
    %152 = vector.load %arg0[%c2_19, %c0_20, %c0_21, %c0_22] : memref<3x2x62x86xbf16, #tpu.memory_space<vmem>>, vector<1x1x62x86xbf16>
    %153 = vector.shape_cast %152 : vector<1x1x62x86xbf16> to vector<62x86xbf16>
    %154 = arith.extf %153 : vector<62x86xbf16> to vector<62x86xf32>
    %155 = vector.extract_strided_slice %154 {offsets = [0, 0], sizes = [62, 85], strides = [1, 1]} : vector<62x86xf32> to vector<62x85xf32>
    %c8 = arith.constant 8 : index
    %156 = memref.load %arg1[%c8] : memref<48xf32, #tpu.memory_space<smem>>
    %157 = vector.broadcast %156 : f32 to vector<62x85xf32>
    %158 = arith.mulf %157, %155 : vector<62x85xf32>
    %159 = arith.addf %139, %158 : vector<62x85xf32>
    %c20 = arith.constant 20 : index
    %160 = memref.load %arg1[%c20] : memref<48xf32, #tpu.memory_space<smem>>
    %161 = vector.broadcast %160 : f32 to vector<62x85xf32>
    %162 = arith.mulf %161, %155 : vector<62x85xf32>
    %163 = arith.addf %143, %162 : vector<62x85xf32>
    %c32 = arith.constant 32 : index
    %164 = memref.load %arg1[%c32] : memref<48xf32, #tpu.memory_space<smem>>
    %165 = vector.broadcast %164 : f32 to vector<62x85xf32>
    %166 = arith.mulf %165, %155 : vector<62x85xf32>
    %167 = arith.addf %147, %166 : vector<62x85xf32>
    %c44 = arith.constant 44 : index
    %168 = memref.load %arg1[%c44] : memref<48xf32, #tpu.memory_space<smem>>
    %169 = vector.broadcast %168 : f32 to vector<62x85xf32>
    %170 = arith.mulf %169, %155 : vector<62x85xf32>
    %171 = arith.addf %151, %170 : vector<62x85xf32>
    %172 = vector.extract_strided_slice %154 {offsets = [0, 1], sizes = [62, 85], strides = [1, 1]} : vector<62x86xf32> to vector<62x85xf32>
    %c10 = arith.constant 10 : index
    %173 = memref.load %arg1[%c10] : memref<48xf32, #tpu.memory_space<smem>>
    %174 = vector.broadcast %173 : f32 to vector<62x85xf32>
    %175 = arith.mulf %174, %172 : vector<62x85xf32>
    %176 = arith.addf %159, %175 : vector<62x85xf32>
    %c22 = arith.constant 22 : index
    %177 = memref.load %arg1[%c22] : memref<48xf32, #tpu.memory_space<smem>>
    %178 = vector.broadcast %177 : f32 to vector<62x85xf32>
    %179 = arith.mulf %178, %172 : vector<62x85xf32>
    %180 = arith.addf %163, %179 : vector<62x85xf32>
    %c34 = arith.constant 34 : index
    %181 = memref.load %arg1[%c34] : memref<48xf32, #tpu.memory_space<smem>>
    %182 = vector.broadcast %181 : f32 to vector<62x85xf32>
    %183 = arith.mulf %182, %172 : vector<62x85xf32>
    %184 = arith.addf %167, %183 : vector<62x85xf32>
    %c46 = arith.constant 46 : index
    %185 = memref.load %arg1[%c46] : memref<48xf32, #tpu.memory_space<smem>>
    %186 = vector.broadcast %185 : f32 to vector<62x85xf32>
    %187 = arith.mulf %186, %172 : vector<62x85xf32>
    %188 = arith.addf %171, %187 : vector<62x85xf32>
    %c2_23 = arith.constant 2 : index
    %c1_24 = arith.constant 1 : index
    %c0_25 = arith.constant 0 : index
    %c0_26 = arith.constant 0 : index
    %189 = vector.load %arg0[%c2_23, %c1_24, %c0_25, %c0_26] : memref<3x2x62x86xbf16, #tpu.memory_space<vmem>>, vector<1x1x62x86xbf16>
    %190 = vector.shape_cast %189 : vector<1x1x62x86xbf16> to vector<62x86xbf16>
    %191 = arith.extf %190 : vector<62x86xbf16> to vector<62x86xf32>
    %192 = vector.extract_strided_slice %191 {offsets = [0, 0], sizes = [62, 85], strides = [1, 1]} : vector<62x86xf32> to vector<62x85xf32>
    %c9 = arith.constant 9 : index
    %193 = memref.load %arg1[%c9] : memref<48xf32, #tpu.memory_space<smem>>
    %194 = vector.broadcast %193 : f32 to vector<62x85xf32>
    %195 = arith.mulf %194, %192 : vector<62x85xf32>
    %196 = arith.addf %176, %195 : vector<62x85xf32>
    %c21 = arith.constant 21 : index
    %197 = memref.load %arg1[%c21] : memref<48xf32, #tpu.memory_space<smem>>
    %198 = vector.broadcast %197 : f32 to vector<62x85xf32>
    %199 = arith.mulf %198, %192 : vector<62x85xf32>
    %200 = arith.addf %180, %199 : vector<62x85xf32>
    %c33 = arith.constant 33 : index
    %201 = memref.load %arg1[%c33] : memref<48xf32, #tpu.memory_space<smem>>
    %202 = vector.broadcast %201 : f32 to vector<62x85xf32>
    %203 = arith.mulf %202, %192 : vector<62x85xf32>
    %204 = arith.addf %184, %203 : vector<62x85xf32>
    %c45 = arith.constant 45 : index
    %205 = memref.load %arg1[%c45] : memref<48xf32, #tpu.memory_space<smem>>
    %206 = vector.broadcast %205 : f32 to vector<62x85xf32>
    %207 = arith.mulf %206, %192 : vector<62x85xf32>
    %208 = arith.addf %188, %207 : vector<62x85xf32>
    %209 = vector.extract_strided_slice %191 {offsets = [0, 1], sizes = [62, 85], strides = [1, 1]} : vector<62x86xf32> to vector<62x85xf32>
    %c11 = arith.constant 11 : index
    %210 = memref.load %arg1[%c11] : memref<48xf32, #tpu.memory_space<smem>>
    %211 = vector.broadcast %210 : f32 to vector<62x85xf32>
    %212 = arith.mulf %211, %209 : vector<62x85xf32>
    %213 = arith.addf %196, %212 : vector<62x85xf32>
    %c23 = arith.constant 23 : index
    %214 = memref.load %arg1[%c23] : memref<48xf32, #tpu.memory_space<smem>>
    %215 = vector.broadcast %214 : f32 to vector<62x85xf32>
    %216 = arith.mulf %215, %209 : vector<62x85xf32>
    %217 = arith.addf %200, %216 : vector<62x85xf32>
    %c35 = arith.constant 35 : index
    %218 = memref.load %arg1[%c35] : memref<48xf32, #tpu.memory_space<smem>>
    %219 = vector.broadcast %218 : f32 to vector<62x85xf32>
    %220 = arith.mulf %219, %209 : vector<62x85xf32>
    %221 = arith.addf %204, %220 : vector<62x85xf32>
    %c47 = arith.constant 47 : index
    %222 = memref.load %arg1[%c47] : memref<48xf32, #tpu.memory_space<smem>>
    %223 = vector.broadcast %222 : f32 to vector<62x85xf32>
    %224 = arith.mulf %223, %209 : vector<62x85xf32>
    %225 = arith.addf %208, %224 : vector<62x85xf32>
    %cst_27 = arith.constant 0.000000e+00 : f32
    %226 = vector.broadcast %cst_27 : f32 to vector<62x24xf32>
    %c0_28 = arith.constant 0 : index
    %227 = memref.load %arg2[%c0_28] : memref<4xf32, #tpu.memory_space<smem>>
    %228 = vector.broadcast %227 : f32 to vector<62x85xf32>
    %229 = arith.addf %213, %228 : vector<62x85xf32>
    %cst_29 = arith.constant 0.000000e+00 : f32
    %230 = vector.broadcast %cst_29 : f32 to vector<62x85xf32>
    %231 = arith.maximumf %229, %230 : vector<62x85xf32>
    %c0_30 = arith.constant 0 : index
    %c0_31 = arith.constant 0 : index
    %c0_32 = arith.constant 0 : index
    %232 = vector.load %arg3[%c0_30, %c0_31, %c0_32] : memref<4x85x24xf32, #tpu.memory_space<vmem>>, vector<1x85x24xf32>
    %233 = vector.shape_cast %232 : vector<1x85x24xf32> to vector<85x24xf32>
    %cst_33 = arith.constant dense<0.000000e+00> : vector<62x24xf32>
    %234 = tpu.matmul %231, %233, %cst_33 {dimension_numbers = #tpu.dot_dimension_numbers<[1], [0], [0], [1], [0, 0, 1, 1], [], []>} : vector<62x85xf32>, vector<85x24xf32>, vector<62x24xf32> -> vector<62x24xf32>
    %235 = arith.addf %226, %234 : vector<62x24xf32>
    %c1_34 = arith.constant 1 : index
    %236 = memref.load %arg2[%c1_34] : memref<4xf32, #tpu.memory_space<smem>>
    %237 = vector.broadcast %236 : f32 to vector<62x85xf32>
    %238 = arith.addf %217, %237 : vector<62x85xf32>
    %cst_35 = arith.constant 0.000000e+00 : f32
    %239 = vector.broadcast %cst_35 : f32 to vector<62x85xf32>
    %240 = arith.maximumf %238, %239 : vector<62x85xf32>
    %c1_36 = arith.constant 1 : index
    %c0_37 = arith.constant 0 : index
    %c0_38 = arith.constant 0 : index
    %241 = vector.load %arg3[%c1_36, %c0_37, %c0_38] : memref<4x85x24xf32, #tpu.memory_space<vmem>>, vector<1x85x24xf32>
    %242 = vector.shape_cast %241 : vector<1x85x24xf32> to vector<85x24xf32>
    %cst_39 = arith.constant dense<0.000000e+00> : vector<62x24xf32>
    %243 = tpu.matmul %240, %242, %cst_39 {dimension_numbers = #tpu.dot_dimension_numbers<[1], [0], [0], [1], [0, 0, 1, 1], [], []>} : vector<62x85xf32>, vector<85x24xf32>, vector<62x24xf32> -> vector<62x24xf32>
    %244 = arith.addf %235, %243 : vector<62x24xf32>
    %c2_40 = arith.constant 2 : index
    %245 = memref.load %arg2[%c2_40] : memref<4xf32, #tpu.memory_space<smem>>
    %246 = vector.broadcast %245 : f32 to vector<62x85xf32>
    %247 = arith.addf %221, %246 : vector<62x85xf32>
    %cst_41 = arith.constant 0.000000e+00 : f32
    %248 = vector.broadcast %cst_41 : f32 to vector<62x85xf32>
    %249 = arith.maximumf %247, %248 : vector<62x85xf32>
    %c2_42 = arith.constant 2 : index
    %c0_43 = arith.constant 0 : index
    %c0_44 = arith.constant 0 : index
    %250 = vector.load %arg3[%c2_42, %c0_43, %c0_44] : memref<4x85x24xf32, #tpu.memory_space<vmem>>, vector<1x85x24xf32>
    %251 = vector.shape_cast %250 : vector<1x85x24xf32> to vector<85x24xf32>
    %cst_45 = arith.constant dense<0.000000e+00> : vector<62x24xf32>
    %252 = tpu.matmul %249, %251, %cst_45 {dimension_numbers = #tpu.dot_dimension_numbers<[1], [0], [0], [1], [0, 0, 1, 1], [], []>} : vector<62x85xf32>, vector<85x24xf32>, vector<62x24xf32> -> vector<62x24xf32>
    %253 = arith.addf %244, %252 : vector<62x24xf32>
    %c3_46 = arith.constant 3 : index
    %254 = memref.load %arg2[%c3_46] : memref<4xf32, #tpu.memory_space<smem>>
    %255 = vector.broadcast %254 : f32 to vector<62x85xf32>
    %256 = arith.addf %225, %255 : vector<62x85xf32>
    %cst_47 = arith.constant 0.000000e+00 : f32
    %257 = vector.broadcast %cst_47 : f32 to vector<62x85xf32>
    %258 = arith.maximumf %256, %257 : vector<62x85xf32>
    %c3_48 = arith.constant 3 : index
    %c0_49 = arith.constant 0 : index
    %c0_50 = arith.constant 0 : index
    %259 = vector.load %arg3[%c3_48, %c0_49, %c0_50] : memref<4x85x24xf32, #tpu.memory_space<vmem>>, vector<1x85x24xf32>
    %260 = vector.shape_cast %259 : vector<1x85x24xf32> to vector<85x24xf32>
    %cst_51 = arith.constant dense<0.000000e+00> : vector<62x24xf32>
    %261 = tpu.matmul %258, %260, %cst_51 {dimension_numbers = #tpu.dot_dimension_numbers<[1], [0], [0], [1], [0, 0, 1, 1], [], []>} : vector<62x85xf32>, vector<85x24xf32>, vector<62x24xf32> -> vector<62x24xf32>
    %262 = arith.addf %253, %261 : vector<62x24xf32>
    %c0_52 = arith.constant 0 : index
    %c0_53 = arith.constant 0 : index
    %263 = vector.load %arg4[%c0_52, %c0_53] : memref<1x24xf32, #tpu.memory_space<vmem>>, vector<1x24xf32>
    %264 = vector.broadcast %263 : vector<1x24xf32> to vector<62x24xf32>
    %265 = arith.addf %262, %264 : vector<62x24xf32>
    %cst_54 = arith.constant 0.000000e+00 : f32
    %266 = vector.broadcast %cst_54 : f32 to vector<62x24xf32>
    %267 = arith.maximumf %265, %266 : vector<62x24xf32>
    %c0_55 = arith.constant 0 : index
    %c0_56 = arith.constant 0 : index
    %268 = vector.load %arg5[%c0_55, %c0_56] : memref<24x8xf32, #tpu.memory_space<vmem>>, vector<24x8xf32>
    %cst_57 = arith.constant dense<0.000000e+00> : vector<62x8xf32>
    %269 = tpu.matmul %267, %268, %cst_57 {dimension_numbers = #tpu.dot_dimension_numbers<[1], [0], [0], [1], [0, 0, 1, 1], [], []>} : vector<62x24xf32>, vector<24x8xf32>, vector<62x8xf32> -> vector<62x8xf32>
    %c0_58 = arith.constant 0 : index
    %c0_59 = arith.constant 0 : index
    %270 = vector.load %arg6[%c0_58, %c0_59] : memref<1x8xf32, #tpu.memory_space<vmem>>, vector<1x8xf32>
    %271 = vector.broadcast %270 : vector<1x8xf32> to vector<62x8xf32>
    %272 = arith.addf %269, %271 : vector<62x8xf32>
    %cst_60 = arith.constant 0.000000e+00 : f32
    %273 = vector.broadcast %cst_60 : f32 to vector<62x8xf32>
    %274 = arith.maximumf %272, %273 : vector<62x8xf32>
    %c0_61 = arith.constant 0 : index
    %c0_62 = arith.constant 0 : index
    %275 = vector.load %arg7[%c0_61, %c0_62] : memref<8x24xf32, #tpu.memory_space<vmem>>, vector<8x24xf32>
    %cst_63 = arith.constant dense<0.000000e+00> : vector<62x24xf32>
    %276 = tpu.matmul %274, %275, %cst_63 {dimension_numbers = #tpu.dot_dimension_numbers<[1], [0], [0], [1], [0, 0, 1, 1], [], []>} : vector<62x8xf32>, vector<8x24xf32>, vector<62x24xf32> -> vector<62x24xf32>
    %c0_64 = arith.constant 0 : index
    %c0_65 = arith.constant 0 : index
    %277 = vector.load %arg8[%c0_64, %c0_65] : memref<1x24xf32, #tpu.memory_space<vmem>>, vector<1x24xf32>
    %278 = vector.broadcast %277 : vector<1x24xf32> to vector<62x24xf32>
    %279 = arith.addf %276, %278 : vector<62x24xf32>
    %280 = vector.extract_strided_slice %279 {offsets = [0, 0], sizes = [62, 8], strides = [1, 1]} : vector<62x24xf32> to vector<62x8xf32>
    %281 = vector.extract_strided_slice %279 {offsets = [0, 8], sizes = [62, 8], strides = [1, 1]} : vector<62x24xf32> to vector<62x8xf32>
    %282 = vector.extract_strided_slice %279 {offsets = [0, 16], sizes = [62, 8], strides = [1, 1]} : vector<62x24xf32> to vector<62x8xf32>
    %cst_66 = arith.constant dense<0.000000e+00> : vector<62x62xf32>
    %283 = tpu.matmul %280, %281, %cst_66 {dimension_numbers = #tpu.dot_dimension_numbers<[1], [1], [0], [0], [0, 0, 1, 0], [], []>} : vector<62x8xf32>, vector<62x8xf32>, vector<62x62xf32> -> vector<62x62xf32>
    %c0_67 = arith.constant 0 : index
    %c0_68 = arith.constant 0 : index
    %284 = vector.load %arg9[%c0_67, %c0_68] : memref<62x62xf32, #tpu.memory_space<vmem>>, vector<62x62xf32>
    %285 = arith.mulf %283, %284 : vector<62x62xf32>
    %cst_69 = arith.constant 0.353553385 : f32
    %286 = vector.broadcast %cst_69 : f32 to vector<62x62xf32>
    %287 = arith.mulf %285, %286 : vector<62x62xf32>
    %cst_70 = arith.constant dense<0xFF800000> : vector<62xf32>
    %288 = vector.multi_reduction <maximumf>, %287, %cst_70 [1] : vector<62x62xf32> to vector<62xf32>
    %289 = vector.shape_cast %288 : vector<62xf32> to vector<62x1xf32>
    %290 = vector.broadcast %289 : vector<62x1xf32> to vector<62x62xf32>
    %291 = arith.subf %287, %290 : vector<62x62xf32>
    %292 = math.exp %291 : vector<62x62xf32>
    %cst_71 = arith.constant dense<0.000000e+00> : vector<62xf32>
    %293 = vector.multi_reduction <add>, %292, %cst_71 [1] : vector<62x62xf32> to vector<62xf32>
    %294 = vector.shape_cast %293 : vector<62xf32> to vector<62x1xf32>
    %295 = tpu.reciprocal %294 {approx = true} : vector<62x1xf32> -> vector<62x1xf32>
    %296 = vector.broadcast %295 : vector<62x1xf32> to vector<62x62xf32>
    %297 = arith.mulf %292, %296 : vector<62x62xf32>
    %cst_72 = arith.constant dense<0.000000e+00> : vector<62x8xf32>
    %298 = tpu.matmul %297, %282, %cst_72 {dimension_numbers = #tpu.dot_dimension_numbers<[1], [0], [0], [1], [0, 0, 1, 1], [], []>} : vector<62x62xf32>, vector<62x8xf32>, vector<62x8xf32> -> vector<62x8xf32>
    %299 = arith.addf %298, %274 : vector<62x8xf32>
    %cst_73 = arith.constant 0.000000e+00 : f32
    %300 = vector.broadcast %cst_73 : f32 to vector<62x8xf32>
    %301 = arith.maximumf %299, %300 : vector<62x8xf32>
    %c0_74 = arith.constant 0 : index
    %c0_75 = arith.constant 0 : index
    %302 = vector.load %arg11[%c0_74, %c0_75] : memref<5x1xf32, #tpu.memory_space<vmem>>, vector<5x1xf32>
    %c0_76 = arith.constant 0 : index
    %c0_77 = arith.constant 0 : index
    %c0_78 = arith.constant 0 : index
    %303 = vector.load %arg10[%c0_76, %c0_77, %c0_78] : memref<8x5x62xf32, #tpu.memory_space<vmem>>, vector<1x5x62xf32>
    %304 = vector.shape_cast %303 : vector<1x5x62xf32> to vector<5x62xf32>
    %cst_79 = arith.constant dense<0.000000e+00> : vector<5x8xf32>
    %305 = tpu.matmul %304, %301, %cst_79 {dimension_numbers = #tpu.dot_dimension_numbers<[1], [0], [0], [1], [0, 0, 1, 1], [], []>} : vector<5x62xf32>, vector<62x8xf32>, vector<5x8xf32> -> vector<5x8xf32>
    %306 = vector.extract_strided_slice %305 {offsets = [0, 0], sizes = [5, 1], strides = [1, 1]} : vector<5x8xf32> to vector<5x1xf32>
    %307 = arith.addf %302, %306 : vector<5x1xf32>
    %c1_80 = arith.constant 1 : index
    %c0_81 = arith.constant 0 : index
    %c0_82 = arith.constant 0 : index
    %308 = vector.load %arg10[%c1_80, %c0_81, %c0_82] : memref<8x5x62xf32, #tpu.memory_space<vmem>>, vector<1x5x62xf32>
    %309 = vector.shape_cast %308 : vector<1x5x62xf32> to vector<5x62xf32>
    %cst_83 = arith.constant dense<0.000000e+00> : vector<5x8xf32>
    %310 = tpu.matmul %309, %301, %cst_83 {dimension_numbers = #tpu.dot_dimension_numbers<[1], [0], [0], [1], [0, 0, 1, 1], [], []>} : vector<5x62xf32>, vector<62x8xf32>, vector<5x8xf32> -> vector<5x8xf32>
    %311 = vector.extract_strided_slice %310 {offsets = [0, 1], sizes = [5, 1], strides = [1, 1]} : vector<5x8xf32> to vector<5x1xf32>
    %312 = arith.addf %307, %311 : vector<5x1xf32>
    %c2_84 = arith.constant 2 : index
    %c0_85 = arith.constant 0 : index
    %c0_86 = arith.constant 0 : index
    %313 = vector.load %arg10[%c2_84, %c0_85, %c0_86] : memref<8x5x62xf32, #tpu.memory_space<vmem>>, vector<1x5x62xf32>
    %314 = vector.shape_cast %313 : vector<1x5x62xf32> to vector<5x62xf32>
    %cst_87 = arith.constant dense<0.000000e+00> : vector<5x8xf32>
    %315 = tpu.matmul %314, %301, %cst_87 {dimension_numbers = #tpu.dot_dimension_numbers<[1], [0], [0], [1], [0, 0, 1, 1], [], []>} : vector<5x62xf32>, vector<62x8xf32>, vector<5x8xf32> -> vector<5x8xf32>
    %316 = vector.extract_strided_slice %315 {offsets = [0, 2], sizes = [5, 1], strides = [1, 1]} : vector<5x8xf32> to vector<5x1xf32>
    %317 = arith.addf %312, %316 : vector<5x1xf32>
    %c3_88 = arith.constant 3 : index
    %c0_89 = arith.constant 0 : index
    %c0_90 = arith.constant 0 : index
    %318 = vector.load %arg10[%c3_88, %c0_89, %c0_90] : memref<8x5x62xf32, #tpu.memory_space<vmem>>, vector<1x5x62xf32>
    %319 = vector.shape_cast %318 : vector<1x5x62xf32> to vector<5x62xf32>
    %cst_91 = arith.constant dense<0.000000e+00> : vector<5x8xf32>
    %320 = tpu.matmul %319, %301, %cst_91 {dimension_numbers = #tpu.dot_dimension_numbers<[1], [0], [0], [1], [0, 0, 1, 1], [], []>} : vector<5x62xf32>, vector<62x8xf32>, vector<5x8xf32> -> vector<5x8xf32>
    %321 = vector.extract_strided_slice %320 {offsets = [0, 3], sizes = [5, 1], strides = [1, 1]} : vector<5x8xf32> to vector<5x1xf32>
    %322 = arith.addf %317, %321 : vector<5x1xf32>
    %c4_92 = arith.constant 4 : index
    %c0_93 = arith.constant 0 : index
    %c0_94 = arith.constant 0 : index
    %323 = vector.load %arg10[%c4_92, %c0_93, %c0_94] : memref<8x5x62xf32, #tpu.memory_space<vmem>>, vector<1x5x62xf32>
    %324 = vector.shape_cast %323 : vector<1x5x62xf32> to vector<5x62xf32>
    %cst_95 = arith.constant dense<0.000000e+00> : vector<5x8xf32>
    %325 = tpu.matmul %324, %301, %cst_95 {dimension_numbers = #tpu.dot_dimension_numbers<[1], [0], [0], [1], [0, 0, 1, 1], [], []>} : vector<5x62xf32>, vector<62x8xf32>, vector<5x8xf32> -> vector<5x8xf32>
    %326 = vector.extract_strided_slice %325 {offsets = [0, 4], sizes = [5, 1], strides = [1, 1]} : vector<5x8xf32> to vector<5x1xf32>
    %327 = arith.addf %322, %326 : vector<5x1xf32>
    %c5_96 = arith.constant 5 : index
    %c0_97 = arith.constant 0 : index
    %c0_98 = arith.constant 0 : index
    %328 = vector.load %arg10[%c5_96, %c0_97, %c0_98] : memref<8x5x62xf32, #tpu.memory_space<vmem>>, vector<1x5x62xf32>
    %329 = vector.shape_cast %328 : vector<1x5x62xf32> to vector<5x62xf32>
    %cst_99 = arith.constant dense<0.000000e+00> : vector<5x8xf32>
    %330 = tpu.matmul %329, %301, %cst_99 {dimension_numbers = #tpu.dot_dimension_numbers<[1], [0], [0], [1], [0, 0, 1, 1], [], []>} : vector<5x62xf32>, vector<62x8xf32>, vector<5x8xf32> -> vector<5x8xf32>
    %331 = vector.extract_strided_slice %330 {offsets = [0, 5], sizes = [5, 1], strides = [1, 1]} : vector<5x8xf32> to vector<5x1xf32>
    %332 = arith.addf %327, %331 : vector<5x1xf32>
    %c6_100 = arith.constant 6 : index
    %c0_101 = arith.constant 0 : index
    %c0_102 = arith.constant 0 : index
    %333 = vector.load %arg10[%c6_100, %c0_101, %c0_102] : memref<8x5x62xf32, #tpu.memory_space<vmem>>, vector<1x5x62xf32>
    %334 = vector.shape_cast %333 : vector<1x5x62xf32> to vector<5x62xf32>
    %cst_103 = arith.constant dense<0.000000e+00> : vector<5x8xf32>
    %335 = tpu.matmul %334, %301, %cst_103 {dimension_numbers = #tpu.dot_dimension_numbers<[1], [0], [0], [1], [0, 0, 1, 1], [], []>} : vector<5x62xf32>, vector<62x8xf32>, vector<5x8xf32> -> vector<5x8xf32>
    %336 = vector.extract_strided_slice %335 {offsets = [0, 6], sizes = [5, 1], strides = [1, 1]} : vector<5x8xf32> to vector<5x1xf32>
    %337 = arith.addf %332, %336 : vector<5x1xf32>
    %c7_104 = arith.constant 7 : index
    %c0_105 = arith.constant 0 : index
    %c0_106 = arith.constant 0 : index
    %338 = vector.load %arg10[%c7_104, %c0_105, %c0_106] : memref<8x5x62xf32, #tpu.memory_space<vmem>>, vector<1x5x62xf32>
    %339 = vector.shape_cast %338 : vector<1x5x62xf32> to vector<5x62xf32>
    %cst_107 = arith.constant dense<0.000000e+00> : vector<5x8xf32>
    %340 = tpu.matmul %339, %301, %cst_107 {dimension_numbers = #tpu.dot_dimension_numbers<[1], [0], [0], [1], [0, 0, 1, 1], [], []>} : vector<5x62xf32>, vector<62x8xf32>, vector<5x8xf32> -> vector<5x8xf32>
    %341 = vector.extract_strided_slice %340 {offsets = [0, 7], sizes = [5, 1], strides = [1, 1]} : vector<5x8xf32> to vector<5x1xf32>
    %342 = arith.addf %337, %341 : vector<5x1xf32>
    %c0_108 = arith.constant 0 : index
    %c0_109 = arith.constant 0 : index
    %343 = vector.load %arg12[%c0_108, %c0_109] : memref<5x1xf32, #tpu.memory_space<vmem>>, vector<5x1xf32>
    tpu.vector_store %arg12[%c0_108, %c0_109], %342 {strides = array<i32>} : memref<5x1xf32, #tpu.memory_space<vmem>>, vector<5x1xf32>,
    return
  }
}

</mosaic_0001>

<bundles_post_ra>
// kernel: mtsd_forward.1
= control target key start
LH: loop header
LB: loop body
LE: loop exit
PB: predicated region body
PF: predicated region fallthrough
CT: control target
= control target key end

     0   :  { %17 = vsyncpa [#allocation3], 0  ;;  %s7367_s0 = inlined_call_operand.vmem [shape: bf16[3,2,62,86], index: 0, kind: input, shape index: {}]   ;;  %s7368_s1 = inlined_call_operand.vmem [shape: f32[48], index: 1, kind: input, shape index: {}]   ;;  %s7369_s2 = inlined_call_operand.vmem [shape: f32[4], index: 2, kind: input, shape index: {}]   ;;  %s7370_s3 = inlined_call_operand.vmem [shape: f32[4,85,24], index: 3, kind: input, shape index: {}]   ;;  %s7371_s4 = inlined_call_operand.vmem [shape: f32[1,24], index: 4, kind: input, shape index: {}]   ;;  %s7372_s5 = inlined_call_operand.vmem [shape: f32[24,8], index: 5, kind: input, shape index: {}]   ;;  %s7373_s6 = inlined_call_operand.vmem [shape: f32[1,8], index: 6, kind: input, shape index: {}]   ;;  %s7374_s7 = inlined_call_operand.vmem [shape: f32[8,24], index: 7, kind: input, shape index: {}]   ;;  %s7375_s8 = inlined_call_operand.vmem [shape: f32[1,24], index: 8, kind: input, shape index: {}]   ;;  %s7376_s9 = inlined_call_operand.vmem [shape: f32[62,62], index: 9, kind: input, shape index: {}]   ;;  %s7377_s10 = inlined_call_operand.vmem [shape: f32[8,5,62], index: 10, kind: input, shape index: {}]   ;;  %s7378_s11 = inlined_call_operand.vmem [shape: f32[5,1], index: 11, kind: input, shape index: {}]   ;;  %s7379_s12 = inlined_call_operand.vmem [shape: f32[5,1], index: 12, kind: output, shape index: {}]  }
   0x1   :  { %s27_s23 = sshll.u32 %s7368_s1, 4  ;;  %s28_s23 = int_to_ptr.vmem [resolvable:$true] %s27_s23 }
   0x2   :  { %18 = vsyncpa [#allocation5], 0  ;;  %s37_s26 = sshll.u32 %s7369_s2, 4  ;;  %s5090_s27 = scalar_lea.vmem %s28_s23, 16  ;;  %s38_s26 = int_to_ptr.vmem [resolvable:$true] %s37_s26 }
   0x3   :  { %p5091_p0 = scmp.ne.s32.totalorder %s28_s23, %s5090_s27  ;;  %p5095_p1 = scmp.lt.s32.totalorder %s28_s23, %s28_s23 }
   0x4   :  { %p5096_p2 = scmp.lt.s32.totalorder %s5090_s27, %s5090_s27 }
   0x6   :  { %p5097_p3 = por %p5096_p2, %p5095_p1 }
   0x8   :  { %p5098_p4 = pnand %p5097_p3, %p5091_p0 }
   0xa   :  { %5101 = shalt.err (!%p5098_p4)
}
   0xb   :  { %s5118_s28 = smov [#allocation2]   ;;  %s5102_s29 = scalar_lea.vmem %s38_s26, 16 }
   0xc   :  { %30 = dma.vmem_to_smem %s28_s23, 16, %s5118_s28, [#allocation3]  }
   0xd   :  { %p5103_p5 = scmp.ne.s32.totalorder %s38_s26, %s5102_s29  ;;  %p5107_p6 = scmp.lt.s32.totalorder %s38_s26, %s38_s26 }
   0xe   :  { %p5108_p7 = scmp.lt.s32.totalorder %s5102_s29, %s5102_s29 }
  0x10   :  { %p5109_p8 = por %p5108_p7, %p5107_p6 }
  0x12   :  { %p5110_p9 = pnand %p5109_p8, %p5103_p5 }
  0x14   :  { %5113 = shalt.err (!%p5110_p9)
}
  0x15   :  { %s5119_s1 = smov [#allocation4]  }
  0x16   :  { %40 = dma.vmem_to_smem %s38_s26, 16, %s5119_s1, [#allocation5]  }
  0x17   :  { %5114 = dma.done.wait [#allocation3], 16  }
  0x18   :  { %5115 = vsyncadd [#allocation3], 4294967280 }
  0x19   :  { %5116 = dma.done.wait [#allocation5], 16  }
  0x1a   :  { %5117 = vsyncadd [#allocation5], 4294967280 }
  0x1b   :  { %65 = sfence }
  0x1c   :  { %v4158_v0 = vld [vmem:[%s7367_s0 + $0x20] sm:$0xff]   ;;  %s3878_s13 = sld [smem:[#allocation2 + $0xf]]  ;;  %s3862_s16 = sld [smem:[#allocation2 + $0xe]]  ;;  %v4156_v16 = vld [vmem:[%s7367_s0 + $0x8] sm:$0xff]   ;;  %v4157_v28 = vld [vmem:[%s7367_s0 + $0x10] sm:$0xff]   ;;  %vm1883_vm0 = vcmask 1044480  }
  0x1d   :  { %v4085_v1 = vld [vmem:[%s7367_s0] sm:$0xff]   ;;  %s3894_s17 = sld [smem:[#allocation2 + $0x12]]  ;;  %v5210_v2 = vunpack.c.l.bf16 %v4158_v0  ;;  %v5214_v4 = vunpack.c.h.bf16 %v4158_v0  ;;  %s5120_s20 = smov 127   ;;  %v5247_v18 = vunpack.c.h.bf16 %v4156_v16  ;;  %v5252_v20 = vunpack.c.l.bf16 %v4156_v16  ;;  %v4159_v27 = vld [vmem:[%s7367_s0 + $0x28] sm:$0xff]   ;;  %v4160_v43 = vld [vmem:[%s7367_s0 + $0x30] sm:$0xff]  }
  0x1e   :  { %v5212_v3 = vunpack.c.l.bf16 %v4085_v1  ;;  %v5218_v6 = vunpack.c.h.bf16 %v4085_v1  ;;  %v4161_v7 = vld [vmem:[%s7367_s0 + $0x40] sm:$0xff]   ;;  %s3910_s23 = sld [smem:[#allocation2 + $0x13]]  ;;  %v5278_v30 = vunpack.c.l.bf16 %v4159_v27  ;;  %v5283_v32 = vunpack.c.l.bf16 %v4157_v28  ;;  %s3926_s1 = sld [smem:[#allocation2 + $0x16]]  ;;  %v72_v44 = vld [vmem:[%s7367_s0 + $0x18] sm:$0xf]  ;;  %v4162_v50 = vld [vmem:[%s7367_s0 + $0x48] sm:$0xff]  }
  0x1f   :  { %7507 = vst [vmem:[#allocation8_spill] sm:$0xff] %v5210_v2  ;;  %7509 = vst [vmem:[#allocation10_spill] sm:$0xff] %v5214_v4  ;;  %v5232_v12 = vunpack.c.h.bf16 %v4161_v7  ;;  %v5239_v15 = vunpack.c.l.bf16 %v4161_v7  ;;  %v4164_v21 = vld [vmem:[%s7367_s0 + $0x60] sm:$0xff]   ;;  %v5288_v34 = vunpack.c.h.bf16 %v4159_v27  ;;  %v5293_v36 = vunpack.c.h.bf16 %v4157_v28  ;;  %v73_v49 = vld [vmem:[%s7367_s0 + $0x1c] sm:$0x7]  ;;  %s3893_s27 = sld [smem:[#allocation2 + $0x6]] }
  0x20   :  { %7508 = vst [vmem:[#allocation9_spill] sm:$0xff] %v5212_v3  ;;  %7510 = vst [vmem:[#allocation11_spill] sm:$0xff] %v5218_v6  ;;  %v5260_v23 = vunpack.c.h.bf16 %v4164_v21  ;;  %v5267_v26 = vunpack.c.l.bf16 %v4164_v21  ;;  %v4167_v37 = vld [vmem:[%s7367_s0 + $0x80] sm:$0xff]   ;;  %v5319_v46 = vunpack.c.l.bf16 %v4160_v43  ;;  %v5324_v48 = vunpack.c.l.bf16 %v72_v44  ;;  %v3946_v51 = vld [vmem:[%s7370_s3 + $0x58] sm:$0xff]  ;;  %s3925_s24 = sld [smem:[#allocation2 + $0xa]]  ;;  %s3874_s14 = sld [smem:[#allocation2 + $0xd]] }
  0x21   :  { %7511 = vst [vmem:[#allocation12_spill] sm:$0xff] %v5232_v12  ;;  %7512 = vst [vmem:[#allocation13_spill] sm:$0xff] %v5239_v15  ;;  %v5301_v39 = vunpack.c.h.bf16 %v4167_v37  ;;  %v5308_v42 = vunpack.c.l.bf16 %v4167_v37  ;;  %v3947_v52 = vld [vmem:[%s7370_s3 + $0x60] sm:$0xff]  ;;  %v5341_v54 = vunpack.c.l.bf16 %v73_v49  ;;  %v3948_v55 = vld [vmem:[%s7370_s3 + $0x68] sm:$0xff]  ;;  %v5352_v58 = vunpack.c.l.bf16 %v4162_v50  ;;  %s3941_s15 = sld [smem:[#allocation2 + $0xb]]  ;;  %s3922_s18 = sld [smem:[#allocation2 + $0x14]] }
  0x22   :  { %v5216_v5 = vstv %s3878_s13  ;;  %v5225_v9 = vstv %s3862_s16  ;;  %7513 = vst [vmem:[#allocation14_spill] sm:$0xff] %v5247_v18  ;;  %7514 = vst [vmem:[#allocation15_spill] sm:$0xff] %v5252_v20  ;;  %v3949_v56 = vld [vmem:[%s7370_s3 + $0x70] sm:$0xff]  ;;  %v4749_v59 = vpack.c.bf16 %v3947_v52, %v3946_v51  ;;  %v3950_v60 = vld [vmem:[%s7370_s3 + $0x78] sm:$0xff]  ;;  %v5363_v0 = vunpack.c.h.bf16 %v4162_v50  ;;  %s3909_s16 = sld [smem:[#allocation2 + $0x7]]  ;;  %s3938_s19 = sld [smem:[#allocation2 + $0x15]] }
  0x23   :  { %v495_v8 = vmul.f32 %v5210_v2, %v5216_v5  ;;  %v206_v10 = vmul.f32 %v5212_v3, %v5225_v9  ;;  %v496_v11 = vmul.f32 %v5214_v4, %v5216_v5  ;;  %v207_v13 = vmul.f32 %v5218_v6, %v5225_v9  ;;  %7515 = vst [vmem:[#allocation16_spill] sm:$0xff] %v5260_v23  ;;  %v3951_v61 = vld [vmem:[%s7370_s3 + $0x80] sm:$0xff]  ;;  %v3954_v27 = vld [vmem:[%s7370_s3 + $0x98] sm:$0xff]  ;;  %v3956_v50 = vld [vmem:[%s7370_s3 + $0xa8] sm:$0x1f]  ;;  %s5728_s21 = sld [smem:[#allocation2 + $0x1b]] }
  0x24   :  { %v5237_v14 = vstv %s3894_s17  ;;  %v209_v22 = vmul.f32 %v5247_v18, %v5225_v9  ;;  %v208_v24 = vmul.f32 %v5252_v20, %v5225_v9  ;;  %v5265_v25 = vstv %s3910_s23  ;;  %7516 = vst [vmem:[#allocation17_spill] sm:$0xff] %v5267_v26  ;;  %7517 = vst [vmem:[#allocation18_spill] sm:$0xff] %v5278_v30  ;;  %4750 = vmatprep.subr.bf16.mxu0 %v4749_v59  ;;  %s3861_s17 = sld [smem:[#allocation2 + $0x2]]  ;;  %v3955_v28 = vld [vmem:[%s7370_s3 + $0xa0] sm:$0xff]  ;;  %v3872_v49 = vld [vmem:[%s7367_s0 + $0x3c] sm:$0x7] }
  0x25   :  { %511 = vrot.lane.b32.xlu1 %v495_v8, %s5120_s20  ;;  %222 = vrot.lane.b32.xlu0 %v206_v10, %s5120_s20  ;;  %v785_v17 = vmul.f32 %v5232_v12, %v5237_v14  ;;  %v784_v19 = vmul.f32 %v5239_v15, %v5237_v14  ;;  %v1074_v29 = vmul.f32 %v5260_v23, %v5265_v25  ;;  %v5306_v41 = vstv %s3926_s1  ;;  %s3942_s1 = sld [smem:[#allocation2 + $0x17]]  ;;  %v4170_v8 = vld [vmem:[%s7367_s0 + $0xa0] sm:$0xff]   ;;  %s3945_s22 = sld [smem:[#allocation4 + $0x1]] }
  0x26   :  { %v1073_v31 = vmul.f32 %v5267_v26, %v5265_v25  ;;  %7518 = vst [vmem:[#allocation19_spill] sm:$0xff] %v5283_v32  ;;  %v497_v33 = vmul.f32 %v5278_v30, %v5216_v5  ;;  %7519 = vst [vmem:[#allocation20_spill] sm:$0xff] %v5288_v34  ;;  %v210_v35 = vmul.f32 %v5283_v32, %v5225_v9  ;;  %4752 = vmatpush3.bf16.msra.mxu0 %v4749_v59  ;;  %s5782_s23 = sld [smem:[#allocation2 + $0x1e]]  ;;  %vm1858_vm1 = vcmask 695296   ;;  %s3873_s29 = sld [smem:[#allocation2 + $0x1]] }
  0x27   :  { %7520 = vst [vmem:[#allocation21_spill] sm:$0xff] %v5293_v36  ;;  %v498_v38 = vmul.f32 %v5288_v34, %v5216_v5  ;;  %7521 = vst [vmem:[#allocation22_spill] sm:$0xff] %v5301_v39  ;;  %v211_v40 = vmul.f32 %v5293_v36, %v5225_v9  ;;  %v1363_v45 = vmul.f32 %v5301_v39, %v5306_v41  ;;  %v5368_v7 = vunpack.c.h.bf16 %v4160_v43  ;;  %s6053_s2 = sld [smem:[#allocation2 + $0x26]]  ;;  %s6058_s30 = sld [smem:[#allocation2 + $0x23]] }
  0x28   :  { %7522 = vst [vmem:[#allocation23_spill] sm:$0xff] %v5308_v42  ;;  %7523 = vst [vmem:[#allocation24_spill] sm:$0xff] %v5319_v46  ;;  %v1362_v47 = vmul.f32 %v5308_v42, %v5306_v41  ;;  %v499_v53 = vmul.f32 %v5319_v46, %v5216_v5  ;;  %v212_v57 = vmul.f32 %v5225_v9, %v5324_v48  ;;  %v5382_v16 = vunpack.c.h.bf16 %v4170_v8  ;;  %s3905_s13 = sld [smem:[#allocation2 + $0x5]]  ;;  %s6460_s25 = sld [smem:[#allocation2 + $0x2f]] }
  0x29   :  { %513 = vrot.lane.b32.xlu1 %v496_v11, %s5120_s20  ;;  %224 = vrot.lane.b32.xlu0 %v207_v13, %s5120_s20  ;;  %7524 = vst [vmem:[#allocation25_spill] sm:$0xff] %v5324_v48  ;;  %7525 = vst [vmem:[#allocation26_spill] sm:$0xff] %v5341_v54  ;;  %v4753_v62 = vpack.c.bf16 %v3949_v56, %v3948_v55  ;;  %v213_v63 = vmul.f32 %v5225_v9, %v5341_v54  ;;  %v3952_v9 = vld [vmem:[%s7370_s3 + $0x88] sm:$0xff]  ;;  %v3953_v11 = vld [vmem:[%s7370_s3 + $0x90] sm:$0xff]  ;;  %v5389_v21 = vunpack.c.l.bf16 %v4170_v8  ;;  %s6465_s26 = sld [smem:[#allocation2 + $0x1c]]  ;;  %s3923_s28 = sld [smem:[#allocation2 + $0x20]] }
  0x2a   :  { %7526 = vst [vmem:[#allocation27_spill] sm:$0xff] %v5352_v58  ;;  %7527 = vst [vmem:[#allocation28_spill] sm:$0xff] %v5363_v0  ;;  %v786_v1 = vmul.f32 %v5352_v58, %v5237_v14  ;;  %v4757_v10 = vpack.c.bf16 %v3951_v61, %v3950_v60  ;;  %v787_v13 = vmul.f32 %v5363_v0, %v5237_v14  ;;  %v5435_v52 = vunpack.c.l.bf16 %v3872_v49  ;;  %v3887_v60 = vld [vmem:[%s7367_s0 + $0x58] sm:$0xf]  ;;  %v4166_v8 = vld [vmem:[%s7367_s0 + $0x70] sm:$0xff]  }
  0x2b   :  { %7528 = vst [vmem:[#allocation29_spill] sm:$0xff] %v5368_v7  ;;  %4754 = vmatprep.subr.bf16.mxu0 %v4753_v62  ;;  %7529 = vst [vmem:[#allocation30_spill] sm:$0xff] %v5382_v16  ;;  %v4765_v37 = vpack.c.bf16 %v3955_v28, %v3954_v27  ;;  %v5458_v61 = vunpack.c.l.bf16 %v3887_v60  ;;  %v5516_v49 = vstv %s3893_s27  ;;  %v3904_v60 = vld [vmem:[%s7367_s0 + $0x7c] sm:$0x7]  ;;  %s3858_s27 = sld [smem:[#allocation2 + $0xc]]  ;;  %vm2497_vm2 = vcmask 195584  }
  0x2c   :  { %4756 = vmatpush3.bf16.msra.mxu0 %v4753_v62  ;;  %7530 = vst [vmem:[#allocation31_spill] sm:$0xff] %v5389_v21  ;;  %7534 = vst [vmem:[#allocation35_spill] sm:$0xff] %v5435_v52  ;;  %v502_v55 = vmul.f32 %v5216_v5, %v5435_v52  ;;  %vm2643_vm3 = vcmask 64512   ;;  %vm2958_vm5 = vcmask 506880   ;;  %vm2980_vm6 = vcmask 504832  }
  0x2d   :  { %802 = vrot.lane.b32.xlu1 %v785_v17, %s5120_s20  ;;  %800 = vrot.lane.b32.xlu0 %v784_v19, %s5120_s20  ;;  %v500_v17 = vmul.f32 %v5368_v7, %v5216_v5  ;;  %v5387_v19 = vstv %s3942_s1  ;;  %7536 = vst [vmem:[#allocation37_spill] sm:$0xff] %v5458_v61  ;;  %s6048_s1 = sld [smem:[#allocation2 + $0x4]]  ;;  %vm7089_vm4 = vmpackc.low %vm2643_vm3, %vm2643_vm3  ;;  %vm3095_vm7 = vcmask 1045504   ;;  %vm5123_vm8 = vmmov 1  }
  0x2e   :  { %4758 = vmatprep.subr.bf16.mxu0 %v4757_v10  ;;  %vm7186_vm9 = vmpackc.low %vm3095_vm7, %vm5123_vm8  ;;  %vm5125_vm10 = vmmov 0   ;;  %vm3850_vm11 = vcmask 4096  }
  0x30   :  { %4760 = vmatpush3.bf16.msra.mxu0 %v4757_v10  ;;  %v790_v10 = vmul.f32 %v5237_v14, %v5458_v61 }
  0x31   :  { %228 = vrot.lane.b32.xlu1 %v209_v22, %s5120_s20  ;;  %226 = vrot.lane.b32.xlu0 %v208_v24, %s5120_s20  ;;  %v3871_v22 = vld [vmem:[%s7367_s0 + $0x38] sm:$0xf]  ;;  %v4761_v24 = vpack.c.bf16 %v3953_v11, %v3952_v9 }
  0x33   :  { %4762 = vmatprep.subr.bf16.mxu0 %v4761_v24 }
  0x34   :  { %4764 = vmatpush3.bf16.msra.mxu0 %v4761_v24 }
  0x35   :  { %1091 = vrot.lane.b32.xlu1 %v1074_v29, %s5120_s20  ;;  %1089 = vrot.lane.b32.xlu0 %v1073_v31, %s5120_s20  ;;  %v1652_v29 = vmul.f32 %v5382_v16, %v5387_v19  ;;  %v5403_v31 = vunpack.c.l.bf16 %v3871_v22 }
  0x36   :  { %4766 = vmatprep.subr.bf16.mxu0 %v4765_v37 }
  0x37   :  { %7531 = vst [vmem:[#allocation32_spill] sm:$0xff] %v5403_v31  ;;  %v501_v43 = vmul.f32 %v5216_v5, %v5403_v31 }
  0x38   :  { %4768 = vmatpush3.bf16.msra.mxu0 %v4765_v37  ;;  %v3903_v37 = vld [vmem:[%s7367_s0 + $0x78] sm:$0xf] }
  0x39   :  { %515 = vrot.lane.b32.xlu1 %v497_v33, %s5120_s20  ;;  %230 = vrot.lane.b32.xlu0 %v210_v35, %s5120_s20  ;;  %v1651_v33 = vmul.f32 %v5389_v21, %v5387_v19  ;;  %v4165_v35 = vld [vmem:[%s7367_s0 + $0x68] sm:$0xff]  }
  0x3a   :  { %v5419_v44 = vunpack.c.l.bf16 %v4165_v35  ;;  %4393 = vmatprep.subr.msk.mxu0 %vm1883_vm0, %v3956_v50  ;;  %v5444_v56 = vunpack.c.h.bf16 %v4165_v35  ;;  %v5500_v35 = vunpack.c.h.bf16 %v4166_v8 }
  0x3c   :  { %7532 = vst [vmem:[#allocation33_spill] sm:$0xff] %v5419_v44  ;;  %v1075_v51 = vmul.f32 %v5419_v44, %v5265_v25  ;;  %7535 = vst [vmem:[#allocation36_spill] sm:$0xff] %v5444_v56  ;;  %4394 = vmatpush3.msk.msra.mxu0 %vm1883_vm0, %v3956_v50  ;;  %v1076_v5 = vmul.f32 %v5444_v56, %v5265_v25  ;;  %v4169_v50 = vld [vmem:[%s7367_s0 + $0x90] sm:$0xff]  }
  0x3d   :  { %517 = vrot.lane.b32.xlu1 %v498_v38, %s5120_s20  ;;  %232 = vrot.lane.b32.xlu0 %v211_v40, %s5120_s20  ;;  %v5411_v38 = vstv %s3861_s17  ;;  %v4163_v40 = vld [vmem:[%s7367_s0 + $0x50] sm:$0xff]   ;;  %s3877_s17 = sld [smem:[#allocation2 + $0x3]] }
  0x3e   :  { %v5450_v59 = vunpack.c.h.bf16 %v4163_v40 }
  0x40   :  { %v789_v62 = vmul.f32 %v5450_v59, %v5237_v14 }
  0x41   :  { %1380 = vrot.lane.b32.xlu1 %v1363_v45, %s5120_s20  ;;  %1378 = vrot.lane.b32.xlu0 %v1362_v47, %s5120_s20  ;;  %v156_v45 = vmul.f32 %v5212_v3, %v5411_v38  ;;  %v5424_v47 = vunpack.c.l.bf16 %v4163_v40 }
  0x43   :  { %7533 = vst [vmem:[#allocation34_spill] sm:$0xff] %v5424_v47 }
  0x45   :  { %519 = vrot.lane.b32.xlu1 %v499_v53, %s5120_s20  ;;  %234 = vrot.lane.b32.xlu0 %v212_v57, %s5120_s20  ;;  %v788_v53 = vmul.f32 %v5424_v47, %v5237_v14  ;;  %v157_v57 = vmul.f32 %v5218_v6, %v5411_v38 }
  0x49   :  { %236 = vrot.lane.b32.xlu1 %v213_v63, %s5120_s20  ;;  %804 = vrot.lane.b32.xlu0 %v786_v1, %s5120_s20  ;;  %v4168_v63 = vld [vmem:[%s7367_s0 + $0x88] sm:$0xff]   ;;  %v5466_v1 = vstv %s3877_s17  ;;  %s3863_s17 = sld [smem:[#allocation2 + $0x1a]] }
  0x4a   :  { %v5474_v9 = vunpack.c.l.bf16 %v4168_v63  ;;  %v445_v11 = vmul.f32 %v5210_v2, %v5466_v1 }
  0x4c   :  { %7537 = vst [vmem:[#allocation38_spill] sm:$0xff] %v5474_v9  ;;  %v1364_v22 = vmul.f32 %v5474_v9, %v5306_v41 }
  0x4d   :  { %806 = vrot.lane.b32.xlu1 %v787_v13, %s5120_s20  ;;  %521 = vrot.lane.b32.xlu0 %v500_v17, %s5120_s20  ;;  %v5479_v13 = vunpack.c.l.bf16 %v4166_v8  ;;  %v3888_v17 = vld [vmem:[%s7367_s0 + $0x5c] sm:$0x7] }
  0x4e   :  { %v5487_v24 = vunpack.c.l.bf16 %v3888_v17  ;;  %v5550_v17 = vunpack.c.h.bf16 %v4169_v50 }
  0x4f   :  { %v1077_v27 = vmul.f32 %v5479_v13, %v5265_v25 }
  0x50   :  { %7538 = vst [vmem:[#allocation39_spill] sm:$0xff] %v5487_v24  ;;  %v791_v28 = vmul.f32 %v5237_v14, %v5487_v24  ;;  %v1078_v14 = vmul.f32 %v5500_v35, %v5265_v25  ;;  %7543 = vst [vmem:[#allocation44_spill] sm:$0xff] %v5550_v17 }
  0x51   :  { %1669 = vrot.lane.b32.xlu1 %v1652_v29, %s5120_s20  ;;  %1667 = vrot.lane.b32.xlu0 %v1651_v33, %s5120_s20  ;;  %v5495_v29 = vunpack.c.h.bf16 %v4168_v63  ;;  %v446_v33 = vmul.f32 %v5214_v4, %v5466_v1 }
  0x53   :  { %v1365_v40 = vmul.f32 %v5495_v29, %v5306_v41 }
  0x55   :  { %523 = vrot.lane.b32.xlu1 %v501_v43, %s5120_s20  ;;  %172 = vrot.lane.b32.xlu0 %v156_v45, %s5120_s20  ;;  %v5508_v43 = vunpack.c.l.bf16 %v3903_v37  ;;  %v4171_v45 = vld [vmem:[%s7367_s0 + $0xa8] sm:$0xff]   ;;  %v158_v37 = vmul.f32 %v5252_v20, %v5411_v38 }
  0x57   :  { %7539 = vst [vmem:[#allocation40_spill] sm:$0xff] %v5508_v43 }
  0x59   :  { %1093 = vrot.lane.b32.xlu1 %v1075_v51, %s5120_s20  ;;  %808 = vrot.lane.b32.xlu0 %v788_v53, %s5120_s20  ;;  %v1079_v51 = vmul.f32 %v5265_v25, %v5508_v43  ;;  %v5524_v53 = vunpack.c.l.bf16 %v4171_v45 }
  0x5b   :  { %7540 = vst [vmem:[#allocation41_spill] sm:$0xff] %v5524_v53 }
  0x5d   :  { %525 = vrot.lane.b32.xlu1 %v502_v55, %s5120_s20  ;;  %174 = vrot.lane.b32.xlu0 %v157_v57, %s5120_s20  ;;  %v734_v55 = vmul.f32 %v5239_v15, %v5516_v49  ;;  %v5529_v57 = vunpack.c.l.bf16 %v4169_v50 }
  0x5f   :  { %v1366_v63 = vmul.f32 %v5529_v57, %v5306_v41 }
  0x61   :  { %1095 = vrot.lane.b32.xlu1 %v1076_v5, %s5120_s20  ;;  %810 = vrot.lane.b32.xlu0 %v789_v62, %s5120_s20  ;;  %v1653_v5 = vmul.f32 %v5524_v53, %v5387_v19  ;;  %v5537_v62 = vunpack.c.l.bf16 %v3904_v60 }
  0x63   :  { %7541 = vst [vmem:[#allocation42_spill] sm:$0xff] %v5537_v62  ;;  %v1080_v8 = vmul.f32 %v5265_v25, %v5537_v62  ;;  %v1367_v25 = vmul.f32 %v5550_v17, %v5306_v41 }
  0x65   :  { %812 = vrot.lane.b32.xlu1 %v790_v10, %s5120_s20  ;;  %461 = vrot.lane.b32.xlu0 %v445_v11, %s5120_s20  ;;  %v5545_v10 = vunpack.c.h.bf16 %v4171_v45  ;;  %v735_v11 = vmul.f32 %v5232_v12, %v5516_v49 }
  0x67   :  { %7542 = vst [vmem:[#allocation43_spill] sm:$0xff] %v5545_v10 }
  0x69   :  { %1382 = vrot.lane.b32.xlu1 %v1364_v22, %s5120_s20  ;;  %1097 = vrot.lane.b32.xlu0 %v1077_v27, %s5120_s20  ;;  %v1654_v22 = vmul.f32 %v5545_v10, %v5387_v19  ;;  %v3919_v27 = vld [vmem:[%s7367_s0 + $0x98] sm:$0xf] }
  0x6d   :  { %814 = vrot.lane.b32.xlu1 %v791_v28, %s5120_s20  ;;  %463 = vrot.lane.b32.xlu0 %v446_v33, %s5120_s20  ;;  %v159_v28 = vmul.f32 %v5247_v18, %v5411_v38  ;;  %v5564_v33 = vunpack.c.l.bf16 %v3919_v27  ;;  %v160_v27 = vmul.f32 %v5283_v32, %v5411_v38 }
  0x6f   :  { %7544 = vst [vmem:[#allocation45_spill] sm:$0xff] %v5564_v33  ;;  %v1368_v45 = vmul.f32 %v5306_v41, %v5564_v33 }
  0x71   :  { %1384 = vrot.lane.b32.xlu1 %v1365_v40, %s5120_s20  ;;  %1099 = vrot.lane.b32.xlu0 %v1078_v14, %s5120_s20  ;;  %v5569_v40 = vstv %s3909_s16  ;;  %v4172_v14 = vld [vmem:[%s7367_s0 + $0xb0] sm:$0xff]   ;;  %s3906_s16 = sld [smem:[#allocation2 + $0x11]] }
  0x72   :  { %v1023_v50 = vmul.f32 %v5267_v26, %v5569_v40  ;;  %v1024_v60 = vmul.f32 %v5260_v23, %v5569_v40 }
  0x75   :  { %1101 = vrot.lane.b32.xlu1 %v1079_v51, %s5120_s20  ;;  %750 = vrot.lane.b32.xlu0 %v734_v55, %s5120_s20  ;;  %v5580_v51 = vunpack.c.l.bf16 %v4172_v14  ;;  %v3920_v55 = vld [vmem:[%s7367_s0 + $0x9c] sm:$0x7] }
  0x77   :  { %7545 = vst [vmem:[#allocation46_spill] sm:$0xff] %v5580_v51 }
  0x79   :  { %1671 = vrot.lane.b32.xlu1 %v1653_v5, %s5120_s20  ;;  %1386 = vrot.lane.b32.xlu0 %v1366_v63, %s5120_s20  ;;  %v5588_v5 = vunpack.c.h.bf16 %v4172_v14  ;;  %v1655_v63 = vmul.f32 %v5580_v51, %v5387_v19 }
  0x7b   :  { %7546 = vst [vmem:[#allocation47_spill] sm:$0xff] %v5588_v5 }
  0x7d   :  { %1103 = vrot.lane.b32.xlu1 %v1080_v8, %s5120_s20  ;;  %752 = vrot.lane.b32.xlu0 %v735_v11, %s5120_s20  ;;  %v5593_v8 = vunpack.c.l.bf16 %v3920_v55  ;;  %v1656_v11 = vmul.f32 %v5588_v5, %v5387_v19  ;;  %v161_v55 = vmul.f32 %v5293_v36, %v5411_v38 }
  0x7f   :  { %7547 = vst [vmem:[#allocation48_spill] sm:$0xff] %v5593_v8 }
  0x81   :  { %1673 = vrot.lane.b32.xlu1 %v1654_v22, %s5120_s20  ;;  %1388 = vrot.lane.b32.xlu0 %v1367_v25, %s5120_s20  ;;  %v1369_v22 = vmul.f32 %v5306_v41, %v5593_v8  ;;  %v447_v25 = vmul.f32 %v5278_v30, %v5466_v1  ;;  %v1817_v41 = vld [vmem:[%s7370_s3] sm:$0xff] }
  0x85   :  { %178 = vrot.lane.b32.xlu1 %v159_v28, %s5120_s20  ;;  %176 = vrot.lane.b32.xlu0 %v158_v37, %s5120_s20  ;;  %v3935_v28 = vld [vmem:[%s7367_s0 + $0xb8] sm:$0xf]  ;;  %v1818_v37 = vld [vmem:[%s7370_s3 + $0x8] sm:$0xff] }
  0x86   :  { %v5616_v14 = vpack.c.bf16 %v1818_v37, %v1817_v41  ;;  %v5640_v41 = vstv %s3858_s27  ;;  %s6504_s27 = sld [smem:[#allocation2 + $0x1d]] }
  0x87   :  { %v103_v5 = vmul.f32 %v5218_v6, %v5640_v41 }
  0x88   :  { %4770 = vmatprep.subr.bf16.mxu0 %v5616_v14 }
  0x89   :  { %1390 = vrot.lane.b32.xlu1 %v1368_v45, %s5120_s20  ;;  %1039 = vrot.lane.b32.xlu0 %v1023_v50, %s5120_s20  ;;  %v448_v45 = vmul.f32 %v5288_v34, %v5466_v1  ;;  %v5621_v50 = vunpack.c.l.bf16 %v3935_v28 }
  0x8b   :  { %7548 = vst [vmem:[#allocation49_spill] sm:$0xff] %v5621_v50 }
  0x8d   :  { %1041 = vrot.lane.b32.xlu1 %v1024_v60, %s5120_s20  ;;  %1675 = vrot.lane.b32.xlu0 %v1655_v63, %s5120_s20  ;;  %v3936_v60 = vld [vmem:[%s7367_s0 + $0xbc] sm:$0x7]  ;;  %s3890_s0 = sld [smem:[#allocation2 + $0x10]] }
  0x91   :  { %1677 = vrot.lane.b32.xlu1 %v1656_v11, %s5120_s20  ;;  %1392 = vrot.lane.b32.xlu0 %v1369_v22, %s5120_s20  ;;  %v5630_v11 = vstv %s3925_s24  ;;  %s5998_s24 = sld [smem:[#allocation2]] }
  0x92   :  { %v1312_v28 = vmul.f32 %v5308_v42, %v5630_v11 }
  0x95   :  { %465 = vrot.lane.b32.xlu1 %v447_v25, %s5120_s20  ;;  %180 = vrot.lane.b32.xlu0 %v160_v27, %s5120_s20  ;;  %v1657_v25 = vmul.f32 %v5387_v19, %v5621_v50  ;;  %v5635_v27 = vunpack.c.l.bf16 %v3936_v60  ;;  %v5650_v60 = vstv %s3874_s14  ;;  %v102_v50 = vmul.f32 %v5212_v3, %v5640_v41  ;;  %s3921_s14 = sld [smem:[#allocation2 + $0x8]] }
  0x96   :  { %v392_v33 = vmul.f32 %v5214_v4, %v5650_v60 }
  0x97   :  { %v512_v63 = vpop.permute.xlu1 %511  ;;  %v223_v22 = vpop.permute.xlu0 %222  ;;  %7549 = vst [vmem:[#allocation50_spill] sm:$0xff] %v5635_v27 }
  0x98   :  { %v246_v36 = vadd.f32 %v223_v22, %v102_v50 }
  0x99   :  { %467 = vrot.lane.b32.xlu1 %v448_v45, %s5120_s20  ;;  %182 = vrot.lane.b32.xlu0 %v161_v55, %s5120_s20  ;;  %v1658_v45 = vmul.f32 %v5387_v19, %v5635_v27  ;;  %v1313_v55 = vmul.f32 %v5301_v39, %v5630_v11  ;;  %v449_v19 = vmul.f32 %v5319_v46, %v5466_v1  ;;  %v5674_v46 = vstv %s3890_s0  ;;  %s3937_s0 = sld [smem:[#allocation2 + $0x9]] }
  0x9a   :  { %v391_v27 = vmul.f32 %v5210_v2, %v5650_v60 }
  0x9b   :  { %v514_v37 = vpop.permute.xlu1 %513  ;;  %v225_v8 = vpop.permute.xlu0 %224 }
  0x9c   :  { %v247_v10 = vadd.f32 %v225_v8, %v103_v5  ;;  %v163_v8 = vmul.f32 %v5411_v38, %v5341_v54 }
  0x9d   :  { %1679 = vrot.lane.b32.xlu1 %v1657_v25, %s5120_s20  ;;  %1328 = vrot.lane.b32.xlu0 %v1312_v28, %s5120_s20  ;;  %v162_v28 = vmul.f32 %v5411_v38, %v5324_v48  ;;  %v737_v38 = vmul.f32 %v5363_v0, %v5516_v49  ;;  %v5698_v0 = vstv %s3906_s16  ;;  %s1799_s16 = sld [smem:[#allocation4]] }
  0x9e   :  { %v400_v62 = vadd.f32 %v392_v33, %v247_v10  ;;  %v681_v10 = vmul.f32 %v5232_v12, %v5674_v46 }
  0x9f   :  { %v803_v51 = vpop.permute.xlu1 %802  ;;  %v801_v25 = vpop.permute.xlu0 %800 }
  0xa0   :  { %v536_v33 = vadd.f32 %v514_v37, %v400_v62 }
  0xa1   :  { %1681 = vrot.lane.b32.xlu1 %v1658_v45, %s5120_s20  ;;  %1330 = vrot.lane.b32.xlu0 %v1313_v55, %s5120_s20  ;;  %v736_v45 = vmul.f32 %v5352_v58, %v5516_v49  ;;  %v399_v55 = vadd.f32 %v391_v27, %v246_v36  ;;  %v450_v36 = vmul.f32 %v5368_v7, %v5466_v1  ;;  %v5684_v27 = vstv %s3941_s15  ;;  %s3880_s15 = sld [smem:[#allocation2 + $0x27]] }
  0xa2   :  { %v689_v62 = vadd.f32 %v681_v10, %v536_v33  ;;  %v970_v33 = vmul.f32 %v5260_v23, %v5698_v0 }
  0xa3   :  { %v5664_v32 = vpop.permute.xlu1 %228  ;;  %v5666_v5 = vpop.permute.xlu0 %226 }
  0xa4   :  { %v825_v10 = vadd.f32 %v803_v51, %v689_v62 }
  0xa5   :  { %469 = vrot.lane.b32.xlu1 %v449_v19, %s5120_s20  ;;  %184 = vrot.lane.b32.xlu0 %v162_v28, %s5120_s20  ;;  %v680_v19 = vmul.f32 %v5239_v15, %v5674_v46  ;;  %v535_v28 = vadd.f32 %v512_v63, %v399_v55  ;;  %v5702_v55 = vstv %s3863_s17  ;;  %s3896_s17 = sld [smem:[#allocation2 + $0x2a]] }
  0xa6   :  { %v978_v62 = vadd.f32 %v970_v33, %v825_v10  ;;  %v397_v10 = vmul.f32 %v5650_v60, %v5403_v31 }
  0xa7   :  { %v1092_v50 = vpop.permute.xlu1 %1091  ;;  %v1090_v22 = vpop.permute.xlu0 %1089  ;;  %v688_v7 = vadd.f32 %v680_v19, %v535_v28  ;;  %v256_v19 = vmul.f32 %v5212_v3, %v5702_v55 }
  0xa8   :  { %v1114_v33 = vadd.f32 %v1092_v50, %v978_v62  ;;  %v257_v50 = vmul.f32 %v5218_v6, %v5702_v55  ;;  %v398_v62 = vmul.f32 %v5650_v60, %v5435_v52 }
  0xa9   :  { %186 = vrot.lane.b32.xlu1 %v163_v8, %s5120_s20  ;;  %754 = vrot.lane.b32.xlu0 %v736_v45, %s5120_s20  ;;  %v1602_v8 = vmul.f32 %v5382_v16, %v5684_v27  ;;  %v1601_v45 = vmul.f32 %v5389_v21, %v5684_v27  ;;  %v824_v28 = vadd.f32 %v801_v25, %v688_v7 }
  0xaa   :  { %v738_v7 = vmul.f32 %v5424_v47, %v5516_v49 }
  0xab   :  { %v5688_v17 = vpop.permute.xlu1 %515  ;;  %v5690_v37 = vpop.permute.xlu0 %230 }
  0xac   :  { %7550 = vst [vmem:[#allocation51_spill] sm:$0xff] %v5690_v37  ;;  %v969_v37 = vmul.f32 %v5267_v26, %v5698_v0 }
  0xad   :  { %756 = vrot.lane.b32.xlu1 %v737_v38, %s5120_s20  ;;  %471 = vrot.lane.b32.xlu0 %v450_v36, %s5120_s20  ;;  %v451_v36 = vmul.f32 %v5466_v1, %v5403_v31 }
  0xae   :  { %v977_v25 = vadd.f32 %v969_v37, %v824_v28  ;;  %v452_v28 = vmul.f32 %v5466_v1, %v5435_v52  ;;  %v1026_v1 = vmul.f32 %v5444_v56, %v5569_v40  ;;  %v739_v52 = vmul.f32 %v5450_v59, %v5516_v49 }
  0xaf   :  { %v5700_v63 = vpop.permute.xlu1 %517  ;;  %v5706_v38 = vpop.permute.xlu0 %232 }
  0xb0   :  { %7551 = vst [vmem:[#allocation52_spill] sm:$0xff] %v5700_v63  ;;  %7552 = vst [vmem:[#allocation53_spill] sm:$0xff] %v5706_v38  ;;  %v5716_v63 = vstv %s3922_s18  ;;  %v109_v38 = vmul.f32 %v5640_v41, %v5341_v54  ;;  %v5746_v54 = vstv %s3938_s19  ;;  %s3911_s19 = sld [smem:[#allocation2 + $0x1f]] }
  0xb1   :  { %1619 = vrot.lane.b32.xlu1 %v1602_v8, %s5120_s20  ;;  %1617 = vrot.lane.b32.xlu0 %v1601_v45, %s5120_s20  ;;  %v108_v8 = vmul.f32 %v5640_v41, %v5324_v48  ;;  %v1025_v45 = vmul.f32 %v5419_v44, %v5569_v40  ;;  %v1258_v47 = vmul.f32 %v5308_v42, %v5716_v63 }
  0xb2   :  { %v1548_v6 = vmul.f32 %v5382_v16, %v5746_v54 }
  0xb3   :  { %v1381_v51 = vpop.permute.xlu1 %1380  ;;  %v1379_v23 = vpop.permute.xlu0 %1378 }
  0xb5   :  { %473 = vrot.lane.b32.xlu1 %v451_v36, %s5120_s20  ;;  %272 = vrot.lane.b32.xlu0 %v256_v19, %s5120_s20  ;;  %v1259_v36 = vmul.f32 %v5301_v39, %v5716_v63  ;;  %v1113_v19 = vadd.f32 %v1090_v22, %v977_v25 }
  0xb7   :  { %v5726_v3 = vpop.permute.xlu1 %519  ;;  %v235_v48 = vpop.permute.xlu0 %234  ;;  %v1266_v25 = vadd.f32 %v1258_v47, %v1113_v19  ;;  %v1547_v47 = vmul.f32 %v5389_v21, %v5746_v54  ;;  %v1825_v21 = vld [vmem:[%s7370_s3 + $0x40] sm:$0xff] }
  0xb8   :  { %v252_v37 = vadd.f32 %v235_v48, %v108_v8  ;;  %v1267_v48 = vadd.f32 %v1259_v36, %v1114_v33 }
  0xb9   :  { %1043 = vrot.lane.b32.xlu1 %v1025_v45, %s5120_s20  ;;  %758 = vrot.lane.b32.xlu0 %v738_v7, %s5120_s20  ;;  %v1402_v33 = vadd.f32 %v1379_v23, %v1266_v25  ;;  %v1314_v25 = vmul.f32 %v5474_v9, %v5630_v11 }
  0xba   :  { %v405_v22 = vadd.f32 %v397_v10, %v252_v37  ;;  %v1403_v7 = vadd.f32 %v1381_v51, %v1267_v48  ;;  %v740_v51 = vmul.f32 %v5516_v49, %v5458_v61  ;;  %v5773_v37 = vstv %s3945_s22 }
  0xbb   :  { %v237_v31 = vpop.permute.xlu1 %236  ;;  %v5748_v45 = vpop.permute.xlu0 %804 }
  0xbc   :  { %v253_v8 = vadd.f32 %v237_v31, %v109_v38  ;;  %v5763_v38 = vstv %s5728_s21  ;;  %v1556_v19 = vadd.f32 %v1548_v6, %v1403_v7  ;;  %v1027_v6 = vmul.f32 %v5479_v13, %v5569_v40 }
  0xbd   :  { %475 = vrot.lane.b32.xlu1 %v452_v28, %s5120_s20  ;;  %274 = vrot.lane.b32.xlu0 %v257_v50, %s5120_s20  ;;  %v545_v23 = vmul.f32 %v5210_v2, %v5763_v38  ;;  %v1555_v50 = vadd.f32 %v1547_v47, %v1402_v33  ;;  %v1819_v47 = vld [vmem:[%s7370_s3 + $0x10] sm:$0xff] }
  0xbe   :  { %v406_v10 = vadd.f32 %v398_v62, %v253_v8 }
  0xbf   :  { %v5758_v31 = vpop.permute.xlu1 %806  ;;  %v5765_v36 = vpop.permute.xlu0 %521 }
  0xc1   :  { %1045 = vrot.lane.b32.xlu1 %v1026_v1, %s5120_s20  ;;  %760 = vrot.lane.b32.xlu0 %v739_v52, %s5120_s20  ;;  %v686_v52 = vmul.f32 %v5674_v46, %v5458_v61  ;;  %v1823_v61 = vld [vmem:[%s7370_s3 + $0x30] sm:$0xff] }
  0xc3   :  { %v1670_v28 = vpop.permute.xlu1 %1669  ;;  %v1668_v48 = vpop.permute.xlu0 %1667 }
  0xc4   :  { %v1692_v62 = vadd.f32 %v1670_v28, %v1556_v19  ;;  %v1691_v8 = vadd.f32 %v1668_v48, %v1555_v50  ;;  %v104_v48 = vmul.f32 %v5252_v20, %v5640_v41 }
  0xc5   :  { %762 = vrot.lane.b32.xlu1 %v740_v51, %s5120_s20  ;;  %561 = vrot.lane.b32.xlu0 %v545_v23, %s5120_s20  ;;  %v1820_v51 = vld [vmem:[%s7370_s3 + $0x18] sm:$0xff] }
  0xc6   :  { %v1831_v1 = vadd.f32 %v5773_v37, %v1692_v62  ;;  %v1830_v33 = vadd.f32 %v5773_v37, %v1691_v8  ;;  %v741_v62 = vmul.f32 %v5516_v49, %v5487_v24  ;;  %v546_v8 = vmul.f32 %v5214_v4, %v5763_v38  ;;  %v1822_v49 = vld [vmem:[%s7370_s3 + $0x28] sm:$0xff] }
  0xc7   :  { %v524_v7 = vpop.permute.xlu1 %523  ;;  %v5793_v28 = vpop.permute.xlu0 %172 }
  0xc8   :  { %v1839_v19 = vmax.f32 %v1831_v1, 0.0  ;;  %v541_v23 = vadd.f32 %v524_v7, %v405_v22  ;;  %7553 = vst [vmem:[#allocation54_spill] sm:$0xff] %v5793_v28  ;;  %v1838_v50 = vmax.f32 %v1830_v33, 0.0  ;;  %v4773_v22 = vpack.c.bf16 %v1820_v51, %v1819_v47 }
  0xc9   :  { %1332 = vrot.lane.b32.xlu1 %v1314_v25, %s5120_s20  ;;  %1047 = vrot.lane.b32.xlu0 %v1027_v6, %s5120_s20  ;;  %v1821_v25 = vld [vmem:[%s7370_s3 + $0x20] sm:$0xff]  ;;  %v393_v6 = vmul.f32 %v5278_v30, %v5650_v60  ;;  %v1028_v47 = vmul.f32 %v5500_v35, %v5569_v40  ;;  %v248_v51 = vadd.f32 %v5666_v5, %v104_v48 }
  0xca   :  { %v694_v1 = vadd.f32 %v686_v52, %v541_v23  ;;  %4395 = vmatprep.mubr.msk.f32.mxu0 %vm1858_vm1, %v1838_v50  ;;  %v1315_v52 = vmul.f32 %v5495_v29, %v5630_v11  ;;  %v5826_v23 = vstv %s5782_s23  ;;  %v4777_v50 = vpack.c.bf16 %v1822_v49, %v1821_v25  ;;  %s3927_s23 = sld [smem:[#allocation2 + $0x22]] }
  0xcb   :  { %v5804_v7 = vpop.permute.xlu1 %1093  ;;  %v5812_v33 = vpop.permute.xlu0 %808  ;;  %4396 = vmatmul.mubr.msk.f32.vlgmr.msra.gmra.mrb[0].mxu0 %vm1858_vm1, %v1839_v19  ;;  %v687_v19 = vmul.f32 %v5674_v46, %v5487_v24  ;;  %v105_v48 = vmul.f32 %v5247_v18, %v5640_v41  ;;  %v834_v25 = vmul.f32 %v5239_v15, %v5826_v23  ;;  %v401_v49 = vadd.f32 %v393_v6, %v248_v51 }
  0xcc   :  { %4772 = vmatpush3.bf16.msra.mxu0 %v5616_v14  ;;  %v1824_v14 = vld [vmem:[%s7370_s3 + $0x38] sm:$0xff]  ;;  %v971_v28 = vmul.f32 %v5419_v44, %v5698_v0 }
  0xcd   :  { %764 = vrot.lane.b32.xlu1 %v741_v62, %s5120_s20  ;;  %563 = vrot.lane.b32.xlu0 %v546_v8, %s5120_s20  ;;  %v1029_v8 = vmul.f32 %v5569_v40, %v5508_v43  ;;  %v537_v2 = vadd.f32 %v5688_v17, %v401_v49  ;;  %v249_v51 = vadd.f32 %v5664_v32, %v105_v48 }
  0xce   :  { %4774 = vmatprep.subr.bf16.mxu0 %v4773_v22  ;;  %v975_v17 = vmul.f32 %v5698_v0, %v5508_v43  ;;  %v835_v32 = vmul.f32 %v5232_v12, %v5826_v23 }
  0xcf   :  { %v526_v62 = vpop.permute.xlu1 %525  ;;  %v5836_v5 = vpop.permute.xlu0 %174 }
  0xd0   :  { %v542_v16 = vadd.f32 %v526_v62, %v406_v10  ;;  %4776 = vmatpush3.bf16.msra.mxu0 %v4773_v22  ;;  %v4781_v10 = vpack.c.bf16 %v1824_v14, %v1823_v61  ;;  %v682_v22 = vmul.f32 %v5352_v58, %v5674_v46  ;;  %v1603_v61 = vmul.f32 %v5524_v53, %v5684_v27 }
  0xd1   :  { %1334 = vrot.lane.b32.xlu1 %v1315_v52, %s5120_s20  ;;  %1049 = vrot.lane.b32.xlu0 %v1028_v47, %s5120_s20  ;;  %v1826_v52 = vld [vmem:[%s7370_s3 + $0x48] sm:$0xff]  ;;  %v1316_v47 = vmul.f32 %v5529_v57, %v5630_v11 }
  0xd2   :  { %v695_v24 = vadd.f32 %v687_v19, %v542_v16  ;;  %4778 = vmatprep.subr.bf16.mxu0 %v4777_v50  ;;  %v394_v16 = vmul.f32 %v5288_v34, %v5650_v60  ;;  %v4785_v19 = vpack.c.bf16 %v1826_v52, %v1825_v21  ;;  %v690_v49 = vadd.f32 %v682_v22, %v537_v2  ;;  %v7555_v52 = vld [vmem:[#allocation52_spill] sm:$0xff] }
  0xd3   :  { %v5846_v62 = vpop.permute.xlu1 %1095  ;;  %v5857_v6 = vpop.permute.xlu0 %810 }
  0xd4   :  { %4780 = vmatpush3.bf16.msra.mxu0 %v4777_v50  ;;  %v258_v50 = vmul.f32 %v5252_v20, %v5702_v55  ;;  %v402_v48 = vadd.f32 %v394_v16, %v249_v51  ;;  %v826_v21 = vadd.f32 %v5748_v45, %v690_v49  ;;  %v7557_v45 = vld [vmem:[#allocation44_spill] sm:$0xff]  ;;  %v7558_v16 = vld [vmem:[#allocation42_spill] sm:$0xff]  ;;  %v259_v20 = vmul.f32 %v5247_v18, %v5702_v55 }
  0xd5   :  { %1051 = vrot.lane.b32.xlu1 %v1029_v8, %s5120_s20  ;;  %850 = vrot.lane.b32.xlu0 %v834_v25, %s5120_s20  ;;  %v1827_v25 = vld [vmem:[%s7370_s3 + $0x50] sm:$0x1f]  ;;  %v976_v51 = vmul.f32 %v5698_v0, %v7558_v16 }
  0xd6   :  { %4782 = vmatprep.subr.bf16.mxu0 %v4781_v10  ;;  %v538_v22 = vadd.f32 %v7555_v52, %v402_v48 }
  0xd7   :  { %v813_v14 = vpop.permute.xlu1 %812  ;;  %v5870_v8 = vpop.permute.xlu0 %461 }
  0xd8   :  { %v830_v15 = vadd.f32 %v813_v14, %v694_v1  ;;  %7554 = vst [vmem:[#allocation55_spill] sm:$0xff] %v5870_v8  ;;  %4784 = vmatpush3.bf16.msra.mxu0 %v4781_v10  ;;  %v1317_v10 = vmul.f32 %v7557_v45, %v5630_v11 }
  0xd9   :  { %1621 = vrot.lane.b32.xlu1 %v1603_v61, %s5120_s20  ;;  %1336 = vrot.lane.b32.xlu0 %v1316_v47, %s5120_s20  ;;  %v7556_v61 = vld [vmem:[#allocation28_spill] sm:$0xff]  ;;  %v1030_v47 = vmul.f32 %v5569_v40, %v7558_v16  ;;  %v7561_v40 = vld [vmem:[#allocation21_spill] sm:$0xff]  ;;  %v972_v16 = vmul.f32 %v5444_v56, %v5698_v0 }
  0xda   :  { %v983_v2 = vadd.f32 %v975_v17, %v830_v15  ;;  %4786 = vmatprep.subr.bf16.mxu0 %v4785_v19  ;;  %v683_v14 = vmul.f32 %v7556_v61, %v5674_v46  ;;  %v979_v15 = vadd.f32 %v971_v28, %v826_v21  ;;  %v7559_v17 = vld [vmem:[#allocation19_spill] sm:$0xff]  ;;  %v1260_v28 = vmul.f32 %v5474_v9, %v5716_v63  ;;  %v7564_v9 = vld [vmem:[#allocation24_spill] sm:$0xff] }
  0xdb   :  { %v1383_v1 = vpop.permute.xlu1 %1382  ;;  %v5887_v43 = vpop.permute.xlu0 %1097  ;;  %v106_v49 = vmul.f32 %v7559_v17, %v5640_v41  ;;  %v107_v21 = vmul.f32 %v7561_v40, %v5640_v41 }
  0xdc   :  { %4788 = vmatpush3.bf16.msra.mxu0 %v4785_v19  ;;  %v1115_v52 = vadd.f32 %v5804_v7, %v979_v15  ;;  %v7563_v15 = vld [vmem:[#allocation51_spill] sm:$0xff] }
  0xdd   :  { %852 = vrot.lane.b32.xlu1 %v835_v32, %s5120_s20  ;;  %276 = vrot.lane.b32.xlu0 %v258_v50, %s5120_s20  ;;  %v691_v32 = vadd.f32 %v683_v14, %v538_v22  ;;  %v5917_v14 = vstv %s3911_s19 }
  0xde   :  { %4427 = vmatprep.subr.msk.mxu0 %vm1883_vm0, %v1827_v25  ;;  %v1268_v44 = vadd.f32 %v1260_v28, %v1115_v52 }
  0xdf   :  { %v815_v48 = vpop.permute.xlu1 %814  ;;  %v5903_v50 = vpop.permute.xlu0 %463  ;;  %v827_v7 = vadd.f32 %v5758_v31, %v691_v32 }
  0xe0   :  { %v831_v19 = vadd.f32 %v815_v48, %v695_v24  ;;  %7560 = vst [vmem:[#allocation52_spill] sm:$0xff] %v5903_v50  ;;  %4428 = vmatpush3.msk.msra.mxu0 %vm1883_vm0, %v1827_v25  ;;  %v7562_v24 = vld [vmem:[#allocation43_spill] sm:$0xff]  ;;  %v250_v48 = vadd.f32 %v7563_v15, %v106_v49  ;;  %v7565_v25 = vld [vmem:[#allocation29_spill] sm:$0xff]  ;;  %v1549_v49 = vmul.f32 %v5524_v53, %v5746_v54 }
  0xe1   :  { %1338 = vrot.lane.b32.xlu1 %v1317_v10, %s5120_s20  ;;  %1053 = vrot.lane.b32.xlu0 %v1030_v47, %s5120_s20  ;;  %v1604_v22 = vmul.f32 %v7562_v24, %v5684_v27  ;;  %v395_v10 = vmul.f32 %v7564_v9, %v5650_v60  ;;  %v396_v31 = vmul.f32 %v7565_v25, %v5650_v60  ;;  %v7566_v47 = vld [vmem:[#allocation45_spill] sm:$0xff] }
  0xe2   :  { %v984_v41 = vadd.f32 %v976_v51, %v831_v19  ;;  %v1318_v32 = vmul.f32 %v5630_v11, %v7566_v47  ;;  %v1123_v51 = vmul.f32 %v5267_v26, %v5917_v14  ;;  %v7567_v19 = vld [vmem:[#allocation53_spill] sm:$0xff]  ;;  %v980_v8 = vadd.f32 %v972_v16, %v827_v7  ;;  %v7568_v16 = vld [vmem:[#allocation34_spill] sm:$0xff] }
  0xe3   :  { %v1385_v56 = vpop.permute.xlu1 %1384  ;;  %v5922_v18 = vpop.permute.xlu0 %1099  ;;  %v251_v15 = vadd.f32 %v7567_v19, %v107_v21  ;;  %v1404_v52 = vadd.f32 %v1383_v1, %v1268_v44  ;;  %v1264_v60 = vmul.f32 %v5716_v63, %v7566_v47  ;;  %v403_v28 = vadd.f32 %v395_v10, %v250_v48 }
  0xe4   :  { %v1116_v12 = vadd.f32 %v5846_v62, %v980_v8  ;;  %v1261_v50 = vmul.f32 %v5495_v29, %v5716_v63  ;;  %v684_v44 = vmul.f32 %v7568_v16, %v5674_v46  ;;  %v260_v1 = vmul.f32 %v7559_v17, %v5702_v55  ;;  %v7569_v8 = vld [vmem:[#allocation46_spill] sm:$0xff] }
  0xe5   :  { %278 = vrot.lane.b32.xlu1 %v259_v20, %s5120_s20  ;;  %1623 = vrot.lane.b32.xlu0 %v1604_v22, %s5120_s20  ;;  %v539_v53 = vadd.f32 %v5726_v3, %v403_v28  ;;  %v404_v21 = vadd.f32 %v396_v31, %v251_v15  ;;  %v1557_v62 = vadd.f32 %v1549_v49, %v1404_v52  ;;  %v7570_v31 = vld [vmem:[#allocation16_spill] sm:$0xff] }
  0xe6   :  { %v1605_v7 = vmul.f32 %v7569_v8, %v5684_v27  ;;  %v685_v48 = vmul.f32 %v5450_v59, %v5674_v46  ;;  %v1269_v10 = vadd.f32 %v1261_v50, %v1116_v12  ;;  %v1550_v49 = vmul.f32 %v7562_v24, %v5746_v54  ;;  %v7571_v12 = vld [vmem:[#allocation48_spill] sm:$0xff] }
  0xe7   :  { %v1102_v20 = vpop.permute.xlu1 %1101  ;;  %v5940_v25 = vpop.permute.xlu0 %750  ;;  %v540_v3 = vadd.f32 %v5765_v36, %v404_v21  ;;  %v692_v28 = vadd.f32 %v684_v44, %v539_v53  ;;  %v547_v46 = vmul.f32 %v5278_v30, %v5763_v38  ;;  %v1265_v36 = vmul.f32 %v5716_v63, %v7571_v12  ;;  %v7572_v21 = vld [vmem:[#allocation47_spill] sm:$0xff] }
  0xe8   :  { %v1119_v26 = vadd.f32 %v1102_v20, %v983_v2  ;;  %v973_v50 = vmul.f32 %v5479_v13, %v5698_v0 }
  0xe9   :  { %1340 = vrot.lane.b32.xlu1 %v1318_v32, %s5120_s20  ;;  %1139 = vrot.lane.b32.xlu0 %v1123_v51, %s5120_s20  ;;  %v1124_v51 = vmul.f32 %v7570_v31, %v5917_v14  ;;  %v828_v53 = vadd.f32 %v5812_v33, %v692_v28  ;;  %v1319_v33 = vmul.f32 %v5630_v11, %v7571_v12 }
  0xea   :  { %v5951_v2 = vadd.f32 %v1264_v60, %v1119_v26  ;;  %v1405_v26 = vadd.f32 %v1385_v56, %v1269_v10  ;;  %v693_v60 = vadd.f32 %v685_v48, %v540_v3  ;;  %v1262_v28 = vmul.f32 %v5529_v57, %v5716_v63 }
  0xeb   :  { %v1672_v22 = vpop.permute.xlu1 %1671  ;;  %v1387_v19 = vpop.permute.xlu0 %1386  ;;  %v981_v3 = vadd.f32 %v973_v50, %v828_v53  ;;  %v548_v11 = vmul.f32 %v5288_v34, %v5763_v38 }
  0xec   :  { %v1693_v32 = vadd.f32 %v1672_v22, %v1557_v62  ;;  %v1606_v62 = vmul.f32 %v7572_v21, %v5684_v27 }
  0xed   :  { %280 = vrot.lane.b32.xlu1 %v260_v1, %s5120_s20  ;;  %1625 = vrot.lane.b32.xlu0 %v1605_v7, %s5120_s20  ;;  %v974_v1 = vmul.f32 %v5500_v35, %v5698_v0  ;;  %v829_v7 = vadd.f32 %v5857_v6, %v693_v60 }
  0xee   :  { %v1832_v15 = vadd.f32 %v5773_v37, %v1693_v32  ;;  %v1117_v32 = vadd.f32 %v5887_v43, %v981_v3 }
  0xef   :  { %v1104_v52 = vpop.permute.xlu1 %1103  ;;  %v5970_v44 = vpop.permute.xlu0 %752  ;;  %v982_v6 = vadd.f32 %v974_v1, %v829_v7 }
  0xf0   :  { %v1840_v20 = vmax.f32 %v1832_v15, 0.0  ;;  %v1120_v56 = vadd.f32 %v1104_v52, %v984_v41  ;;  %v1558_v41 = vadd.f32 %v1550_v49, %v1405_v26  ;;  %v261_v49 = vmul.f32 %v7561_v40, %v5702_v55  ;;  %v7573_v52 = vld [vmem:[#allocation49_spill] sm:$0xff] }
  0xf1   :  { %1141 = vrot.lane.b32.xlu1 %v1124_v51, %s5120_s20  ;;  %565 = vrot.lane.b32.xlu0 %v547_v46, %s5120_s20  ;;  %v5996_v15 = vstv %s3927_s23  ;;  %v1118_v43 = vadd.f32 %v5922_v18, %v982_v6  ;;  %v1270_v50 = vadd.f32 %v1262_v28, %v1117_v32  ;;  %v1607_v60 = vmul.f32 %v5684_v27, %v7573_v52  ;;  %v7574_v32 = vld [vmem:[#allocation25_spill] sm:$0xff]  ;;  %s6423_s23 = sld [smem:[#allocation2 + $0x18]] }
  0xf2   :  { %4398 = vmatprep.mubr.msk.f32.mxu0 %vm1858_vm1, %v1840_v20  ;;  %v5982_v22 = vadd.f32 %v1265_v36, %v1120_v56  ;;  %v1263_v36 = vmul.f32 %v7557_v45, %v5716_v63  ;;  %v1412_v20 = vmul.f32 %v5308_v42, %v5996_v15  ;;  %v1553_v18 = vmul.f32 %v5746_v54, %v7573_v52  ;;  %v3976_v63 = vld [vmem:[%s7370_s3 + $0xb0] sm:$0xff]  ;;  %v3977_v56 = vld [vmem:[%s7370_s3 + $0xb8] sm:$0xff] }
  0xf3   :  { %v1674_v48 = vpop.permute.xlu1 %1673  ;;  %v1389_v10 = vpop.permute.xlu0 %1388  ;;  %v1406_v1 = vadd.f32 %v1387_v19, %v1270_v50  ;;  %v6022_v7 = vpack.c.bf16 %v3977_v56, %v3976_v63  ;;  %v262_v28 = vmul.f32 %v5702_v55, %v7574_v32  ;;  %v6115_v32 = vstv %s3905_s13  ;;  %s3940_s13 = sld [smem:[#allocation2 + $0x2d]] }
  0xf4   :  { %v1694_v0 = vadd.f32 %v1674_v48, %v1558_v41  ;;  %v1271_v41 = vadd.f32 %v1263_v36, %v1118_v43  ;;  %v7575_v36 = vld [vmem:[#allocation11_spill] sm:$0xff] }
  0xf5   :  { %1627 = vrot.lane.b32.xlu1 %v1606_v62, %s5120_s20  ;;  %1342 = vrot.lane.b32.xlu0 %v1319_v33, %s5120_s20  ;;  %v1551_v33 = vmul.f32 %v7569_v8, %v5746_v54 }
  0xf6   :  { %v1833_v51 = vadd.f32 %v5773_v37, %v1694_v0  ;;  %v549_v0 = vmul.f32 %v7564_v9, %v5763_v38  ;;  %4790 = vmatprep.subr.bf16.mxu0 %v6022_v7  ;;  %v1407_v19 = vadd.f32 %v1389_v10, %v1271_v41  ;;  %v1413_v10 = vmul.f32 %v5301_v39, %v5996_v15 }
  0xf7   :  { %v5994_v26 = vpop.permute.xlu1 %178  ;;  %v6003_v53 = vpop.permute.xlu0 %176  ;;  %v6062_v41 = vstv %s3873_s29  ;;  %s3939_s29 = sld [smem:[#allocation2 + $0x21]] }
  0xf8   :  { %v1841_v46 = vmax.f32 %v1833_v51, 0.0  ;;  %v1559_v51 = vadd.f32 %v1551_v33, %v1406_v1 }
  0xf9   :  { %567 = vrot.lane.b32.xlu1 %v548_v11, %s5120_s20  ;;  %282 = vrot.lane.b32.xlu0 %v261_v49, %s5120_s20  ;;  %v1552_v11 = vmul.f32 %v7572_v21, %v5746_v54  ;;  %v6041_v49 = vstv %s5998_s24  ;;  %s6438_s24 = sld [smem:[#allocation2 + $0x19]] }
  0xfa   :  { %4399 = vmatmul.mubr.msk.f32.gmra.mrb[2].mxu0 %vm1858_vm1, %v1841_v46  ;;  %v85_v50 = vmul.f32 %v7575_v36, %v6041_v49 }
  0xfb   :  { %v1391_v62 = vpop.permute.xlu1 %1390  ;;  %v6025_v48 = vpop.permute.xlu0 %1039 }
  0xfc   :  { %v1408_v3 = vadd.f32 %v1391_v62, %v5951_v2  ;;  %v7577_v62 = vld [vmem:[#allocation50_spill] sm:$0xff] }
  0xfd   :  { %1629 = vrot.lane.b32.xlu1 %v1607_v60, %s5120_s20  ;;  %1428 = vrot.lane.b32.xlu0 %v1412_v20, %s5120_s20  ;;  %v1560_v60 = vadd.f32 %v1552_v11, %v1407_v19  ;;  %v836_v20 = vmul.f32 %v5352_v58, %v5826_v23  ;;  %v1554_v33 = vmul.f32 %v5746_v54, %v7577_v62  ;;  %v7578_v11 = vld [vmem:[#allocation26_spill] sm:$0xff] }
  0xfe   :  { %v6036_v6 = vadd.f32 %v1553_v18, %v1408_v3  ;;  %v7576_v18 = vld [vmem:[#allocation9_spill] sm:$0xff] }
  0xff   :  { %v6038_v2 = vpop.permute.xlu1 %1041  ;;  %v1676_v43 = vpop.permute.xlu0 %1675  ;;  %v84_v63 = vmul.f32 %v7576_v18, %v6041_v49 }
 0x100   :  { %v1695_v46 = vadd.f32 %v1676_v43, %v1559_v51  ;;  %v263_v51 = vmul.f32 %v5702_v55, %v7578_v11  ;;  %v197_v43 = vadd.f32 %v5836_v5, %v85_v50 }
 0x101   :  { %569 = vrot.lane.b32.xlu1 %v549_v0, %s5120_s20  ;;  %284 = vrot.lane.b32.xlu0 %v262_v28, %s5120_s20 }
 0x102   :  { %v1834_v56 = vadd.f32 %v5773_v37, %v1695_v46  ;;  %v374_v46 = vmul.f32 %v5214_v4, %v6062_v41 }
 0x103   :  { %v1678_v1 = vpop.permute.xlu1 %1677  ;;  %v1393_v0 = vpop.permute.xlu0 %1392 }
 0x104   :  { %v1696_v3 = vadd.f32 %v1678_v1, %v1560_v60  ;;  %v1842_v19 = vmax.f32 %v1834_v56, 0.0  ;;  %v1409_v28 = vadd.f32 %v1393_v0, %v5982_v22  ;;  %v1608_v60 = vmul.f32 %v5684_v27, %v7577_v62  ;;  %v7579_v56 = vld [vmem:[#allocation54_spill] sm:$0xff]  ;;  %v7581_v0 = vld [vmem:[#allocation29_spill] sm:$0xff] }
 0x105   :  { %1430 = vrot.lane.b32.xlu1 %v1413_v10, %s5120_s20  ;;  %854 = vrot.lane.b32.xlu0 %v836_v20, %s5120_s20  ;;  %v196_v22 = vadd.f32 %v7579_v56, %v84_v63  ;;  %v7580_v10 = vld [vmem:[#allocation8_spill] sm:$0xff]  ;;  %v837_v27 = vmul.f32 %v7556_v61, %v5826_v23  ;;  %v382_v20 = vadd.f32 %v374_v46, %v197_v43  ;;  %v6087_v63 = vstv %s6048_s1  ;;  %s3975_s1 = sld [smem:[#allocation4 + $0x2]] }
 0x106   :  { %v1835_v54 = vadd.f32 %v5773_v37, %v1696_v3  ;;  %v373_v1 = vmul.f32 %v7580_v10, %v6062_v41  ;;  %4401 = vmatprep.mubr.msk.f32.mxu0 %vm1858_vm1, %v1842_v19  ;;  %v1562_v5 = vadd.f32 %v1554_v33, %v1409_v28  ;;  %v550_v19 = vmul.f32 %v7581_v0, %v5763_v38  ;;  %v7583_v43 = vld [vmem:[#allocation12_spill] sm:$0xff] }
 0x107   :  { %v6079_v55 = vpop.permute.xlu1 %465  ;;  %v6081_v3 = vpop.permute.xlu0 %180  ;;  %v6094_v33 = vstv %s6053_s2  ;;  %v6099_v56 = vstv %s6058_s30  ;;  %v663_v46 = vmul.f32 %v7583_v43, %v6087_v63  ;;  %s3908_s2 = sld [smem:[#allocation2 + $0x29]]  ;;  %s3924_s30 = sld [smem:[#allocation2 + $0x2c]] }
 0x108   :  { %v1843_v50 = vmax.f32 %v1835_v54, 0.0  ;;  %v381_v28 = vadd.f32 %v373_v1, %v196_v22  ;;  %v306_v22 = vmul.f32 %v7576_v18, %v6094_v33  ;;  %v7587_v1 = vld [vmem:[#allocation31_spill] sm:$0xff] }
 0x109   :  { %286 = vrot.lane.b32.xlu1 %v263_v51, %s5120_s20  ;;  %1631 = vrot.lane.b32.xlu0 %v1608_v60, %s5120_s20  ;;  %v7582_v51 = vld [vmem:[#allocation52_spill] sm:$0xff]  ;;  %v7585_v60 = vld [vmem:[#allocation55_spill] sm:$0xff] }
 0x10a   :  { %4402 = vmatmul.mubr.msk.f32.gmra.mrb[4].mxu0 %vm1858_vm1, %v1843_v50  ;;  %v486_v62 = vadd.f32 %v7582_v51, %v382_v20  ;;  %v485_v52 = vadd.f32 %v7585_v60, %v381_v28  ;;  %v7586_v50 = vld [vmem:[#allocation13_spill] sm:$0xff]  ;;  %v1701_v20 = vmul.f32 %v7587_v1, %v6099_v56 }
 0x10b   :  { %v6096_v54 = vpop.permute.xlu1 %467  ;;  %v6104_v11 = vpop.permute.xlu0 %182  ;;  %v662_v12 = vmul.f32 %v7586_v50, %v6087_v63 }
 0x10c   :  { %7584 = vst [vmem:[#allocation44_spill] sm:$0xff] %v6104_v11  ;;  %v671_v21 = vadd.f32 %v663_v46, %v486_v62  ;;  %v7588_v62 = vld [vmem:[#allocation32_spill] sm:$0xff] }
 0x10d   :  { %856 = vrot.lane.b32.xlu1 %v837_v27, %s5120_s20  ;;  %571 = vrot.lane.b32.xlu0 %v550_v19, %s5120_s20  ;;  %v670_v47 = vadd.f32 %v662_v12, %v485_v52  ;;  %v838_v27 = vmul.f32 %v7568_v16, %v5826_v23  ;;  %v952_v19 = vmul.f32 %v7570_v31, %v6115_v32  ;;  %v7589_v12 = vld [vmem:[#allocation17_spill] sm:$0xff] }
 0x10e   :  { %v775_v18 = vadd.f32 %v5970_v44, %v671_v21  ;;  %v551_v46 = vmul.f32 %v5763_v38, %v7588_v62  ;;  %v951_v52 = vmul.f32 %v7589_v12, %v6115_v32  ;;  %v7590_v44 = vld [vmem:[#allocation30_spill] sm:$0xff] }
 0x10f   :  { %v1680_v51 = vpop.permute.xlu1 %1679  ;;  %v1329_v60 = vpop.permute.xlu0 %1328  ;;  %v1702_v21 = vmul.f32 %v7590_v44, %v6099_v56 }
 0x110   :  { %v1697_v28 = vadd.f32 %v1680_v51, %v6036_v6  ;;  %v774_v6 = vadd.f32 %v5940_v25, %v670_v47  ;;  %v7591_v25 = vld [vmem:[#allocation33_spill] sm:$0xff] }
 0x111   :  { %322 = vrot.lane.b32.xlu1 %v306_v22, %s5120_s20  ;;  %1717 = vrot.lane.b32.xlu0 %v1701_v20, %s5120_s20  ;;  %v6134_v20 = vstv %s3921_s14  ;;  %v1125_v47 = vmul.f32 %v7591_v25, %v5917_v14  ;;  %s3996_s14 = sld [smem:[#allocation4 + $0x3]] }
 0x112   :  { %v1836_v0 = vadd.f32 %v5773_v37, %v1697_v28  ;;  %v960_v28 = vadd.f32 %v952_v19, %v775_v18  ;;  %v1241_v18 = vmul.f32 %v5301_v39, %v6134_v20 }
 0x113   :  { %v1682_v22 = vpop.permute.xlu1 %1681  ;;  %v1331_v8 = vpop.permute.xlu0 %1330 }
 0x114   :  { %v1844_v51 = vmax.f32 %v1836_v0, 0.0  ;;  %v1698_v11 = vadd.f32 %v1682_v22, %v1562_v5  ;;  %v959_v5 = vadd.f32 %v951_v52, %v774_v6 }
 0x115   :  { %858 = vrot.lane.b32.xlu1 %v838_v27, %s5120_s20  ;;  %573 = vrot.lane.b32.xlu0 %v551_v46, %s5120_s20  ;;  %v1064_v27 = vadd.f32 %v6038_v2, %v960_v28  ;;  %v7592_v46 = vld [vmem:[#allocation35_spill] sm:$0xff]  ;;  %v307_v2 = vmul.f32 %v7575_v36, %v6094_v33 }
 0x116   :  { %v1837_v62 = vadd.f32 %v5773_v37, %v1698_v11  ;;  %4404 = vmatprep.mubr.msk.f32.mxu0 %vm1858_vm1, %v1844_v51  ;;  %v1063_v37 = vadd.f32 %v6025_v48, %v959_v5  ;;  %v1240_v11 = vmul.f32 %v5308_v42, %v6134_v20  ;;  %v552_v6 = vmul.f32 %v5763_v38, %v7592_v46  ;;  %v7594_v38 = vld [vmem:[#allocation36_spill] sm:$0xff] }
 0x117   :  { %v6141_v0 = vpop.permute.xlu1 %469  ;;  %v6146_v19 = vpop.permute.xlu0 %184  ;;  %v1249_v52 = vadd.f32 %v1241_v18, %v1064_v27  ;;  %v6162_v51 = vstv %s3937_s0  ;;  %v839_v5 = vmul.f32 %v5450_v59, %v5826_v23  ;;  %s3912_s0 = sld [smem:[#allocation2 + $0x2b]] }
 0x118   :  { %v1845_v22 = vmax.f32 %v1837_v62, 0.0  ;;  %v1248_v28 = vadd.f32 %v1240_v11, %v1063_v37  ;;  %v1529_v37 = vmul.f32 %v7587_v1, %v6162_v51  ;;  %v6176_v11 = vstv %s3880_s15 }
 0x119   :  { %1719 = vrot.lane.b32.xlu1 %v1702_v21, %s5120_s20  ;;  %1143 = vrot.lane.b32.xlu0 %v1125_v47, %s5120_s20  ;;  %v1126_v21 = vmul.f32 %v7594_v38, %v5917_v14  ;;  %v1353_v47 = vadd.f32 %v1331_v8, %v1249_v52  ;;  %v7595_v8 = vld [vmem:[#allocation37_spill] sm:$0xff] }
 0x11a   :  { %4405 = vmatmul.mubr.msk.f32.gmra.mrb[6].mxu0 %vm1858_vm1, %v1845_v22  ;;  %v1530_v22 = vmul.f32 %v7590_v44, %v6162_v51  ;;  %v1352_v27 = vadd.f32 %v1329_v60, %v1248_v28  ;;  %v595_v60 = vmul.f32 %v7580_v10, %v6176_v11  ;;  %v6186_v28 = vstv %s1799_s16 }
 0x11b   :  { %v6158_v62 = vpop.permute.xlu1 %186  ;;  %v6160_v48 = vpop.permute.xlu0 %754 }
 0x11c   :  { %7593 = vst [vmem:[#allocation43_spill] sm:$0xff] %v6158_v62  ;;  %v1538_v52 = vadd.f32 %v1530_v22, %v1353_v47  ;;  %v1537_v36 = vadd.f32 %v1529_v37, %v1352_v27  ;;  %v1127_v47 = vmul.f32 %v5479_v13, %v5917_v14  ;;  %v7598_v37 = vld [vmem:[#allocation39_spill] sm:$0xff] }
 0x11d   :  { %575 = vrot.lane.b32.xlu1 %v552_v6, %s5120_s20  ;;  %324 = vrot.lane.b32.xlu0 %v307_v2, %s5120_s20  ;;  %v840_v2 = vmul.f32 %v5826_v23, %v7595_v8 }
 0x11f   :  { %v6172_v18 = vpop.permute.xlu1 %756  ;;  %v6178_v6 = vpop.permute.xlu0 %471 }
 0x121   :  { %1145 = vrot.lane.b32.xlu1 %v1126_v21, %s5120_s20  ;;  %860 = vrot.lane.b32.xlu0 %v839_v5, %s5120_s20  ;;  %v7596_v21 = vld [vmem:[#allocation38_spill] sm:$0xff] }
 0x122   :  { %v1414_v62 = vmul.f32 %v7596_v21, %v5996_v15 }
 0x123   :  { %v1620_v44 = vpop.permute.xlu1 %1619  ;;  %v1618_v39 = vpop.permute.xlu0 %1617 }
 0x124   :  { %v1642_v1 = vadd.f32 %v1620_v44, %v1538_v52  ;;  %v1641_v46 = vadd.f32 %v1618_v39, %v1537_v36  ;;  %v3978_v39 = vld [vmem:[%s7370_s3 + $0xc0] sm:$0xff]  ;;  %v3979_v36 = vld [vmem:[%s7370_s3 + $0xc8] sm:$0xff] }
 0x125   :  { %862 = vrot.lane.b32.xlu1 %v840_v2, %s5120_s20  ;;  %611 = vrot.lane.b32.xlu0 %v595_v60, %s5120_s20  ;;  %v841_v2 = vmul.f32 %v5826_v23, %v7598_v37  ;;  %v596_v60 = vmul.f32 %v5214_v4, %v6176_v11  ;;  %v4793_v10 = vpack.c.bf16 %v3979_v36, %v3978_v39  ;;  %v3981_v23 = vld [vmem:[%s7370_s3 + $0xd8] sm:$0xff]  ;;  %v6236_v4 = vstv %s3896_s17  ;;  %s6375_s17 = sld [smem:[#allocation2 + $0x2e]] }
 0x126   :  { %v1802_v42 = vadd.f32 %v6186_v28, %v1642_v1  ;;  %v1801_v5 = vadd.f32 %v6186_v28, %v1641_v46  ;;  %v7599_v46 = vld [vmem:[#allocation15_spill] sm:$0xff]  ;;  %v1415_v39 = vmul.f32 %v5495_v29, %v5996_v15 }
 0x127   :  { %v6196_v22 = vpop.permute.xlu1 %473  ;;  %v6204_v1 = vpop.permute.xlu0 %272  ;;  %v86_v52 = vmul.f32 %v7599_v46, %v6041_v49 }
 0x128   :  { %v1810_v44 = vmax.f32 %v1802_v42, 0.0  ;;  %7597 = vst [vmem:[#allocation51_spill] sm:$0xff] %v6204_v1  ;;  %v1809_v27 = vmax.f32 %v1801_v5, 0.0 }
 0x129   :  { %1432 = vrot.lane.b32.xlu1 %v1414_v62, %s5120_s20  ;;  %1147 = vrot.lane.b32.xlu0 %v1127_v47, %s5120_s20  ;;  %v3980_v62 = vld [vmem:[%s7370_s3 + $0xd0] sm:$0xff]  ;;  %v375_v47 = vmul.f32 %v5278_v30, %v6062_v41  ;;  %v198_v36 = vadd.f32 %v6003_v53, %v86_v52  ;;  %v884_v52 = vmul.f32 %v7586_v50, %v6236_v4 }
 0x12a   :  { %4429 = vmatprep.mubr.msk.f32.mxu0 %vm1858_vm1, %v1809_v27  ;;  %v1128_v27 = vmul.f32 %v5500_v35, %v5917_v14 }
 0x12b   :  { %v6215_v42 = vpop.permute.xlu1 %1043  ;;  %v6223_v5 = vpop.permute.xlu0 %758  ;;  %4430 = vmatmul.mubr.msk.f32.vlgmr.msra.gmra.mrb[0].mxu0 %vm1858_vm1, %v1810_v44  ;;  %v4797_v44 = vpack.c.bf16 %v3981_v23, %v3980_v62  ;;  %v308_v62 = vmul.f32 %v7599_v46, %v6094_v33 }
 0x12c   :  { %4792 = vmatpush3.bf16.msra.mxu0 %v6022_v7  ;;  %v3983_v7 = vld [vmem:[%s7370_s3 + $0xe8] sm:$0xff] }
 0x12d   :  { %864 = vrot.lane.b32.xlu1 %v841_v2, %s5120_s20  ;;  %613 = vrot.lane.b32.xlu0 %v596_v60, %s5120_s20  ;;  %v3982_v2 = vld [vmem:[%s7370_s3 + $0xe0] sm:$0xff]  ;;  %v383_v60 = vadd.f32 %v375_v47, %v198_v36  ;;  %v664_v47 = vmul.f32 %v5352_v58, %v6087_v63 }
 0x12e   :  { %4794 = vmatprep.subr.bf16.mxu0 %v4793_v10  ;;  %v4801_v23 = vpack.c.bf16 %v3983_v7, %v3982_v2  ;;  %v7602_v2 = vld [vmem:[#allocation40_spill] sm:$0xff] }
 0x12f   :  { %v6238_v1 = vpop.permute.xlu1 %475  ;;  %v6246_v53 = vpop.permute.xlu0 %274  ;;  %v1129_v7 = vmul.f32 %v5917_v14, %v7602_v2 }
 0x130   :  { %7600 = vst [vmem:[#allocation53_spill] sm:$0xff] %v6238_v1  ;;  %7601 = vst [vmem:[#allocation54_spill] sm:$0xff] %v6246_v53  ;;  %4796 = vmatpush3.bf16.msra.mxu0 %v4793_v10  ;;  %v3984_v53 = vld [vmem:[%s7370_s3 + $0xf0] sm:$0xff]  ;;  %v487_v10 = vadd.f32 %v6079_v55, %v383_v60 }
 0x131   :  { %1434 = vrot.lane.b32.xlu1 %v1415_v39, %s5120_s20  ;;  %1149 = vrot.lane.b32.xlu0 %v1128_v27, %s5120_s20  ;;  %v3985_v39 = vld [vmem:[%s7370_s3 + $0xf8] sm:$0xff]  ;;  %v1416_v27 = vmul.f32 %v5529_v57, %v5996_v15  ;;  %v7603_v55 = vld [vmem:[#allocation14_spill] sm:$0xff] }
 0x132   :  { %4798 = vmatprep.subr.bf16.mxu0 %v4797_v44  ;;  %v4805_v46 = vpack.c.bf16 %v3985_v39, %v3984_v53  ;;  %v87_v60 = vmul.f32 %v7603_v55, %v6041_v49  ;;  %v672_v1 = vadd.f32 %v664_v47, %v487_v10  ;;  %v7605_v53 = vld [vmem:[#allocation41_spill] sm:$0xff]  ;;  %v376_v47 = vmul.f32 %v5288_v34, %v6062_v41 }
 0x133   :  { %v6254_v37 = vpop.permute.xlu1 %1045  ;;  %v6265_v36 = vpop.permute.xlu0 %760  ;;  %v1703_v39 = vmul.f32 %v7605_v53, %v6099_v56 }
 0x134   :  { %4800 = vmatpush3.bf16.msra.mxu0 %v4797_v44  ;;  %v309_v44 = vmul.f32 %v7603_v55, %v6094_v33  ;;  %v199_v10 = vadd.f32 %v5994_v26, %v87_v60  ;;  %v885_v26 = vmul.f32 %v7583_v43, %v6236_v4  ;;  %v88_v60 = vmul.f32 %v7559_v17, %v6041_v49 }
 0x135   :  { %900 = vrot.lane.b32.xlu1 %v884_v52, %s5120_s20  ;;  %326 = vrot.lane.b32.xlu0 %v308_v62, %s5120_s20  ;;  %v776_v52 = vadd.f32 %v6160_v48, %v672_v1  ;;  %v953_v62 = vmul.f32 %v7591_v25, %v6115_v32  ;;  %v3986_v48 = vld [vmem:[%s7370_s3 + $0x100] sm:$0x1f] }
 0x136   :  { %4802 = vmatprep.subr.bf16.mxu0 %v4801_v23 }
 0x137   :  { %v6275_v50 = vpop.permute.xlu1 %762  ;;  %v6277_v8 = vpop.permute.xlu0 %561  ;;  %v961_v55 = vadd.f32 %v953_v62, %v776_v52  ;;  %v665_v62 = vmul.f32 %v7556_v61, %v6087_v63 }
 0x138   :  { %7604 = vst [vmem:[#allocation52_spill] sm:$0xff] %v6277_v8  ;;  %4804 = vmatpush3.bf16.msra.mxu0 %v4801_v23  ;;  %v7606_v23 = vld [vmem:[#allocation42_spill] sm:$0xff]  ;;  %v384_v8 = vadd.f32 %v376_v47, %v199_v10  ;;  %v200_v10 = vadd.f32 %v6081_v3, %v88_v60  ;;  %v597_v3 = vmul.f32 %v5278_v30, %v6176_v11 }
 0x139   :  { %1436 = vrot.lane.b32.xlu1 %v1416_v27, %s5120_s20  ;;  %1151 = vrot.lane.b32.xlu0 %v1129_v7, %s5120_s20  ;;  %v1130_v7 = vmul.f32 %v5917_v14, %v7606_v23  ;;  %v1242_v14 = vmul.f32 %v7596_v21, %v6134_v20  ;;  %v1531_v60 = vmul.f32 %v7605_v53, %v6162_v51 }
 0x13a   :  { %4806 = vmatprep.subr.bf16.mxu0 %v4805_v46  ;;  %v488_v52 = vadd.f32 %v6096_v54, %v384_v8  ;;  %v377_v54 = vmul.f32 %v7564_v9, %v6062_v41  ;;  %v1243_v23 = vmul.f32 %v5495_v29, %v6134_v20 }
 0x13b   :  { %v1333_v27 = vpop.permute.xlu1 %1332  ;;  %v6294_v1 = vpop.permute.xlu0 %1047 }
 0x13c   :  { %4808 = vmatpush3.bf16.msra.mxu0 %v4805_v46  ;;  %v673_v21 = vadd.f32 %v665_v62, %v488_v52  ;;  %v954_v52 = vmul.f32 %v7594_v38, %v6115_v32 }
 0x13d   :  { %328 = vrot.lane.b32.xlu1 %v309_v44, %s5120_s20  ;;  %1721 = vrot.lane.b32.xlu0 %v1703_v39, %s5120_s20  ;;  %v1065_v44 = vadd.f32 %v6215_v42, %v961_v55  ;;  %v1704_v39 = vmul.f32 %v7562_v24, %v6099_v56  ;;  %v1417_v42 = vmul.f32 %v7557_v45, %v5996_v15  ;;  %v6322_v55 = vstv %s3912_s0 }
 0x13e   :  { %4461 = vmatprep.subr.msk.mxu0 %vm1883_vm0, %v3986_v48 }
 0x13f   :  { %v6305_v25 = vpop.permute.xlu1 %764  ;;  %v6310_v46 = vpop.permute.xlu0 %563  ;;  %v1250_v47 = vadd.f32 %v1242_v14, %v1065_v44  ;;  %v385_v44 = vadd.f32 %v377_v54, %v200_v10  ;;  %v777_v14 = vadd.f32 %v6172_v18, %v673_v21  ;;  %v7610_v10 = vld [vmem:[#allocation44_spill] sm:$0xff]  ;;  %v7611_v18 = vld [vmem:[#allocation29_spill] sm:$0xff] }
 0x140   :  { %7607 = vst [vmem:[#allocation55_spill] sm:$0xff] %v6310_v46  ;;  %4462 = vmatpush3.msk.msra.mxu0 %vm1883_vm0, %v3986_v48  ;;  %v1173_v48 = vmul.f32 %v7589_v12, %v6322_v55  ;;  %v378_v21 = vmul.f32 %v7611_v18, %v6062_v41  ;;  %v7612_v46 = vld [vmem:[#allocation45_spill] sm:$0xff] }
 0x141   :  { %1153 = vrot.lane.b32.xlu1 %v1130_v7, %s5120_s20  ;;  %902 = vrot.lane.b32.xlu0 %v885_v26, %s5120_s20  ;;  %v89_v26 = vmul.f32 %v7561_v40, %v6041_v49  ;;  %v1354_v43 = vadd.f32 %v1333_v27, %v1250_v47  ;;  %v489_v27 = vadd.f32 %v6141_v0, %v385_v44  ;;  %v7609_v47 = vld [vmem:[#allocation46_spill] sm:$0xff] }
 0x142   :  { %v1705_v30 = vmul.f32 %v7609_v47, %v6099_v56  ;;  %v1418_v12 = vmul.f32 %v5996_v15, %v7612_v46  ;;  %v962_v0 = vadd.f32 %v954_v52, %v777_v14  ;;  %v955_v52 = vmul.f32 %v5479_v13, %v6115_v32 }
 0x143   :  { %v1335_v8 = vpop.permute.xlu1 %1334  ;;  %v6327_v7 = vpop.permute.xlu0 %1049  ;;  %v201_v54 = vadd.f32 %v7610_v10, %v89_v26  ;;  %v1539_v53 = vadd.f32 %v1531_v60, %v1354_v43  ;;  %v1174_v26 = vmul.f32 %v7570_v31, %v6322_v55 }
 0x145   :  { %1723 = vrot.lane.b32.xlu1 %v1704_v39, %s5120_s20  ;;  %1438 = vrot.lane.b32.xlu0 %v1417_v42, %s5120_s20  ;;  %v666_v42 = vmul.f32 %v7568_v16, %v6087_v63  ;;  %v386_v60 = vadd.f32 %v378_v21, %v201_v54  ;;  %v7615_v21 = vld [vmem:[#allocation32_spill] sm:$0xff] }
 0x147   :  { %v6342_v62 = vpop.permute.xlu1 %1051  ;;  %v6344_v39 = vpop.permute.xlu0 %850  ;;  %v674_v38 = vadd.f32 %v666_v42, %v489_v27  ;;  %v490_v27 = vadd.f32 %v6178_v6, %v386_v60  ;;  %v667_v42 = vmul.f32 %v5450_v59, %v6087_v63  ;;  %v7616_v6 = vld [vmem:[#allocation48_spill] sm:$0xff]  ;;  %v1532_v60 = vmul.f32 %v7562_v24, %v6162_v51 }
 0x148   :  { %7608 = vst [vmem:[#allocation40_spill] sm:$0xff] %v6344_v39 }
 0x149   :  { %1189 = vrot.lane.b32.xlu1 %v1173_v48, %s5120_s20  ;;  %615 = vrot.lane.b32.xlu0 %v597_v3, %s5120_s20  ;;  %v1066_v48 = vadd.f32 %v6254_v37, %v962_v0  ;;  %v7613_v3 = vld [vmem:[#allocation25_spill] sm:$0xff]  ;;  %v778_v37 = vadd.f32 %v6223_v5, %v674_v38  ;;  %v7614_v38 = vld [vmem:[#allocation47_spill] sm:$0xff]  ;;  %v379_v0 = vmul.f32 %v6062_v41, %v7615_v21 }
 0x14a   :  { %v90_v43 = vmul.f32 %v6041_v49, %v7613_v3  ;;  %v1706_v5 = vmul.f32 %v7614_v38, %v6099_v56 }
 0x14b   :  { %v1622_v44 = vpop.permute.xlu1 %1621  ;;  %v1337_v16 = vpop.permute.xlu0 %1336 }
 0x14c   :  { %v1643_v39 = vadd.f32 %v1622_v44, %v1539_v53  ;;  %v598_v53 = vmul.f32 %v5288_v34, %v6176_v11  ;;  %v202_v54 = vadd.f32 %v6146_v19, %v90_v43  ;;  %v1419_v44 = vmul.f32 %v5996_v15, %v7616_v6 }
 0x14d   :  { %1725 = vrot.lane.b32.xlu1 %v1705_v30, %s5120_s20  ;;  %1440 = vrot.lane.b32.xlu0 %v1418_v12, %s5120_s20  ;;  %v1251_v12 = vadd.f32 %v1243_v23, %v1066_v48  ;;  %v3997_v23 = vld [vmem:[%s7370_s3 + $0x108] sm:$0xff]  ;;  %v3998_v48 = vld [vmem:[%s7370_s3 + $0x110] sm:$0xff]  ;;  %v1244_v34 = vmul.f32 %v5529_v57, %v6134_v20 }
 0x14e   :  { %v1803_v14 = vadd.f32 %v6186_v28, %v1643_v39 }
 0x14f   :  { %v6373_v30 = vpop.permute.xlu1 %852  ;;  %v6380_v10 = vpop.permute.xlu0 %276  ;;  %v1355_v19 = vadd.f32 %v1335_v8, %v1251_v12  ;;  %v886_v8 = vmul.f32 %v5352_v58, %v6236_v4 }
 0x150   :  { %v1811_v39 = vmax.f32 %v1803_v14, 0.0  ;;  %v6400_v14 = vpack.c.bf16 %v3998_v48, %v3997_v23 }
 0x151   :  { %1191 = vrot.lane.b32.xlu1 %v1174_v26, %s5120_s20  ;;  %617 = vrot.lane.b32.xlu0 %v598_v53, %s5120_s20  ;;  %v963_v26 = vadd.f32 %v955_v52, %v778_v37  ;;  %v675_v53 = vadd.f32 %v667_v42, %v490_v27  ;;  %v387_v37 = vadd.f32 %v379_v0, %v202_v54  ;;  %v7619_v54 = vld [vmem:[#allocation37_spill] sm:$0xff] }
 0x152   :  { %4432 = vmatprep.mubr.msk.f32.mxu0 %vm1858_vm1, %v1811_v39  ;;  %7617 = vst [vmem:[#allocation46_spill] sm:$0xff] %v6400_v14  ;;  %4810 = vmatprep.subr.bf16.mxu0 %v6400_v14  ;;  %v956_v27 = vmul.f32 %v5500_v35, %v6115_v32  ;;  %v1540_v12 = vadd.f32 %v1532_v60, %v1355_v19  ;;  %v7621_v19 = vld [vmem:[#allocation23_spill] sm:$0xff] }
 0x153   :  { %v1339_v43 = vpop.permute.xlu1 %1338  ;;  %v6402_v39 = vpop.permute.xlu0 %1053  ;;  %v1067_v15 = vadd.f32 %v6294_v1, %v963_v26  ;;  %v779_v52 = vadd.f32 %v6265_v36, %v675_v53  ;;  %v310_v1 = vmul.f32 %v7559_v17, %v6094_v33  ;;  %v491_v23 = vadd.f32 %v6196_v22, %v387_v37  ;;  %v7622_v22 = vld [vmem:[#allocation26_spill] sm:$0xff] }
 0x154   :  { %v668_v36 = vmul.f32 %v6087_v63, %v7619_v54  ;;  %v91_v37 = vmul.f32 %v6041_v49, %v7622_v22 }
 0x155   :  { %1727 = vrot.lane.b32.xlu1 %v1706_v5, %s5120_s20  ;;  %1442 = vrot.lane.b32.xlu0 %v1419_v44, %s5120_s20  ;;  %v6420_v5 = vstv %s6375_s17  ;;  %v1252_v48 = vadd.f32 %v1244_v34, %v1067_v15  ;;  %v7620_v44 = vld [vmem:[#allocation49_spill] sm:$0xff]  ;;  %v964_v17 = vadd.f32 %v956_v27, %v779_v52  ;;  %v1533_v34 = vmul.f32 %v7609_v47, %v6162_v51 }
 0x156   :  { %v1707_v53 = vmul.f32 %v6099_v56, %v7620_v44  ;;  %v1462_v60 = vmul.f32 %v7621_v19, %v6420_v5  ;;  %v676_v15 = vadd.f32 %v668_v36, %v491_v23  ;;  %v1245_v52 = vmul.f32 %v7557_v45, %v6134_v20  ;;  %v7624_v36 = vld [vmem:[#allocation35_spill] sm:$0xff] }
 0x157   :  { %v6417_v42 = vpop.permute.xlu1 %278  ;;  %v1624_v0 = vpop.permute.xlu0 %1623 }
 0x158   :  { %7618 = vst [vmem:[#allocation44_spill] sm:$0xff] %v6417_v42  ;;  %v1644_v26 = vadd.f32 %v1624_v0, %v1540_v12  ;;  %v1356_v42 = vadd.f32 %v1337_v16, %v1252_v48  ;;  %v887_v16 = vmul.f32 %v7556_v61, %v6236_v4  ;;  %v780_v49 = vadd.f32 %v6275_v50, %v676_v15 }
 0x159   :  { %904 = vrot.lane.b32.xlu1 %v886_v8, %s5120_s20  ;;  %330 = vrot.lane.b32.xlu0 %v310_v1, %s5120_s20  ;;  %v1068_v8 = vadd.f32 %v6327_v7, %v964_v17  ;;  %v957_v12 = vmul.f32 %v6115_v32, %v7602_v2  ;;  %v311_v17 = vmul.f32 %v7561_v40, %v6094_v33  ;;  %v7623_v7 = vld [vmem:[#allocation43_spill] sm:$0xff]  ;;  %v6463_v50 = vstv %s6423_s23 }
 0x15a   :  { %v1804_v58 = vadd.f32 %v6186_v28, %v1644_v26  ;;  %v203_v23 = vadd.f32 %v7623_v7, %v91_v37  ;;  %v1541_v48 = vadd.f32 %v1533_v34, %v1356_v42  ;;  %v7626_v37 = vld [vmem:[#allocation50_spill] sm:$0xff]  ;;  %v1534_v7 = vmul.f32 %v7614_v38, %v6162_v51 }
 0x15b   :  { %v1341_v14 = vpop.permute.xlu1 %1340  ;;  %v6443_v27 = vpop.permute.xlu0 %1139  ;;  %v1253_v26 = vadd.f32 %v1245_v52, %v1068_v8  ;;  %v965_v15 = vadd.f32 %v957_v12, %v780_v49  ;;  %v7627_v42 = vld [vmem:[#allocation22_spill] sm:$0xff]  ;;  %v7628_v8 = vld [vmem:[#allocation9_spill] sm:$0xff] }
 0x15c   :  { %v1812_v1 = vmax.f32 %v1804_v58, 0.0  ;;  %v380_v58 = vmul.f32 %v6062_v41, %v7624_v36  ;;  %v1708_v41 = vmul.f32 %v6099_v56, %v7626_v37  ;;  %v1463_v34 = vmul.f32 %v7627_v42, %v6420_v5  ;;  %v7630_v12 = vld [vmem:[#allocation53_spill] sm:$0xff] }
 0x15d   :  { %1729 = vrot.lane.b32.xlu1 %v1707_v53, %s5120_s20  ;;  %1478 = vrot.lane.b32.xlu0 %v1462_v60, %s5120_s20  ;;  %v120_v52 = vmul.f32 %v7628_v8, %v6463_v50  ;;  %v1069_v56 = vadd.f32 %v6342_v62, %v965_v15  ;;  %v599_v15 = vmul.f32 %v7564_v9, %v6176_v11  ;;  %v6509_v9 = vstv %s6465_s26 }
 0x15e   :  { %4433 = vmatmul.mubr.msk.f32.gmra.mrb[2].mxu0 %vm1858_vm1, %v1812_v1  ;;  %v1357_v1 = vadd.f32 %v1339_v43, %v1253_v26  ;;  %v388_v40 = vadd.f32 %v380_v58, %v203_v23  ;;  %v1246_v43 = vmul.f32 %v6134_v20, %v7612_v46  ;;  %v7631_v26 = vld [vmem:[#allocation39_spill] sm:$0xff]  ;;  %v7632_v58 = vld [vmem:[#allocation33_spill] sm:$0xff] }
 0x15f   :  { %v6458_v0 = vpop.permute.xlu1 %280  ;;  %v1626_v53 = vpop.permute.xlu0 %1625  ;;  %v669_v8 = vmul.f32 %v6087_v63, %v7631_v26 }
 0x160   :  { %7625 = vst [vmem:[#allocation25_spill] sm:$0xff] %v6458_v0  ;;  %v1645_v60 = vadd.f32 %v1626_v53, %v1541_v48  ;;  %v6481_v53 = vstv %s6438_s24  ;;  %v1542_v62 = vadd.f32 %v1534_v7, %v1357_v1  ;;  %v7633_v0 = vld [vmem:[#allocation51_spill] sm:$0xff] }
 0x161   :  { %906 = vrot.lane.b32.xlu1 %v887_v16, %s5120_s20  ;;  %332 = vrot.lane.b32.xlu0 %v311_v17, %s5120_s20  ;;  %v492_v17 = vadd.f32 %v7630_v12, %v388_v40  ;;  %v296_v61 = vadd.f32 %v7633_v0, %v120_v52  ;;  %v7634_v40 = vld [vmem:[#allocation8_spill] sm:$0xff]  ;;  %v7635_v1 = vld [vmem:[#allocation11_spill] sm:$0xff]  ;;  %v600_v0 = vmul.f32 %v7611_v18, %v6176_v11 }
 0x162   :  { %v1805_v48 = vadd.f32 %v6186_v28, %v1645_v60  ;;  %v1175_v60 = vmul.f32 %v7632_v58, %v6322_v55  ;;  %v409_v12 = vmul.f32 %v7634_v40, %v6481_v53 }
 0x163   :  { %v6478_v16 = vpop.permute.xlu1 %1141  ;;  %v6486_v49 = vpop.permute.xlu0 %565  ;;  %v677_v7 = vadd.f32 %v669_v8, %v492_v17  ;;  %v7637_v17 = vld [vmem:[#allocation42_spill] sm:$0xff] }
 0x164   :  { %7629 = vst [vmem:[#allocation47_spill] sm:$0xff] %v6486_v49  ;;  %v1813_v23 = vmax.f32 %v1805_v48, 0.0  ;;  %v6502_v48 = vstv %s6460_s25  ;;  %v7642_v49 = vld [vmem:[#allocation13_spill] sm:$0xff]  ;;  %s5121_s25 = smov 120  }
 0x165   :  { %1731 = vrot.lane.b32.xlu1 %v1708_v41, %s5120_s20  ;;  %1480 = vrot.lane.b32.xlu0 %v1463_v34, %s5120_s20  ;;  %v1254_v41 = vadd.f32 %v1246_v43, %v1069_v56  ;;  %v121_v34 = vmul.f32 %v7635_v1, %v6463_v50  ;;  %v7636_v56 = vld [vmem:[#allocation31_spill] sm:$0xff]  ;;  %v781_v8 = vadd.f32 %v6305_v25, %v677_v7  ;;  %v7641_v1 = vld [vmem:[#allocation10_spill] sm:$0xff] }
 0x166   :  { %4435 = vmatprep.mubr.msk.f32.mxu0 %vm1858_vm1, %v1813_v23  ;;  %v1751_v43 = vmul.f32 %v7636_v56, %v6502_v48  ;;  %v410_v18 = vmul.f32 %v7641_v1, %v6481_v53 }
 0x167   :  { %v1628_v63 = vpop.permute.xlu1 %1627  ;;  %v1343_v46 = vpop.permute.xlu0 %1342  ;;  %v1358_v52 = vadd.f32 %v1341_v14, %v1254_v41 }
 0x168   :  { %v1646_v58 = vadd.f32 %v1628_v63, %v1542_v62  ;;  %v1535_v62 = vmul.f32 %v6162_v51, %v7620_v44  ;;  %v417_v63 = vadd.f32 %v409_v12, %v296_v61  ;;  %v698_v44 = vmul.f32 %v7642_v49, %v6509_v9  ;;  %v7643_v61 = vld [vmem:[#allocation30_spill] sm:$0xff] }
 0x169   :  { %1193 = vrot.lane.b32.xlu1 %v1175_v60, %s5120_s20  ;;  %619 = vrot.lane.b32.xlu0 %v599_v15, %s5120_s20  ;;  %v958_v60 = vmul.f32 %v6115_v32, %v7637_v17  ;;  %v1752_v25 = vmul.f32 %v7643_v61, %v6502_v48  ;;  %v7644_v32 = vld [vmem:[#allocation54_spill] sm:$0xff] }
 0x16a   :  { %v1806_v23 = vadd.f32 %v6186_v28, %v1646_v58  ;;  %v7640_v58 = vld [vmem:[#allocation52_spill] sm:$0xff]  ;;  %v297_v12 = vadd.f32 %v7644_v32, %v121_v34  ;;  %v1543_v7 = vadd.f32 %v1535_v62, %v1358_v52  ;;  %v1247_v34 = vmul.f32 %v6134_v20, %v7616_v6  ;;  %v7646_v52 = vld [vmem:[#allocation34_spill] sm:$0xff]  ;;  %v7649_v20 = vld [vmem:[#allocation55_spill] sm:$0xff] }
 0x16b   :  { %v6523_v40 = vpop.permute.xlu1 %567  ;;  %v6525_v41 = vpop.permute.xlu0 %282  ;;  %v585_v15 = vadd.f32 %v7640_v58, %v417_v63  ;;  %v966_v58 = vadd.f32 %v958_v60, %v781_v8  ;;  %v7647_v8 = vld [vmem:[#allocation40_spill] sm:$0xff] }
 0x16c   :  { %7638 = vst [vmem:[#allocation32_spill] sm:$0xff] %v6523_v40  ;;  %v1814_v14 = vmax.f32 %v1806_v23, 0.0  ;;  %7639 = vst [vmem:[#allocation37_spill] sm:$0xff] %v6525_v41  ;;  %v7645_v23 = vld [vmem:[#allocation36_spill] sm:$0xff]  ;;  %v6541_v41 = vstv %s6504_s27  ;;  %v418_v62 = vadd.f32 %v410_v18, %v297_v12 }
 0x16d   :  { %621 = vrot.lane.b32.xlu1 %v600_v0, %s5120_s20  ;;  %1767 = vrot.lane.b32.xlu0 %v1751_v43, %s5120_s20  ;;  %v1176_v63 = vmul.f32 %v7645_v23, %v6322_v55  ;;  %v706_v40 = vadd.f32 %v698_v44, %v585_v15  ;;  %v1070_v17 = vadd.f32 %v6402_v39, %v966_v58  ;;  %v7648_v39 = vld [vmem:[#allocation17_spill] sm:$0xff]  ;;  %v7650_v32 = vld [vmem:[#allocation12_spill] sm:$0xff]  ;;  %v7651_v58 = vld [vmem:[#allocation38_spill] sm:$0xff] }
 0x16e   :  { %4436 = vmatmul.mubr.msk.f32.gmra.mrb[4].mxu0 %vm1858_vm1, %v1814_v14  ;;  %v888_v43 = vmul.f32 %v7646_v52, %v6236_v4  ;;  %v987_v60 = vmul.f32 %v7648_v39, %v6541_v41 }
 0x16f   :  { %v1630_v1 = vpop.permute.xlu1 %1629  ;;  %v1429_v0 = vpop.permute.xlu0 %1428  ;;  %v874_v44 = vadd.f32 %v7647_v8, %v706_v40  ;;  %v313_v40 = vmul.f32 %v6094_v33, %v7622_v22 }
 0x170   :  { %v1647_v49 = vadd.f32 %v1630_v1, %v1543_v7  ;;  %v312_v1 = vmul.f32 %v6094_v33, %v7613_v3  ;;  %v699_v7 = vmul.f32 %v7650_v32, %v6509_v9 }
 0x171   :  { %1769 = vrot.lane.b32.xlu1 %v1752_v25, %s5120_s20  ;;  %1195 = vrot.lane.b32.xlu0 %v1176_v63, %s5120_s20  ;;  %v586_v25 = vadd.f32 %v7649_v20, %v418_v62  ;;  %v6566_v63 = vstv %s3923_s28  ;;  %v1464_v62 = vmul.f32 %v7651_v58, %v6420_v5  ;;  %v995_v8 = vadd.f32 %v987_v60, %v874_v44 }
 0x172   :  { %v1807_v14 = vadd.f32 %v6186_v28, %v1647_v49  ;;  %v1255_v49 = vadd.f32 %v1247_v34, %v1070_v17  ;;  %v1536_v17 = vmul.f32 %v6162_v51, %v7626_v37  ;;  %v1276_v39 = vmul.f32 %v7621_v19, %v6566_v63 }
 0x173   :  { %v6556_v15 = vpop.permute.xlu1 %569  ;;  %v6561_v12 = vpop.permute.xlu0 %284  ;;  %v707_v34 = vadd.f32 %v699_v7, %v586_v25  ;;  %v1163_v33 = vadd.f32 %v6443_v27, %v995_v8  ;;  %v889_v51 = vmul.f32 %v5450_v59, %v6236_v4  ;;  %v6590_v7 = vstv %s3939_s29  ;;  %s3876_s29 = sld [smem:[#allocation2 + $0x25]] }
 0x174   :  { %v1815_v18 = vmax.f32 %v1807_v14, 0.0  ;;  %v1359_v14 = vadd.f32 %v1343_v46, %v1255_v49  ;;  %v988_v46 = vmul.f32 %v7570_v31, %v6541_v41  ;;  %v7661_v31 = vld [vmem:[#allocation47_spill] sm:$0xff] }
 0x175   :  { %908 = vrot.lane.b32.xlu1 %v888_v43, %s5120_s20  ;;  %334 = vrot.lane.b32.xlu0 %v312_v1, %s5120_s20  ;;  %v1465_v1 = vmul.f32 %v5495_v29, %v6420_v5  ;;  %v875_v44 = vadd.f32 %v6373_v30, %v707_v34  ;;  %v1177_v30 = vmul.f32 %v5479_v13, %v6322_v55 }
 0x176   :  { %4438 = vmatprep.mubr.msk.f32.mxu0 %vm1858_vm1, %v1815_v18  ;;  %v1544_v27 = vadd.f32 %v1536_v17, %v1359_v14  ;;  %v1284_v18 = vadd.f32 %v1276_v39, %v1163_v33  ;;  %v1565_v39 = vmul.f32 %v7636_v56, %v6590_v7  ;;  %v1277_v33 = vmul.f32 %v7627_v42, %v6566_v63 }
 0x177   :  { %v1431_v20 = vpop.permute.xlu1 %1430  ;;  %v6574_v43 = vpop.permute.xlu0 %854 }
 0x178   :  { %v1452_v8 = vadd.f32 %v1429_v0, %v1284_v18  ;;  %v602_v0 = vmul.f32 %v6176_v11, %v7624_v36 }
 0x179   :  { %336 = vrot.lane.b32.xlu1 %v313_v40, %s5120_s20  ;;  %1482 = vrot.lane.b32.xlu0 %v1464_v62, %s5120_s20  ;;  %v996_v40 = vadd.f32 %v988_v46, %v875_v44  ;;  %v601_v62 = vmul.f32 %v6176_v11, %v7615_v21  ;;  %v1754_v11 = vmul.f32 %v7562_v24, %v6502_v48 }
 0x17b   :  { %v6588_v60 = vpop.permute.xlu1 %286  ;;  %v1632_v25 = vpop.permute.xlu0 %1631  ;;  %v1164_v34 = vadd.f32 %v6478_v16, %v996_v40  ;;  %v1573_v16 = vadd.f32 %v1565_v39, %v1452_v8  ;;  %v1178_v40 = vmul.f32 %v5500_v35, %v6322_v55 }
 0x17c   :  { %v1648_v49 = vadd.f32 %v1632_v25, %v1544_v27  ;;  %v6617_v25 = vstv %s3975_s1  ;;  %s3892_s1 = sld [smem:[#allocation2 + $0x28]] }
 0x17d   :  { %1484 = vrot.lane.b32.xlu1 %v1465_v1, %s5120_s20  ;;  %910 = vrot.lane.b32.xlu0 %v889_v51, %s5120_s20  ;;  %v1285_v27 = vadd.f32 %v1277_v33, %v1164_v34 }
 0x17e   :  { %v1808_v14 = vadd.f32 %v6186_v28, %v1648_v49  ;;  %v7652_v28 = vld [vmem:[#allocation41_spill] sm:$0xff] }
 0x17f   :  { %v6599_v17 = vpop.permute.xlu1 %856  ;;  %v6606_v1 = vpop.permute.xlu0 %571  ;;  %v1753_v46 = vmul.f32 %v7652_v28, %v6502_v48 }
 0x180   :  { %v1816_v44 = vmax.f32 %v1808_v14, 0.0 }
 0x181   :  { %1197 = vrot.lane.b32.xlu1 %v1177_v30, %s5120_s20  ;;  %623 = vrot.lane.b32.xlu0 %v601_v62, %s5120_s20  ;;  %v1453_v30 = vadd.f32 %v1431_v20, %v1285_v27  ;;  %v1566_v62 = vmul.f32 %v7643_v61, %v6590_v7  ;;  %v1466_v20 = vmul.f32 %v5529_v57, %v6420_v5  ;;  %v7657_v61 = vld [vmem:[#allocation46_spill] sm:$0xff] }
 0x182   :  { %4439 = vmatmul.mubr.msk.f32.gmra.mrb[6].mxu0 %vm1858_vm1, %v1816_v44  ;;  %v890_v44 = vmul.f32 %v6236_v4, %v7619_v54  ;;  %v1467_v27 = vmul.f32 %v7557_v45, %v6420_v5 }
 0x183   :  { %v6615_v51 = vpop.permute.xlu1 %322  ;;  %v1718_v18 = vpop.permute.xlu0 %1717  ;;  %v1574_v33 = vadd.f32 %v1566_v62, %v1453_v30  ;;  %v891_v30 = vmul.f32 %v6236_v4, %v7631_v26  ;;  %v4002_v4 = vld [vmem:[%s7370_s3 + $0x130] sm:$0xff] }
 0x184   :  { %7653 = vst [vmem:[#allocation26_spill] sm:$0xff] %v6615_v51  ;;  %v1741_v49 = vadd.f32 %v1718_v18, %v1573_v16  ;;  %v3999_v18 = vld [vmem:[%s7370_s3 + $0x118] sm:$0xff] }
 0x185   :  { %625 = vrot.lane.b32.xlu1 %v602_v0, %s5120_s20  ;;  %1771 = vrot.lane.b32.xlu0 %v1753_v46, %s5120_s20 }
 0x186   :  { %v2126_v8 = vadd.f32 %v6617_v25, %v1741_v49  ;;  %v4000_v49 = vld [vmem:[%s7370_s3 + $0x120] sm:$0xff] }
 0x187   :  { %v6628_v14 = vpop.permute.xlu1 %858  ;;  %v6630_v39 = vpop.permute.xlu0 %573 }
 0x188   :  { %v2134_v34 = vmax.f32 %v2126_v8, 0.0 }
 0x189   :  { %1773 = vrot.lane.b32.xlu1 %v1754_v11, %s5120_s20  ;;  %1199 = vrot.lane.b32.xlu0 %v1178_v40, %s5120_s20  ;;  %v7654_v40 = vld [vmem:[#allocation15_spill] sm:$0xff] }
 0x18a   :  { %4463 = vmatprep.mubr.msk.f32.mxu0 %vm1858_vm1, %v2134_v34  ;;  %v122_v62 = vmul.f32 %v7654_v40, %v6463_v50 }
 0x18b   :  { %v1720_v0 = vpop.permute.xlu1 %1719  ;;  %v6639_v16 = vpop.permute.xlu0 %1143 }
 0x18c   :  { %v1742_v46 = vadd.f32 %v1720_v0, %v1574_v33  ;;  %v4813_v33 = vpack.c.bf16 %v4000_v49, %v3999_v18  ;;  %v1755_v0 = vmul.f32 %v7609_v47, %v6502_v48  ;;  %v7656_v18 = vld [vmem:[#allocation18_spill] sm:$0xff] }
 0x18d   :  { %1486 = vrot.lane.b32.xlu1 %v1466_v20, %s5120_s20  ;;  %912 = vrot.lane.b32.xlu0 %v890_v44, %s5120_s20  ;;  %v4001_v44 = vld [vmem:[%s7370_s3 + $0x128] sm:$0xff]  ;;  %v411_v49 = vmul.f32 %v7656_v18, %v6481_v53  ;;  %v7659_v18 = vld [vmem:[#allocation42_spill] sm:$0xff] }
 0x18e   :  { %v2127_v11 = vadd.f32 %v6617_v25, %v1742_v46  ;;  %v1179_v46 = vmul.f32 %v6322_v55, %v7602_v2  ;;  %v4817_v42 = vpack.c.bf16 %v4002_v4, %v4001_v44  ;;  %v1180_v44 = vmul.f32 %v6322_v55, %v7659_v18  ;;  %v4005_v55 = vld [vmem:[%s7370_s3 + $0x148] sm:$0xff] }
 0x18f   :  { %v6656_v8 = vpop.permute.xlu1 %575  ;;  %v6658_v20 = vpop.permute.xlu0 %324  ;;  %v7668_v18 = vld [vmem:[#allocation33_spill] sm:$0xff] }
 0x190   :  { %v2135_v34 = vmax.f32 %v2127_v11, 0.0  ;;  %7655 = vst [vmem:[#allocation43_spill] sm:$0xff] %v6658_v20  ;;  %v7662_v20 = vld [vmem:[#allocation27_spill] sm:$0xff] }
 0x191   :  { %1488 = vrot.lane.b32.xlu1 %v1467_v27, %s5120_s20  ;;  %914 = vrot.lane.b32.xlu0 %v891_v30, %s5120_s20  ;;  %v298_v27 = vadd.f32 %v6380_v10, %v122_v62  ;;  %v1756_v30 = vmul.f32 %v7614_v38, %v6502_v48  ;;  %v4003_v10 = vld [vmem:[%s7370_s3 + $0x138] sm:$0xff]  ;;  %v4004_v62 = vld [vmem:[%s7370_s3 + $0x140] sm:$0xff]  ;;  %v700_v51 = vmul.f32 %v7662_v20, %v6509_v9 }
 0x192   :  { %4464 = vmatmul.mubr.msk.f32.vlgmr.msra.gmra.mrb[0].mxu0 %vm1858_vm1, %v2135_v34  ;;  %v7658_v34 = vld [vmem:[#allocation14_spill] sm:$0xff]  ;;  %v4821_v19 = vpack.c.bf16 %v4004_v62, %v4003_v10  ;;  %v7665_v62 = vld [vmem:[#allocation45_spill] sm:$0xff] }
 0x193   :  { %v6676_v11 = vpop.permute.xlu1 %1145  ;;  %4812 = vmatpush3.bf16.msra.mxu0 %v7657_v61  ;;  %v6679_v56 = vpop.permute.xlu0 %860  ;;  %v123_v61 = vmul.f32 %v7658_v34, %v6463_v50 }
 0x194   :  { %4814 = vmatprep.subr.bf16.mxu0 %v4813_v33 }
 0x195   :  { %1775 = vrot.lane.b32.xlu1 %v1755_v0, %s5120_s20  ;;  %1201 = vrot.lane.b32.xlu0 %v1179_v46, %s5120_s20  ;;  %v419_v0 = vadd.f32 %v411_v49, %v298_v27  ;;  %v1469_v46 = vmul.f32 %v6420_v5, %v7616_v6  ;;  %v7663_v27 = vld [vmem:[#allocation44_spill] sm:$0xff] }
 0x196   :  { %v299_v49 = vadd.f32 %v7663_v27, %v123_v61  ;;  %v1758_v61 = vmul.f32 %v6502_v48, %v7626_v37  ;;  %v7666_v27 = vld [vmem:[#allocation19_spill] sm:$0xff] }
 0x197   :  { %v6695_v4 = vpop.permute.xlu1 %862  ;;  %4816 = vmatpush3.bf16.msra.mxu0 %v4813_v33  ;;  %v6697_v40 = vpop.permute.xlu0 %611  ;;  %v587_v32 = vadd.f32 %v7661_v31, %v419_v0  ;;  %v4006_v33 = vld [vmem:[%s7370_s3 + $0x150] sm:$0xff]  ;;  %v7664_v31 = vld [vmem:[#allocation20_spill] sm:$0xff] }
 0x198   :  { %7660 = vst [vmem:[#allocation35_spill] sm:$0xff] %v6697_v40  ;;  %4818 = vmatprep.subr.bf16.mxu0 %v4817_v42  ;;  %v412_v10 = vmul.f32 %v7664_v31, %v6481_v53  ;;  %v4825_v34 = vpack.c.bf16 %v4006_v33, %v4005_v55  ;;  %v124_v31 = vmul.f32 %v7666_v27, %v6463_v50  ;;  %v7670_v33 = vld [vmem:[#allocation28_spill] sm:$0xff] }
 0x199   :  { %1777 = vrot.lane.b32.xlu1 %v1756_v30, %s5120_s20  ;;  %1203 = vrot.lane.b32.xlu0 %v1180_v44, %s5120_s20  ;;  %v1468_v30 = vmul.f32 %v6420_v5, %v7665_v62  ;;  %v708_v6 = vadd.f32 %v700_v51, %v587_v32  ;;  %v7667_v44 = vld [vmem:[#allocation49_spill] sm:$0xff]  ;;  %v989_v55 = vmul.f32 %v7668_v18, %v6541_v41  ;;  %v7669_v51 = vld [vmem:[#allocation32_spill] sm:$0xff] }
 0x19a   :  { %v420_v40 = vadd.f32 %v412_v10, %v299_v49  ;;  %v1757_v5 = vmul.f32 %v6502_v48, %v7667_v44  ;;  %v701_v37 = vmul.f32 %v7670_v33, %v6509_v9  ;;  %v7671_v48 = vld [vmem:[#allocation25_spill] sm:$0xff]  ;;  %v7672_v49 = vld [vmem:[#allocation24_spill] sm:$0xff]  ;;  %v1278_v18 = vmul.f32 %v7651_v58, %v6566_v63 }
 0x19b   :  { %v1433_v0 = vpop.permute.xlu1 %1432  ;;  %4820 = vmatpush3.bf16.msra.mxu0 %v4817_v42  ;;  %v6717_v20 = vpop.permute.xlu0 %1147  ;;  %v876_v42 = vadd.f32 %v6574_v43, %v708_v6  ;;  %v4007_v6 = vld [vmem:[%s7370_s3 + $0x158] sm:$0x1f]  ;;  %v300_v43 = vadd.f32 %v7671_v48, %v124_v31  ;;  %v413_v10 = vmul.f32 %v7672_v49, %v6481_v53  ;;  %v7673_v31 = vld [vmem:[#allocation21_spill] sm:$0xff]  ;;  %s3860_s3 = sld [smem:[#allocation2 + $0x24]] }
 0x19c   :  { %4822 = vmatprep.subr.bf16.mxu0 %v4821_v19  ;;  %v125_v48 = vmul.f32 %v7673_v31, %v6463_v50 }
 0x19d   :  { %1492 = vrot.lane.b32.xlu1 %v1469_v46, %s5120_s20  ;;  %1490 = vrot.lane.b32.xlu0 %v1468_v30, %s5120_s20  ;;  %v588_v46 = vadd.f32 %v7669_v51, %v420_v40  ;;  %v421_v33 = vadd.f32 %v413_v10, %v300_v43  ;;  %v7675_v43 = vld [vmem:[#allocation29_spill] sm:$0xff] }
 0x19f   :  { %v6730_v32 = vpop.permute.xlu1 %864  ;;  %4824 = vmatpush3.bf16.msra.mxu0 %v4821_v19  ;;  %v6735_v27 = vpop.permute.xlu0 %613  ;;  %v997_v19 = vadd.f32 %v989_v55, %v876_v42  ;;  %v709_v30 = vadd.f32 %v701_v37, %v588_v46  ;;  %v589_v37 = vadd.f32 %v6556_v15, %v421_v33  ;;  %v7674_v46 = vld [vmem:[#allocation37_spill] sm:$0xff]  ;;  %v1279_v33 = vmul.f32 %v5495_v29, %v6566_v63 }
 0x1a0   :  { %4826 = vmatprep.subr.bf16.mxu0 %v4825_v34 }
 0x1a1   :  { %1781 = vrot.lane.b32.xlu1 %v1758_v61, %s5120_s20  ;;  %1779 = vrot.lane.b32.xlu0 %v1757_v5, %s5120_s20  ;;  %v1165_v61 = vadd.f32 %v6639_v16, %v997_v19  ;;  %v877_v49 = vadd.f32 %v6599_v17, %v709_v30  ;;  %v990_v5 = vmul.f32 %v7645_v23, %v6541_v41 }
 0x1a2   :  { %v702_v16 = vmul.f32 %v7646_v52, %v6509_v9  ;;  %v301_v19 = vadd.f32 %v7674_v46, %v125_v48  ;;  %v414_v17 = vmul.f32 %v7675_v43, %v6481_v53  ;;  %v1567_v23 = vmul.f32 %v7652_v28, %v6590_v7 }
 0x1a3   :  { %v1435_v40 = vpop.permute.xlu1 %1434  ;;  %4828 = vmatpush3.bf16.msra.mxu0 %v4825_v34  ;;  %v6745_v51 = vpop.permute.xlu0 %1149  ;;  %v1286_v55 = vadd.f32 %v1278_v18, %v1165_v61  ;;  %v998_v10 = vadd.f32 %v990_v5, %v877_v49  ;;  %v126_v18 = vmul.f32 %v6463_v50, %v7613_v3  ;;  %v415_v46 = vmul.f32 %v6481_v53, %v7615_v21 }
 0x1a4   :  { %4495 = vmatprep.subr.msk.mxu0 %vm1883_vm0, %v4007_v6  ;;  %v422_v61 = vadd.f32 %v414_v17, %v301_v19 }
 0x1a5   :  { %v1454_v30 = vadd.f32 %v1433_v0, %v1286_v55  ;;  %v1166_v15 = vadd.f32 %v6676_v11, %v998_v10  ;;  %v991_v0 = vmul.f32 %v5479_v13, %v6541_v41  ;;  %v703_v11 = vmul.f32 %v5450_v59, %v6509_v9 }
 0x1a6   :  { %v302_v19 = vadd.f32 %v6561_v12, %v126_v18  ;;  %v127_v12 = vmul.f32 %v6463_v50, %v7622_v22 }
 0x1a7   :  { %v6756_v34 = vpop.permute.xlu1 %900  ;;  %4496 = vmatpush3.msk.msra.mxu0 %vm1883_vm0, %v4007_v6  ;;  %v6762_v42 = vpop.permute.xlu0 %326  ;;  %v710_v6 = vadd.f32 %v702_v16, %v589_v37  ;;  %v1575_v5 = vadd.f32 %v1567_v23, %v1454_v30  ;;  %v590_v37 = vadd.f32 %v6606_v1, %v422_v61  ;;  %v1287_v16 = vadd.f32 %v1279_v33, %v1166_v15 }
 0x1a8   :  { %v1280_v33 = vmul.f32 %v5529_v57, %v6566_v63  ;;  %v423_v18 = vadd.f32 %v415_v46, %v302_v19  ;;  %v416_v46 = vmul.f32 %v6481_v53, %v7624_v36  ;;  %v1281_v53 = vmul.f32 %v7557_v45, %v6566_v63 }
 0x1a9   :  { %v878_v48 = vadd.f32 %v6628_v14, %v710_v6  ;;  %v1455_v17 = vadd.f32 %v1435_v40, %v1287_v16  ;;  %v1568_v6 = vmul.f32 %v7562_v24, %v6590_v7  ;;  %v711_v30 = vadd.f32 %v703_v11, %v590_v37 }
 0x1aa   :  { %v591_v37 = vadd.f32 %v6630_v39, %v423_v18  ;;  %v704_v11 = vmul.f32 %v6509_v9, %v7619_v54  ;;  %v7676_v18 = vld [vmem:[#allocation9_spill] sm:$0xff] }
 0x1ab   :  { %v1437_v58 = vpop.permute.xlu1 %1436  ;;  %v6772_v52 = vpop.permute.xlu0 %1151  ;;  %v999_v14 = vadd.f32 %v991_v0, %v878_v48  ;;  %v879_v48 = vadd.f32 %v6679_v56, %v711_v30  ;;  %v992_v0 = vmul.f32 %v5500_v35, %v6541_v41  ;;  %v1569_v56 = vmul.f32 %v7609_v47, %v6590_v7 }
 0x1ad   :  { %v1167_v15 = vadd.f32 %v6717_v20, %v999_v14  ;;  %v1000_v19 = vadd.f32 %v992_v0, %v879_v48 }
 0x1af   :  { %v6779_v49 = vpop.permute.xlu1 %328  ;;  %v1722_v55 = vpop.permute.xlu0 %1721  ;;  %v1288_v16 = vadd.f32 %v1280_v33, %v1167_v15  ;;  %v1168_v30 = vadd.f32 %v6745_v51, %v1000_v19  ;;  %v6827_v51 = vstv %s3876_s29  ;;  %v1570_v19 = vmul.f32 %v7614_v38, %v6590_v7 }
 0x1b0   :  { %v1743_v10 = vadd.f32 %v1722_v55, %v1575_v5  ;;  %v1576_v5 = vadd.f32 %v1568_v6, %v1455_v17  ;;  %v6812_v6 = vstv %s3860_s3 }
 0x1b1   :  { %v1456_v14 = vadd.f32 %v1437_v58, %v1288_v16  ;;  %v993_v58 = vmul.f32 %v6541_v41, %v7602_v2  ;;  %v138_v48 = vmul.f32 %v7676_v18, %v6812_v6  ;;  %v7677_v16 = vld [vmem:[#allocation11_spill] sm:$0xff] }
 0x1b2   :  { %v2128_v23 = vadd.f32 %v6617_v25, %v1743_v10  ;;  %v303_v10 = vadd.f32 %v6588_v60, %v127_v12  ;;  %v7681_v18 = vld [vmem:[#allocation43_spill] sm:$0xff] }
 0x1b3   :  { %v6790_v1 = vpop.permute.xlu1 %1153  ;;  %v6795_v61 = vpop.permute.xlu0 %902  ;;  %v1577_v12 = vadd.f32 %v1569_v56, %v1456_v14  ;;  %v7678_v14 = vld [vmem:[#allocation26_spill] sm:$0xff] }
 0x1b4   :  { %v2136_v40 = vmax.f32 %v2128_v23, 0.0  ;;  %v712_v23 = vadd.f32 %v704_v11, %v591_v37  ;;  %v1289_v37 = vadd.f32 %v1281_v53, %v1168_v30 }
 0x1b6   :  { %4466 = vmatprep.mubr.msk.f32.mxu0 %vm1858_vm1, %v2136_v40  ;;  %v424_v40 = vadd.f32 %v416_v46, %v303_v10  ;;  %v880_v60 = vadd.f32 %v6695_v4, %v712_v23 }
 0x1b7   :  { %v1724_v20 = vpop.permute.xlu1 %1723  ;;  %v1439_v50 = vpop.permute.xlu0 %1438 }
 0x1b8   :  { %v1744_v55 = vadd.f32 %v1724_v20, %v1576_v5  ;;  %v592_v5 = vadd.f32 %v6656_v8, %v424_v40  ;;  %v705_v20 = vmul.f32 %v6509_v9, %v7631_v26  ;;  %v1001_v46 = vadd.f32 %v993_v58, %v880_v60  ;;  %v7679_v8 = vld [vmem:[#allocation8_spill] sm:$0xff]  ;;  %v7680_v60 = vld [vmem:[#allocation10_spill] sm:$0xff] }
 0x1b9   :  { %v1457_v10 = vadd.f32 %v1439_v50, %v1289_v37  ;;  %v427_v23 = vmul.f32 %v7679_v8, %v6827_v51  ;;  %v1282_v40 = vmul.f32 %v6566_v63, %v7665_v62  ;;  %v428_v58 = vmul.f32 %v7680_v60, %v6827_v51  ;;  %v7682_v37 = vld [vmem:[#allocation42_spill] sm:$0xff]  ;;  %v7684_v60 = vld [vmem:[#allocation13_spill] sm:$0xff] }
 0x1ba   :  { %v2129_v17 = vadd.f32 %v6617_v25, %v1744_v55  ;;  %v139_v55 = vmul.f32 %v7677_v16, %v6812_v6  ;;  %v713_v30 = vadd.f32 %v705_v20, %v592_v5  ;;  %v994_v5 = vmul.f32 %v6541_v41, %v7682_v37 }
 0x1bb   :  { %v6814_v39 = vpop.permute.xlu1 %1189  ;;  %v6819_v33 = vpop.permute.xlu0 %615 }
 0x1bc   :  { %v2137_v15 = vmax.f32 %v2129_v17, 0.0  ;;  %v346_v17 = vadd.f32 %v7678_v14, %v138_v48  ;;  %v347_v48 = vadd.f32 %v7681_v18, %v139_v55  ;;  %v7683_v14 = vld [vmem:[#allocation35_spill] sm:$0xff]  ;;  %v1571_v55 = vmul.f32 %v6590_v7, %v7667_v44 }
 0x1be   :  { %4467 = vmatmul.mubr.msk.f32.gmra.mrb[2].mxu0 %vm1858_vm1, %v2137_v15  ;;  %v1169_v15 = vadd.f32 %v6772_v52, %v1001_v46  ;;  %v1578_v52 = vadd.f32 %v1570_v19, %v1457_v10  ;;  %v435_v20 = vadd.f32 %v427_v23, %v346_v17  ;;  %v7685_v10 = vld [vmem:[#allocation12_spill] sm:$0xff]  ;;  %v6862_v17 = vstv %s3908_s2  ;;  %s5128_s2 = smov 124  }
 0x1bf   :  { %v1726_v0 = vpop.permute.xlu1 %1725  ;;  %v1441_v4 = vpop.permute.xlu0 %1440 }
 0x1c0   :  { %v1745_v11 = vadd.f32 %v1726_v0, %v1577_v12  ;;  %v6847_v12 = vstv %s3892_s1  ;;  %v881_v0 = vadd.f32 %v6730_v32, %v713_v30  ;;  %v1290_v16 = vadd.f32 %v1282_v40, %v1169_v15  ;;  %s5127_s1 = smov 126  }
 0x1c1   :  { %v635_v8 = vadd.f32 %v7683_v14, %v435_v20  ;;  %v716_v62 = vmul.f32 %v7684_v60, %v6847_v12  ;;  %v436_v32 = vadd.f32 %v428_v58, %v347_v48  ;;  %v717_v19 = vmul.f32 %v7685_v10, %v6847_v12  ;;  %v7688_v60 = vld [vmem:[#allocation16_spill] sm:$0xff] }
 0x1c2   :  { %v2130_v56 = vadd.f32 %v6617_v25, %v1745_v11  ;;  %v1002_v30 = vadd.f32 %v994_v5, %v881_v0  ;;  %v1458_v41 = vadd.f32 %v1441_v4, %v1290_v16  ;;  %v7687_v5 = vld [vmem:[#allocation17_spill] sm:$0xff] }
 0x1c3   :  { %v1192_v9 = vpop.permute.xlu1 %1191  ;;  %v6843_v50 = vpop.permute.xlu0 %617  ;;  %v636_v15 = vadd.f32 %v6735_v27, %v436_v32  ;;  %v724_v4 = vadd.f32 %v716_v62, %v635_v8  ;;  %v6878_v32 = vstv %s3924_s30  ;;  %s5129_s30 = smov 125  }
 0x1c4   :  { %v2138_v53 = vmax.f32 %v2130_v56, 0.0  ;;  %v1170_v40 = vadd.f32 %v6790_v1, %v1002_v30  ;;  %v1579_v48 = vadd.f32 %v1571_v55, %v1458_v41 }
 0x1c5   :  { %v924_v0 = vadd.f32 %v6756_v34, %v724_v4  ;;  %v7689_v34 = vld [vmem:[#allocation50_spill] sm:$0xff] }
 0x1c6   :  { %4469 = vmatprep.mubr.msk.f32.mxu0 %vm1858_vm1, %v2138_v53  ;;  %v1572_v30 = vmul.f32 %v6590_v7, %v7689_v34 }
 0x1c7   :  { %v1728_v11 = vpop.permute.xlu1 %1727  ;;  %v1443_v56 = vpop.permute.xlu0 %1442 }
 0x1c8   :  { %v1746_v46 = vadd.f32 %v1728_v11, %v1578_v52  ;;  %v7686_v52 = vld [vmem:[#allocation48_spill] sm:$0xff]  ;;  %v1005_v11 = vmul.f32 %v7687_v5, %v6862_v17 }
 0x1c9   :  { %v1283_v20 = vmul.f32 %v6566_v63, %v7686_v52  ;;  %v1006_v63 = vmul.f32 %v7688_v60, %v6862_v17 }
 0x1ca   :  { %v2131_v53 = vadd.f32 %v6617_v25, %v1746_v46  ;;  %v725_v46 = vadd.f32 %v717_v19, %v636_v15  ;;  %v1013_v41 = vadd.f32 %v1005_v11, %v924_v0  ;;  %v7692_v0 = vld [vmem:[#allocation22_spill] sm:$0xff] }
 0x1cb   :  { %v6864_v23 = vpop.permute.xlu1 %904  ;;  %v6870_v58 = vpop.permute.xlu0 %330  ;;  %v1291_v27 = vadd.f32 %v1283_v20, %v1170_v40  ;;  %v7690_v40 = vld [vmem:[#allocation23_spill] sm:$0xff]  ;;  %v1295_v11 = vmul.f32 %v7692_v0, %v6878_v32 }
 0x1cc   :  { %v2139_v18 = vmax.f32 %v2131_v53, 0.0  ;;  %v925_v62 = vadd.f32 %v6795_v61, %v725_v46  ;;  %v1213_v15 = vadd.f32 %v6814_v39, %v1013_v41  ;;  %v6894_v46 = vstv %s3940_s13  ;;  %s5131_s13 = smov 123  }
 0x1cd   :  { %v1459_v8 = vadd.f32 %v1443_v56, %v1291_v27  ;;  %v7691_v56 = vld [vmem:[#allocation15_spill] sm:$0xff]  ;;  %v7693_v27 = vld [vmem:[#allocation14_spill] sm:$0xff] }
 0x1ce   :  { %4470 = vmatmul.mubr.msk.f32.gmra.mrb[4].mxu0 %vm1858_vm1, %v2139_v18  ;;  %v1294_v18 = vmul.f32 %v7690_v40, %v6878_v32  ;;  %v1014_v20 = vadd.f32 %v1006_v63, %v925_v62  ;;  %v140_v4 = vmul.f32 %v7691_v56, %v6812_v6  ;;  %v7694_v62 = vld [vmem:[#allocation18_spill] sm:$0xff] }
 0x1cf   :  { %v1730_v16 = vpop.permute.xlu1 %1729  ;;  %v1479_v1 = vpop.permute.xlu0 %1478  ;;  %v1580_v61 = vadd.f32 %v1572_v30, %v1459_v8  ;;  %v429_v8 = vmul.f32 %v7694_v62, %v6827_v51  ;;  %v7695_v30 = vld [vmem:[#allocation31_spill] sm:$0xff] }
 0x1d0   :  { %v1747_v14 = vadd.f32 %v1730_v16, %v1579_v48  ;;  %v1214_v5 = vadd.f32 %v1192_v9, %v1014_v20  ;;  %v1302_v39 = vadd.f32 %v1294_v18, %v1213_v15  ;;  %v348_v63 = vadd.f32 %v6762_v42, %v140_v4  ;;  %v7696_v18 = vld [vmem:[#allocation20_spill] sm:$0xff] }
 0x1d1   :  { %v1583_v41 = vmul.f32 %v7695_v30, %v6894_v46 }
 0x1d2   :  { %v2132_v55 = vadd.f32 %v6617_v25, %v1747_v14  ;;  %v141_v14 = vmul.f32 %v7693_v27, %v6812_v6  ;;  %v1502_v9 = vadd.f32 %v1479_v1, %v1302_v39  ;;  %v1303_v40 = vadd.f32 %v1295_v11, %v1214_v5  ;;  %v7698_v11 = vld [vmem:[#allocation27_spill] sm:$0xff] }
 0x1d3   :  { %v907_v53 = vpop.permute.xlu1 %906  ;;  %v6884_v19 = vpop.permute.xlu0 %332  ;;  %v437_v4 = vadd.f32 %v429_v8, %v348_v63  ;;  %v7699_v63 = vld [vmem:[#allocation28_spill] sm:$0xff] }
 0x1d4   :  { %v2140_v10 = vmax.f32 %v2132_v55, 0.0  ;;  %v349_v15 = vadd.f32 %v6779_v49, %v141_v14  ;;  %v718_v49 = vmul.f32 %v7698_v11, %v6847_v12  ;;  %v719_v8 = vmul.f32 %v7699_v63, %v6847_v12 }
 0x1d5   :  { %v637_v5 = vadd.f32 %v6819_v33, %v437_v4  ;;  %v7700_v33 = vld [vmem:[#allocation19_spill] sm:$0xff] }
 0x1d6   :  { %4472 = vmatprep.mubr.msk.f32.mxu0 %vm1858_vm1, %v2140_v10 }
 0x1d7   :  { %v1732_v48 = vpop.permute.xlu1 %1731  ;;  %v1481_v16 = vpop.permute.xlu0 %1480 }
 0x1d8   :  { %v1748_v7 = vadd.f32 %v1732_v48, %v1580_v61  ;;  %v430_v61 = vmul.f32 %v7696_v18, %v6827_v51  ;;  %v1503_v56 = vadd.f32 %v1481_v16, %v1303_v40  ;;  %v1591_v48 = vadd.f32 %v1583_v41, %v1502_v9 }
 0x1d9   :  { %v726_v41 = vadd.f32 %v718_v49, %v637_v5  ;;  %v142_v40 = vmul.f32 %v7700_v33, %v6812_v6  ;;  %v143_v49 = vmul.f32 %v7673_v31, %v6812_v6  ;;  %v7705_v33 = vld [vmem:[#allocation34_spill] sm:$0xff] }
 0x1da   :  { %v2133_v60 = vadd.f32 %v6617_v25, %v1748_v7  ;;  %v7697_v25 = vld [vmem:[#allocation30_spill] sm:$0xff]  ;;  %v6910_v7 = vstv %s3996_s14  ;;  %v438_v27 = vadd.f32 %v430_v61, %v349_v15  ;;  %v7701_v61 = vld [vmem:[#allocation33_spill] sm:$0xff] }
 0x1db   :  { %v1194_v55 = vpop.permute.xlu1 %1193  ;;  %v620_v20 = vpop.permute.xlu0 %619  ;;  %v1584_v42 = vmul.f32 %v7697_v25, %v6894_v46  ;;  %v926_v15 = vadd.f32 %v6864_v23, %v726_v41  ;;  %v350_v5 = vadd.f32 %v6870_v58, %v142_v40  ;;  %v7703_v23 = vld [vmem:[#allocation36_spill] sm:$0xff]  ;;  %v432_v58 = vmul.f32 %v7675_v43, %v6827_v51 }
 0x1dc   :  { %v2141_v10 = vmax.f32 %v2133_v60, 0.0  ;;  %v638_v62 = vadd.f32 %v6843_v50, %v438_v27  ;;  %v720_v40 = vmul.f32 %v7705_v33, %v6847_v12 }
 0x1dd   :  { %v1592_v14 = vadd.f32 %v1584_v42, %v1503_v56  ;;  %v1007_v56 = vmul.f32 %v7701_v61, %v6862_v17 }
 0x1de   :  { %4473 = vmatmul.mubr.msk.f32.gmra.mrb[6].mxu0 %vm1858_vm1, %v2141_v10  ;;  %v727_v25 = vadd.f32 %v719_v8, %v638_v62  ;;  %v7704_v62 = vld [vmem:[#allocation38_spill] sm:$0xff]  ;;  %v351_v8 = vadd.f32 %v6884_v19, %v143_v49  ;;  %v1585_v19 = vmul.f32 %v7652_v28, %v6894_v46  ;;  %v1586_v49 = vmul.f32 %v7562_v24, %v6894_v46 }
 0x1df   :  { %v622_v1 = vpop.permute.xlu1 %621  ;;  %v1768_v0 = vpop.permute.xlu0 %1767  ;;  %v1015_v27 = vadd.f32 %v1007_v56, %v926_v15  ;;  %v1296_v63 = vmul.f32 %v7704_v62, %v6878_v32  ;;  %v145_v28 = vmul.f32 %v6812_v6, %v7622_v22  ;;  %v434_v24 = vmul.f32 %v6827_v51, %v7624_v36 }
 0x1e0   :  { %v1791_v39 = vadd.f32 %v1768_v0, %v1591_v48  ;;  %v7702_v48 = vld [vmem:[#allocation24_spill] sm:$0xff]  ;;  %v927_v11 = vadd.f32 %v907_v53, %v727_v25  ;;  %v440_v61 = vadd.f32 %v432_v58, %v351_v8  ;;  %v722_v36 = vmul.f32 %v6847_v12, %v7619_v54 }
 0x1e1   :  { %v431_v0 = vmul.f32 %v7702_v48, %v6827_v51 }
 0x1e2   :  { %v2296_v16 = vadd.f32 %v6910_v7, %v1791_v39  ;;  %v1008_v39 = vmul.f32 %v7703_v23, %v6862_v17 }
 0x1e3   :  { %v1770_v60 = vpop.permute.xlu1 %1769  ;;  %v1196_v30 = vpop.permute.xlu0 %1195 }
 0x1e4   :  { %v1792_v9 = vadd.f32 %v1770_v60, %v1592_v14  ;;  %v2304_v10 = vmax.f32 %v2296_v16, 0.0  ;;  %v1215_v60 = vadd.f32 %v1194_v55, %v1015_v27  ;;  %v1016_v53 = vadd.f32 %v1008_v39, %v927_v11 }
 0x1e5   :  { %v1009_v11 = vmul.f32 %v5479_v13, %v6862_v17  ;;  %v1010_v13 = vmul.f32 %v5500_v35, %v6862_v17 }
 0x1e6   :  { %v2297_v18 = vadd.f32 %v6910_v7, %v1792_v9  ;;  %4497 = vmatprep.mubr.msk.f32.mxu0 %vm1858_vm1, %v2304_v10  ;;  %v439_v9 = vadd.f32 %v431_v0, %v350_v5  ;;  %v1216_v10 = vadd.f32 %v1196_v30, %v1016_v53  ;;  %v1304_v15 = vadd.f32 %v1296_v63, %v1215_v60 }
 0x1e7   :  { %v909_v50 = vpop.permute.xlu1 %908  ;;  %v335_v4 = vpop.permute.xlu0 %334  ;;  %v144_v0 = vmul.f32 %v6812_v6, %v7613_v3 }
 0x1e8   :  { %v2305_v42 = vmax.f32 %v2297_v18, 0.0  ;;  %v639_v41 = vadd.f32 %v620_v20, %v439_v9  ;;  %v1297_v18 = vmul.f32 %v5495_v29, %v6878_v32  ;;  %v721_v20 = vmul.f32 %v5450_v59, %v6847_v12 }
 0x1e9   :  { %v352_v59 = vadd.f32 %v335_v4, %v144_v0 }
 0x1ea   :  { %4498 = vmatmul.mubr.msk.f32.vlgmr.msra.gmra.mrb[0].mxu0 %vm1858_vm1, %v2305_v42  ;;  %v640_v42 = vadd.f32 %v622_v1, %v440_v61  ;;  %v728_v43 = vadd.f32 %v720_v40, %v639_v41  ;;  %v1305_v48 = vadd.f32 %v1297_v18, %v1216_v10 }
 0x1eb   :  { %v337_v14 = vpop.permute.xlu1 %336  ;;  %v1483_v16 = vpop.permute.xlu0 %1482 }
 0x1ec   :  { %v1504_v56 = vadd.f32 %v1483_v16, %v1304_v15  ;;  %v928_v5 = vadd.f32 %v909_v50, %v728_v43  ;;  %v729_v39 = vadd.f32 %v721_v20, %v640_v42  ;;  %v433_v16 = vmul.f32 %v6827_v51, %v7615_v21 }
 0x1ed   :  { %v353_v63 = vadd.f32 %v337_v14, %v145_v28  ;;  %v1298_v21 = vmul.f32 %v5529_v57, %v6878_v32  ;;  %v1299_v57 = vmul.f32 %v7557_v45, %v6878_v32  ;;  %v723_v15 = vmul.f32 %v6847_v12, %v7631_v26 }
 0x1ee   :  { %v1593_v23 = vadd.f32 %v1585_v19, %v1504_v56  ;;  %v1017_v60 = vadd.f32 %v1009_v11, %v928_v5  ;;  %v441_v58 = vadd.f32 %v433_v16, %v352_v59  ;;  %v1587_v56 = vmul.f32 %v7609_v47, %v6894_v46 }
 0x1ef   :  { %v1485_v31 = vpop.permute.xlu1 %1484  ;;  %v911_v55 = vpop.permute.xlu0 %910  ;;  %v442_v35 = vadd.f32 %v434_v24, %v353_v63  ;;  %v1011_v20 = vmul.f32 %v6862_v17, %v7602_v2  ;;  %v1588_v26 = vmul.f32 %v7614_v38, %v6894_v46  ;;  %v1012_v5 = vmul.f32 %v6862_v17, %v7682_v37 }
 0x1f0   :  { %v1505_v29 = vadd.f32 %v1485_v31, %v1305_v48  ;;  %v929_v50 = vadd.f32 %v911_v55, %v729_v39  ;;  %v1301_v2 = vmul.f32 %v6878_v32, %v7686_v52  ;;  %v1589_v52 = vmul.f32 %v6894_v46, %v7667_v44  ;;  %v2487_v44 = vld [vmem:[%s7372_s5] sm:$0xff] }
 0x1f2   :  { %v1594_v62 = vadd.f32 %v1586_v49, %v1505_v29  ;;  %v1018_v41 = vadd.f32 %v1010_v13, %v929_v50  ;;  %v1590_v13 = vmul.f32 %v6894_v46, %v7689_v34  ;;  %v2488_v46 = vld [vmem:[%s7372_s5 + $0x8] sm:$0xff] }
 0x1f3   :  { %v1198_v25 = vpop.permute.xlu1 %1197  ;;  %v624_v30 = vpop.permute.xlu0 %623 }
 0x1f4   :  { %v1217_v8 = vadd.f32 %v1198_v25, %v1017_v60  ;;  %v641_v10 = vadd.f32 %v624_v30, %v441_v58 }
 0x1f6   :  { %v1306_v40 = vadd.f32 %v1298_v21, %v1217_v8  ;;  %v730_v25 = vadd.f32 %v722_v36, %v641_v10  ;;  %v4829_v10 = vpack.c.bf16 %v2488_v46, %v2487_v44 }
 0x1f7   :  { %v626_v1 = vpop.permute.xlu1 %625  ;;  %v1772_v27 = vpop.permute.xlu0 %1771 }
 0x1f8   :  { %v1793_v3 = vadd.f32 %v1772_v27, %v1593_v23  ;;  %v642_v55 = vadd.f32 %v626_v1, %v442_v35  ;;  %v7706_v27 = vld [vmem:[#allocation45_spill] sm:$0xff]  ;;  %4830 = vmatprep.subr.bf16.mxu1 %v4829_v10  ;;  %v4017_v35 = vld [vmem:[%s7371_s4] ss:$0 sm:$0xff] }
 0x1f9   :  { %v1300_v38 = vmul.f32 %v6878_v32, %v7706_v27  ;;  %4832 = vmatpush3.bf16.msra.mxu1 %v4829_v10 }
 0x1fa   :  { %v2298_v22 = vadd.f32 %v6910_v7, %v1793_v3  ;;  %v731_v48 = vadd.f32 %v723_v15, %v642_v55 }
 0x1fb   :  { %v1774_v6 = vpop.permute.xlu1 %1773  ;;  %v1200_v4 = vpop.permute.xlu0 %1199 }
 0x1fc   :  { %v1794_v9 = vadd.f32 %v1774_v6, %v1594_v62  ;;  %v2306_v53 = vmax.f32 %v2298_v22, 0.0  ;;  %v1218_v33 = vadd.f32 %v1200_v4, %v1018_v41 }
 0x1fe   :  { %v2299_v31 = vadd.f32 %v6910_v7, %v1794_v9  ;;  %4500 = vmatprep.mubr.msk.f32.mxu0 %vm1858_vm1, %v2306_v53  ;;  %v1307_v54 = vadd.f32 %v1299_v57, %v1218_v33 }
 0x1ff   :  { %v1487_v14 = vpop.permute.xlu1 %1486  ;;  %v913_v18 = vpop.permute.xlu0 %912 }
 0x200   :  { %v2307_v51 = vmax.f32 %v2299_v31, 0.0  ;;  %v1506_v61 = vadd.f32 %v1487_v14, %v1306_v40  ;;  %v930_v43 = vadd.f32 %v913_v18, %v730_v25 }
 0x202   :  { %4501 = vmatmul.mubr.msk.f32.gmra.mrb[2].mxu0 %vm1858_vm1, %v2307_v51  ;;  %v1595_v30 = vadd.f32 %v1587_v56, %v1506_v61  ;;  %v1019_v11 = vadd.f32 %v1011_v20, %v930_v43 }
 0x203   :  { %v1489_v19 = vpop.permute.xlu1 %1488  ;;  %v915_v42 = vpop.permute.xlu0 %914 }
 0x204   :  { %v1507_v45 = vadd.f32 %v1489_v19, %v1307_v54  ;;  %v931_v12 = vadd.f32 %v915_v42, %v731_v48 }
 0x206   :  { %v1596_v28 = vadd.f32 %v1588_v26, %v1507_v45  ;;  %v1020_v39 = vadd.f32 %v1012_v5, %v931_v12 }
 0x207   :  { %v1776_v0 = vpop.permute.xlu1 %1775  ;;  %v1202_v29 = vpop.permute.xlu0 %1201 }
 0x208   :  { %v1795_v47 = vadd.f32 %v1776_v0, %v1595_v30  ;;  %v1219_v1 = vadd.f32 %v1202_v29, %v1019_v11  ;;  %v4018_v29 = vld [vmem:[%s7373_s6] ss:$0 sm:$0xff] }
 0x20a   :  { %v2300_v49 = vadd.f32 %v6910_v7, %v1795_v47  ;;  %v1308_v62 = vadd.f32 %v1300_v38, %v1219_v1  ;;  %v2635_v47 = vld [vmem:[%s7374_s7] sm:$0xff] }
 0x20b   :  { %v1778_v23 = vpop.permute.xlu1 %1777  ;;  %v1204_v3 = vpop.permute.xlu0 %1203 }
 0x20c   :  { %v2308_v59 = vmax.f32 %v2300_v49, 0.0  ;;  %v1796_v16 = vadd.f32 %v1778_v23, %v1596_v28  ;;  %v1220_v50 = vadd.f32 %v1204_v3, %v1020_v39 }
 0x20e   :  { %v2301_v37 = vadd.f32 %v6910_v7, %v1796_v16  ;;  %4503 = vmatprep.mubr.msk.f32.mxu0 %vm1858_vm1, %v2308_v59  ;;  %v1309_v60 = vadd.f32 %v1301_v2, %v1220_v50 }
 0x20f   :  { %v1493_v17 = vpop.permute.xlu1 %1492  ;;  %v1491_v24 = vpop.permute.xlu0 %1490 }
 0x210   :  { %v2309_v63 = vmax.f32 %v2301_v37, 0.0  ;;  %v1509_v32 = vadd.f32 %v1493_v17, %v1309_v60  ;;  %v1508_v22 = vadd.f32 %v1491_v24, %v1308_v62 }
 0x212   :  { %4504 = vmatmul.mubr.msk.f32.gmra.mrb[4].mxu0 %vm1858_vm1, %v2309_v63  ;;  %v1598_v8 = vadd.f32 %v1590_v13, %v1509_v32  ;;  %v1597_v9 = vadd.f32 %v1589_v52, %v1508_v22 }
 0x213   :  { %v1782_v6 = vpop.permute.xlu1 %1781  ;;  %v1780_v4 = vpop.permute.xlu0 %1779 }
 0x214   :  { %v1798_v21 = vadd.f32 %v1782_v6, %v1598_v8  ;;  %v1797_v58 = vadd.f32 %v1780_v4, %v1597_v9  ;;  %v4027_v8 = vld [vmem:[%s7375_s8] ss:$0 sm:$0xff] }
 0x216   :  { %v2303_v53 = vadd.f32 %v6910_v7, %v1798_v21  ;;  %v2302_v31 = vadd.f32 %v6910_v7, %v1797_v58  ;;  %v2489_v7 = vld [vmem:[%s7372_s5 + $0x10] sm:$0xff] }
 0x217   :  { %4513 = vmatprep.subr.mxu1 %v2489_v7 }
 0x218   :  { %v2311_v34 = vmax.f32 %v2303_v53, 0.0  ;;  %v2310_v41 = vmax.f32 %v2302_v31, 0.0  ;;  %4514 = vmatpush3.msra.mxu1 %v2489_v7 }
 0x219   :  { %4527 = vmatprep.subr.mxu1 %v2635_v47 }
 0x21a   :  { %4506 = vmatprep.mubr.msk.f32.mxu0 %vm1858_vm1, %v2310_v41 }
 0x21b   :  { %4507 = vmatmul.mubr.msk.f32.gmra.mrb[6].mxu0 %vm1858_vm1, %v2311_v34 }
 0x2bd   :  { %v4499_v14 = vpop.f32.mrb[0].mxu0 }
 0x2be   :  { %v2472_v36 = vadd.f32 %v4499_v14, %v4017_v35  ;;  %v2417_v51 = vpop.f32.mrb[1].mxu0 }
 0x2bf   :  { %v2471_v33 = vadd.f32 %v4017_v35, %v2417_v51 }
 0x2c0   :  { %v2480_v18 = vmax.f32 %v2472_v36, 0.0 }
 0x2c1   :  { %v2479_v40 = vmax.f32 %v2471_v33, 0.0 }
 0x2c3   :  { %4515 = vmatprep.mubr.msk.f32.mxu1 %vm2497_vm2, %v2479_v40 }
 0x2c4   :  { %4516 = vmatmul.mubr.msk.f32.vlgmr.msra.gmra.mrb[0].mxu1 %vm2497_vm2, %v2480_v18 }
 0x2c5   :  { %4528 = vmatpush3.msra.mxu1 %v2635_v47  ;;  %v2935_v47 = vld [vmem:[%s7376_s9 + $0x8] sm:$0xff] }
 0x2d5   :  { %v4502_v57 = vpop.f32.mrb[2].mxu0 }
 0x2d6   :  { %v2474_v55 = vadd.f32 %v4502_v57, %v4017_v35  ;;  %v2427_v15 = vpop.f32.mrb[3].mxu0 }
 0x2d7   :  { %v2473_v61 = vadd.f32 %v4017_v35, %v2427_v15 }
 0x2d8   :  { %v2482_v25 = vmax.f32 %v2474_v55, 0.0 }
 0x2d9   :  { %v2481_v56 = vmax.f32 %v2473_v61, 0.0 }
 0x2db   :  { %4518 = vmatprep.mubr.msk.f32.mxu1 %vm2497_vm2, %v2481_v56 }
 0x2dc   :  { %4519 = vmatmul.mubr.msk.f32.gmra.mrb[2].mxu1 %vm2497_vm2, %v2482_v25 }
 0x2e5   :  { %v4505_v19 = vpop.f32.mrb[4].mxu0 }
 0x2e6   :  { %v2476_v54 = vadd.f32 %v4505_v19, %v4017_v35  ;;  %v2437_v42 = vpop.f32.mrb[5].mxu0 }
 0x2e7   :  { %v2475_v43 = vadd.f32 %v4017_v35, %v2437_v42 }
 0x2e8   :  { %v2484_v20 = vmax.f32 %v2476_v54, 0.0 }
 0x2e9   :  { %v2483_v48 = vmax.f32 %v2475_v43, 0.0 }
 0x2eb   :  { %4521 = vmatprep.mubr.msk.f32.mxu1 %vm2497_vm2, %v2483_v48 }
 0x2ec   :  { %4522 = vmatmul.mubr.msk.f32.gmra.mrb[4].mxu1 %vm2497_vm2, %v2484_v20 }
 0x2ee   :  { %v4508_v45 = vpop.f32.mrb[6].mxu0 }
 0x2ef   :  { %v2478_v30 = vadd.f32 %v4508_v45, %v4017_v35  ;;  %v2447_v26 = vpop.f32.mrb[7].mxu0 }
 0x2f0   :  { %v2477_v12 = vadd.f32 %v4017_v35, %v2447_v26 }
 0x2f1   :  { %v2486_v5 = vmax.f32 %v2478_v30, 0.0 }
 0x2f2   :  { %v2485_v0 = vmax.f32 %v2477_v12, 0.0 }
 0x2f4   :  { %4524 = vmatprep.mubr.msk.f32.mxu1 %vm2497_vm2, %v2485_v0 }
 0x2f5   :  { %4525 = vmatmul.mubr.msk.f32.gmra.mrb[6].mxu1 %vm2497_vm2, %v2486_v5 }
 0x397   :  { %v4517_v11 = vpop.f32.mrb[0].mxu1 }
 0x398   :  { %v7023_v49 = vadd.f32 %v4517_v11, %v4018_v29  ;;  %v2588_v28 = vpop.f32.mrb[1].mxu1 }
 0x399   :  { %v7025_v1 = vadd.f32 %v4018_v29, %v2588_v28 }
 0x39a   :  { %v2628_v39 = vmax.f32 %v7023_v49, 0.0 }
 0x39b   :  { %v2627_v23 = vmax.f32 %v7025_v1, 0.0 }
 0x39d   :  { %4529 = vmatprep.mubr.msk.f32.mxu1 %vm2643_vm3, %v2627_v23 }
 0x39e   :  { %4530 = vmatmul.mubr.msk.f32.vlgmr.msra.gmra.mrb[8].mxu1 %vm2643_vm3, %v2628_v39 }
 0x3af   :  { %v4520_v2 = vpop.f32.mrb[2].mxu1 }
 0x3b0   :  { %v7035_v27 = vadd.f32 %v4520_v2, %v4018_v29  ;;  %v2598_v38 = vpop.f32.mrb[3].mxu1 }
 0x3b1   :  { %v7037_v59 = vadd.f32 %v4018_v29, %v2598_v38 }
 0x3b2   :  { %v2630_v3 = vmax.f32 %v7035_v27, 0.0 }
 0x3b3   :  { %v2629_v16 = vmax.f32 %v7037_v59, 0.0 }
 0x3b5   :  { %4532 = vmatprep.mubr.msk.f32.mxu1 %vm2643_vm3, %v2629_v16 }
 0x3b6   :  { %4533 = vmatmul.mubr.msk.f32.gmra.mrb[10].mxu1 %vm2643_vm3, %v2630_v3 }
 0x3bf   :  { %v4523_v50 = vpop.f32.mrb[4].mxu1 }
 0x3c0   :  { %v7047_v37 = vadd.f32 %v4523_v50, %v4018_v29  ;;  %v2608_v17 = vpop.f32.mrb[5].mxu1  ;;  %v2937_v50 = vld [vmem:[%s7376_s9 + $0x18] sm:$0xff] }
 0x3c1   :  { %v7049_v60 = vadd.f32 %v4018_v29, %v2608_v17 }
 0x3c2   :  { %v2632_v13 = vmax.f32 %v7047_v37, 0.0 }
 0x3c3   :  { %v2631_v62 = vmax.f32 %v7049_v60, 0.0 }
 0x3c5   :  { %4535 = vmatprep.mubr.msk.f32.mxu1 %vm2643_vm3, %v2631_v62 }
 0x3c6   :  { %4536 = vmatmul.mubr.msk.f32.gmra.mrb[12].mxu1 %vm2643_vm3, %v2632_v13 }
 0x3c8   :  { %v4526_v52 = vpop.f32.mrb[6].mxu1 }
 0x3c9   :  { %v7059_v63 = vadd.f32 %v4526_v52, %v4018_v29  ;;  %v2618_v24 = vpop.f32.mrb[7].mxu1  ;;  %v2936_v52 = vld [vmem:[%s7376_s9 + $0x10] sm:$0xff] }
 0x3ca   :  { %v7061_v32 = vadd.f32 %v4018_v29, %v2618_v24  ;;  %v2934_v29 = vld [vmem:[%s7376_s9] sm:$0xff] }
 0x3cb   :  { %v2634_v6 = vmax.f32 %v7059_v63, 0.0 }
 0x3cc   :  { %v2633_v22 = vmax.f32 %v7061_v32, 0.0  ;;  %v3212_v32 = vld [vmem:[%s7377_s10] sm:$0x1f] }
 0x3ce   :  { %4538 = vmatprep.mubr.msk.f32.mxu1 %vm2643_vm3, %v2633_v22 }
 0x3cf   :  { %4539 = vmatmul.mubr.msk.f32.gmra.mrb[14].mxu1 %vm2643_vm3, %v2634_v6 }
 0x471   :  { %v4531_v9 = vpop.f32.mrb[8].mxu1 }
 0x472   :  { %v2740_v4 = vadd.f32 %v4531_v9, %v4027_v8  ;;  %v2734_v21 = vpop.f32.mrb[9].mxu1 }
 0x473   :  { %v2735_v58 = vadd.f32 %v4027_v8, %v2734_v21 }
 0x475   :  { %v7074_v53 = vpack.i.bf16 %v2740_v4, %v2735_v58  ;;  %4557 = vmatprep.mubr.msk.f32.mxu1 %vm2643_vm3, %v2735_v58 }
 0x477   :  { %5019 = vrot.lane.b32.xlu0 %v7074_v53, %s5121_s25 }
 0x489   :  { %v4534_v31 = vpop.f32.mrb[10].mxu1 }
 0x48a   :  { %v2750_v34 = vadd.f32 %v4534_v31, %v4027_v8  ;;  %v2744_v41 = vpop.f32.mrb[11].mxu1 }
 0x48b   :  { %v2745_v44 = vadd.f32 %v4027_v8, %v2744_v41  ;;  %v2938_v41 = vld [vmem:[%s7376_s9 + $0x20] sm:$0xff] }
 0x48d   :  { %v7078_v46 = vpack.i.bf16 %v2750_v34, %v2745_v44 }
 0x48f   :  { %5024 = vrot.lane.b32.xlu1 %v7078_v46, %s5121_s25 }
 0x499   :  { %v4537_v10 = vpop.f32.mrb[12].mxu1 }
 0x49a   :  { %v2760_v7 = vadd.f32 %v4537_v10, %v4027_v8  ;;  %v2754_v35 = vpop.f32.mrb[13].mxu1 }
 0x49b   :  { %v2755_v14 = vadd.f32 %v4027_v8, %v2754_v35 }
 0x49d   :  { %v7081_v36 = vpack.i.bf16 %v2760_v7, %v2755_v14 }
 0x49f   :  { %5029 = vrot.lane.b32.xlu0 %v7081_v36, %s5121_s25 }
 0x4a2   :  { %v4540_v51 = vpop.f32.mrb[14].mxu1 }
 0x4a3   :  { %v2770_v33 = vadd.f32 %v4540_v51, %v4027_v8  ;;  %v2764_v40 = vpop.f32.mrb[15].mxu1 }
 0x4a4   :  { %v2765_v18 = vadd.f32 %v4027_v8, %v2764_v40  ;;  %v2941_v40 = vld [vmem:[%s7376_s9 + $0x38] sm:$0x3f] }
 0x4a6   :  { %v7084_v57 = vpack.i.bf16 %v2770_v33, %v2765_v18 }
 0x4a8   :  { %5034 = vrot.lane.b32.xlu1 %v7084_v57, %s5121_s25 }
 0x4e9   :  { %v5020_v55 = vpop.permute.xlu0 %5019 }
 0x4ea   :  { %v5022_v15 = vunpack.i.h.bf16 %v5020_v55  ;;  %v5021_v61 = vunpack.i.l.bf16 %v5020_v55 }
 0x4ec   :  { %v4833_v25 = vpack.c.bf16 %v5022_v15, %v5021_v61 }
 0x4ee   :  { %4835 = vmatprep.subr.msk.bf16.mxu1 %vm7089_vm4, %v4833_v25 }
 0x4ef   :  { %4838 = vmatpush3.bf16.xpose.msk.msra.mxu1 %vm7089_vm4, %v4833_v25 }
 0x501   :  { %v5025_v19 = vpop.permute.xlu1 %5024 }
 0x502   :  { %v5027_v54 = vunpack.i.h.bf16 %v5025_v19  ;;  %v5026_v42 = vunpack.i.l.bf16 %v5025_v19 }
 0x504   :  { %v4839_v43 = vpack.c.bf16 %v5027_v54, %v5026_v42 }
 0x506   :  { %4841 = vmatprep.subr.msk.bf16.mxu1 %vm7089_vm4, %v4839_v43 }
 0x507   :  { %4844 = vmatpush3.bf16.xpose.msk.msra.mxu1 %vm7089_vm4, %v4839_v43 }
 0x511   :  { %v5030_v48 = vpop.permute.xlu0 %5029 }
 0x512   :  { %v5032_v20 = vunpack.i.h.bf16 %v5030_v48  ;;  %v5031_v45 = vunpack.i.l.bf16 %v5030_v48 }
 0x514   :  { %v4845_v30 = vpack.c.bf16 %v5032_v20, %v5031_v45 }
 0x516   :  { %4847 = vmatprep.subr.msk.bf16.mxu1 %vm7089_vm4, %v4845_v30 }
 0x517   :  { %4850 = vmatpush3.bf16.xpose.msk.msra.mxu1 %vm7089_vm4, %v4845_v30 }
 0x51a   :  { %v5035_v26 = vpop.permute.xlu1 %5034 }
 0x51b   :  { %v5037_v12 = vunpack.i.h.bf16 %v5035_v26  ;;  %v5036_v0 = vunpack.i.l.bf16 %v5035_v26 }
 0x51d   :  { %v4851_v5 = vpack.c.bf16 %v5037_v12, %v5036_v0 }
 0x51f   :  { %4853 = vmatprep.subr.msk.bf16.mxu1 %vm7089_vm4, %v4851_v5 }
 0x520   :  { %4856 = vmatpush3.bf16.xpose.msk.msra.mxu1 %vm7089_vm4, %v4851_v5 }
 0x527   :  { %4558 = vmatmul.mubr.msk.f32.vlgmr.msra.gmra.mrb[16].mxu1 %vm2643_vm3, %v2740_v4 }
 0x528   :  { %4560 = vmatprep.mubr.msk.f32.mxu1 %vm2643_vm3, %v2745_v44 }
 0x52b   :  { %4561 = vmatmul.mubr.msk.f32.gmra.mrb[18].mxu1 %vm2643_vm3, %v2750_v34  ;;  %v2939_v34 = vld [vmem:[%s7376_s9 + $0x28] sm:$0xff] }
 0x52c   :  { %4563 = vmatprep.mubr.msk.f32.mxu1 %vm2643_vm3, %v2755_v14 }
 0x52f   :  { %4564 = vmatmul.mubr.msk.f32.gmra.mrb[20].mxu1 %vm2643_vm3, %v2760_v7 }
 0x530   :  { %4566 = vmatprep.mubr.msk.f32.mxu1 %vm2643_vm3, %v2765_v18  ;;  %v2940_v18 = vld [vmem:[%s7376_s9 + $0x30] sm:$0xff]  ;;  %s5122_s9 = smov 112  }
 0x533   :  { %4567 = vmatmul.mubr.msk.f32.gmra.mrb[22].mxu1 %vm2643_vm3, %v2770_v33 }
 0x5fa   :  { %v4559_v11 = vpop.f32.mrb[16].mxu1 }
 0x5fb   :  { %v2943_v28 = vmul.f32 %v4559_v11, %v2935_v47  ;;  %v2895_v2 = vpop.f32.mrb[17].mxu1 }
 0x5fc   :  { %v2942_v38 = vmul.f32 %v2934_v29, %v2895_v2 }
 0x5fd   :  { %v2951_v17 = vmul.f32 0.35355338, %v2943_v28 }
 0x5fe   :  { %v2950_v24 = vmul.f32 0.35355338, %v2942_v38  ;;  %v4562_v8 = vpop.f32.mrb[18].mxu1 }
 0x5ff   :  { %v2945_v9 = vmul.f32 %v4562_v8, %v2937_v50  ;;  %v2905_v4 = vpop.f32.mrb[19].mxu1  ;;  %v2962_v21 = vsel %vm2958_vm5, %v2951_v17, -inf }
 0x600   :  { %v2944_v58 = vmul.f32 %v2936_v52, %v2905_v4  ;;  %2963 = vmax.xlane.f32.xlu1 %v2962_v21  ;;  %v2959_v31 = vsel %vm2958_vm5, %v2950_v24, -inf }
 0x601   :  { %2960 = vmax.xlane.f32.xlu0 %v2959_v31  ;;  %v2953_v7 = vmul.f32 0.35355338, %v2945_v9 }
 0x602   :  { %v2952_v44 = vmul.f32 0.35355338, %v2944_v58  ;;  %v4565_v10 = vpop.f32.mrb[20].mxu1 }
 0x603   :  { %v2915_v35 = vpop.f32.mrb[21].mxu1  ;;  %v2947_v14 = vmul.f32 %v4565_v10, %v2939_v34  ;;  %v2968_v56 = vsel %vm2958_vm5, %v2953_v7, -inf }
 0x604   :  { %v2946_v51 = vmul.f32 %v2938_v41, %v2915_v35  ;;  %v2965_v33 = vsel %vm2958_vm5, %v2952_v44, -inf }
 0x605   :  { %2966 = vmax.xlane.f32.xlu0 %v2965_v33  ;;  %v2955_v25 = vmul.f32 0.35355338, %v2947_v14 }
 0x606   :  { %v2954_v55 = vmul.f32 0.35355338, %v2946_v51  ;;  %v4568_v15 = vpop.f32.mrb[22].mxu1 }
 0x607   :  { %v2925_v61 = vpop.f32.mrb[23].mxu1  ;;  %v2949_v19 = vmul.f32 %v4568_v15, %v2941_v40  ;;  %v2974_v20 = vsel %vm2958_vm5, %v2955_v25, -inf }
 0x608   :  { %v2948_v54 = vmul.f32 %v2940_v18, %v2925_v61  ;;  %v2971_v42 = vsel %vm2958_vm5, %v2954_v55, -inf }
 0x609   :  { %2969 = vmax.xlane.f32.xlu0 %v2968_v56  ;;  %2972 = vmax.xlane.f32.xlu1 %v2971_v42  ;;  %v2957_v48 = vmul.f32 0.35355338, %v2949_v19 }
 0x60a   :  { %v2956_v43 = vmul.f32 0.35355338, %v2948_v54 }
 0x60b   :  { %v2981_v30 = vsel %vm2980_vm6, %v2957_v48, -inf }
 0x60c   :  { %v2977_v45 = vsel %vm2958_vm5, %v2956_v43, -inf }
 0x60d   :  { %2975 = vmax.xlane.f32.xlu0 %v2974_v20  ;;  %2978 = vmax.xlane.f32.xlu1 %v2977_v45 }
 0x611   :  { %2982 = vmax.xlane.f32.xlu0 %v2981_v30 }
 0x61e   :  { %5039 = vrot.lane.b32.xlu1 %v7074_v53, %s5122_s9 }
 0x68d   :  { %v2964_v26 = vpop.xlane.xlu1 %2963 }
 0x68e   :  { %v2985_v12 = vsub.f32 %v2951_v17, %v2964_v26  ;;  %v2961_v0 = vpop.xlane.xlu0 %2960 }
 0x68f   :  { %v2984_v5 = vsub.f32 %v2950_v24, %v2961_v0 }
 0x690   :  { %v2994_v47 = vmul.f32 1.442695, %v2985_v12 }
 0x691   :  { %v2992_v29 = vmul.f32 1.442695, %v2984_v5 }
 0x692   :  { %5058 = vpow2.f32 %v2994_v47  ;;  %v2967_v11 = vpop.xlane.xlu0 %2966 }
 0x693   :  { %5060 = vpow2.f32 %v2992_v29  ;;  %v2986_v28 = vsub.f32 %v2952_v44, %v2967_v11 }
 0x695   :  { %v2996_v2 = vmul.f32 1.442695, %v2986_v28 }
 0x696   :  { %v2970_v38 = vpop.xlane.xlu0 %2969  ;;  %v2973_v50 = vpop.xlane.xlu1 %2972 }
 0x697   :  { %5062 = vpow2.f32 %v2996_v2  ;;  %v2987_v52 = vsub.f32 %v2953_v7, %v2970_v38  ;;  %v2988_v8 = vsub.f32 %v2954_v55, %v2973_v50 }
 0x699   :  { %v2998_v9 = vmul.f32 1.442695, %v2987_v52  ;;  %v3000_v4 = vmul.f32 1.442695, %v2988_v8 }
 0x69a   :  { %v2976_v21 = vpop.xlane.xlu0 %2975  ;;  %v2979_v53 = vpop.xlane.xlu1 %2978 }
 0x69b   :  { %5064 = vpow2.f32 %v2998_v9  ;;  %v2989_v17 = vsub.f32 %v2955_v25, %v2976_v21  ;;  %v2990_v34 = vsub.f32 %v2956_v43, %v2979_v53 }
 0x69c   :  { %v7150_v58 = vpop.eup %5058  ;;  %5066 = vpow2.f32 %v3000_v4 }
 0x69d   :  { %v5061_v24 = vpop.eup %5060  ;;  %v3002_v31 = vmul.f32 1.442695, %v2989_v17  ;;  %v3011_v41 = vsel %vm2958_vm5, %v7150_v58, 0.0  ;;  %v3004_v40 = vmul.f32 1.442695, %v2990_v34 }
 0x69e   :  { %3012 = vadd.xlane.f32.xlu0 %v3011_v41  ;;  %v2983_v44 = vpop.xlane.xlu0 %2982  ;;  %v5040_v10 = vpop.permute.xlu1 %5039  ;;  %v3008_v7 = vsel %vm2958_vm5, %v5061_v24, 0.0 }
 0x69f   :  { %5068 = vpow2.f32 %v3002_v31  ;;  %v2991_v35 = vsub.f32 %v2957_v48, %v2983_v44  ;;  %v5042_v14 = vunpack.i.h.bf16 %v5040_v10  ;;  %v5041_v51 = vunpack.i.l.bf16 %v5040_v10  ;;  %3009 = vadd.xlane.f32.xlu1 %v3008_v7 }
 0x6a1   :  { %v7155_v33 = vpop.eup %5062  ;;  %v3006_v18 = vmul.f32 1.442695, %v2991_v35  ;;  %v4857_v55 = vpack.c.bf16 %v5042_v14, %v5041_v51 }
 0x6a2   :  { %v3014_v15 = vsel %vm2958_vm5, %v7155_v33, 0.0 }
 0x6a3   :  { %5070 = vpow2.f32 %v3006_v18  ;;  %3015 = vadd.xlane.f32.xlu1 %v3014_v15  ;;  %4858 = vmatprep.subr.bf16.mxu1 %v4857_v55  ;;  %v5124_v15 = vmov 0.0|0.0  }
 0x6a4   :  { %4860 = vmatpush3.bf16.msra.mxu1 %v4857_v55  ;;  %5072 = vpow2.f32 %v3004_v40  ;;  %4901 = vmatprep.subr.bf16.mxu0 %v5124_v15 }
 0x6a5   :  { %v7159_v61 = vpop.eup %5064 }
 0x6a6   :  { %v7161_v56 = vpop.eup %5066  ;;  %v3017_v25 = vsel %vm2958_vm5, %v7159_v61, 0.0 }
 0x6a7   :  { %3018 = vadd.xlane.f32.xlu0 %v3017_v25  ;;  %v3020_v19 = vsel %vm2958_vm5, %v7161_v56, 0.0 }
 0x6a8   :  { %3021 = vadd.xlane.f32.xlu1 %v3020_v19 }
 0x6a9   :  { %v7167_v54 = vpop.eup %5068 }
 0x6aa   :  { %v3023_v42 = vsel %vm2958_vm5, %v7167_v54, 0.0 }
 0x6ab   :  { %3024 = vadd.xlane.f32.xlu0 %v3023_v42 }
 0x6ad   :  { %v7171_v43 = vpop.eup %5070 }
 0x6ae   :  { %v3029_v48 = vsel %vm2980_vm6, %v7171_v43, 0.0  ;;  %v7175_v20 = vpop.eup %5072 }
 0x6af   :  { %3030 = vadd.xlane.f32.xlu0 %v3029_v48  ;;  %v3026_v45 = vsel %vm2958_vm5, %v7175_v20, 0.0 }
 0x6b3   :  { %3027 = vadd.xlane.f32.xlu0 %v3026_v45 }
 0x6b9   :  { %5049 = vrot.lane.b32.xlu1 %v7081_v36, %s5122_s9 }
 0x6bd   :  { %5054 = vrot.lane.b32.xlu1 %v7084_v57, %s5122_s9 }
 0x6c9   :  { %5044 = vrot.lane.b32.xlu0 %v7078_v46, %s5122_s9 }
 0x72b   :  { %v3013_v26 = vpop.xlane.xlu0 %3012 }
 0x72c   :  { %v3010_v30 = vpop.xlane.xlu1 %3009 }
 0x72d   :  { %5074 = vrcp.f32 %v3010_v30 }
 0x72e   :  { %5076 = vrcp.f32 %v3013_v26 }
 0x730   :  { %v3016_v12 = vpop.xlane.xlu1 %3015 }
 0x731   :  { %5078 = vrcp.f32 %v3016_v12 }
 0x734   :  { %v3019_v0 = vpop.xlane.xlu0 %3018 }
 0x735   :  { %v3022_v11 = vpop.xlane.xlu1 %3021  ;;  %5080 = vrcp.f32 %v3019_v0 }
 0x736   :  { %5082 = vrcp.f32 %v3022_v11  ;;  %v4069_v11 = vld [vmem:[%s7377_s10 + $0x18] sm:$0x1f] }
 0x737   :  { %v5075_v5 = vpop.eup %5074 }
 0x738   :  { %v3025_v47 = vpop.xlane.xlu0 %3024  ;;  %v3040_v29 = vmul.f32 %v5075_v5, %v5061_v24  ;;  %v5077_v31 = vpop.eup %5076 }
 0x739   :  { %v5050_v2 = vpop.permute.xlu1 %5049  ;;  %5084 = vrcp.f32 %v3025_v47  ;;  %v3041_v41 = vmul.f32 %v5077_v31, %v7150_v58 }
 0x73a   :  { %4585 = vmatprep.mubr.msk.f32.mxu1 %vm2958_vm5, %v3040_v29  ;;  %v5052_v50 = vunpack.i.h.bf16 %v5050_v2  ;;  %v5051_v57 = vunpack.i.l.bf16 %v5050_v2  ;;  %v4072_v29 = vld [vmem:[%s7377_s10 + $0x20] sm:$0x1f]  ;;  %v4075_v2 = vld [vmem:[%s7377_s10 + $0x28] sm:$0x1f] }
 0x73b   :  { %v5079_v34 = vpop.eup %5078 }
 0x73c   :  { %v3031_v28 = vpop.xlane.xlu0 %3030  ;;  %v4865_v4 = vpack.c.bf16 %v5052_v50, %v5051_v57  ;;  %v3042_v10 = vmul.f32 %v5079_v34, %v7155_v33 }
 0x73d   :  { %v5055_v46 = vpop.permute.xlu1 %5054 }
 0x73e   :  { %v5057_v21 = vunpack.i.h.bf16 %v5055_v46  ;;  %v5056_v53 = vunpack.i.l.bf16 %v5055_v46 }
 0x73f   :  { %v5081_v44 = vpop.eup %5080 }
 0x740   :  { %v3028_v36 = vpop.xlane.xlu0 %3027  ;;  %v4869_v24 = vpack.c.bf16 %v5057_v21, %v5056_v53  ;;  %v5083_v7 = vpop.eup %5082  ;;  %v3043_v35 = vmul.f32 %v5081_v44, %v7159_v61  ;;  %v5126_v61 = vmov 0.0  }
 0x741   :  { %5086 = vrcp.f32 %v3028_v36  ;;  %v3044_v51 = vmul.f32 %v5083_v7, %v7161_v56  ;;  %4651 = vmatprep.mubr.msk.f32.mxu0 %vm5125_vm10, %v5126_v61  ;;  %v4081_v36 = vld [vmem:[%s7377_s10 + $0x38] sm:$0x1f]  ;;  %v3211_v7 = vld [vmem:[%s7378_s11] sm:$0x1f] }
 0x742   :  { %5088 = vrcp.f32 %v3031_v28  ;;  %v4078_v28 = vld [vmem:[%s7377_s10 + $0x30] sm:$0x1f] }
 0x743   :  { %v5085_v14 = vpop.eup %5084 }
 0x744   :  { %v5045_v38 = vpop.permute.xlu0 %5044  ;;  %v3045_v58 = vmul.f32 %v5085_v14, %v7167_v54 }
 0x745   :  { %v5047_v52 = vunpack.i.h.bf16 %v5045_v38  ;;  %v5046_v8 = vunpack.i.l.bf16 %v5045_v38 }
 0x747   :  { %v4861_v9 = vpack.c.bf16 %v5047_v52, %v5046_v8 }
 0x749   :  { %4862 = vmatprep.subr.bf16.mxu1 %v4861_v9 }
 0x74a   :  { %4864 = vmatpush3.bf16.msra.mxu1 %v4861_v9 }
 0x74b   :  { %4866 = vmatprep.subr.bf16.mxu1 %v4865_v4  ;;  %v5087_v40 = vpop.eup %5086 }
 0x74c   :  { %v5089_v18 = vpop.eup %5088  ;;  %v3046_v33 = vmul.f32 %v5087_v40, %v7175_v20 }
 0x74d   :  { %v3047_v55 = vmul.f32 %v5089_v18, %v7171_v43 }
 0x74e   :  { %4868 = vmatpush3.bf16.msra.mxu1 %v4865_v4 }
 0x74f   :  { %4871 = vmatprep.subr.msk.bf16.mxu1 %vm7186_vm9, %v4869_v24 }
 0x752   :  { %4874 = vmatpush3.bf16.msk.msra.mxu1 %vm7186_vm9, %v4869_v24 }
 0x753   :  { %4875 = vmatprep.subr.bf16.mxu1 %v5124_v15 }
 0x755   :  { %4586 = vmatmul.mubr.msk.f32.vlgmr.msra.gmra.mrb[24].mxu1 %vm2958_vm5, %v3041_v41 }
 0x756   :  { %4588 = vmatprep.mubr.msk.f32.mxu1 %vm2958_vm5, %v3042_v10 }
 0x759   :  { %4589 = vmatmul.mubr.msk.f32.gmra.mrb[26].mxu1 %vm2958_vm5, %v3043_v35 }
 0x75a   :  { %4591 = vmatprep.mubr.msk.f32.mxu1 %vm2958_vm5, %v3044_v51 }
 0x75d   :  { %4592 = vmatmul.mubr.msk.f32.gmra.mrb[28].mxu1 %vm2958_vm5, %v3045_v58 }
 0x75e   :  { %4594 = vmatprep.mubr.msk.f32.mxu1 %vm2958_vm5, %v3046_v33 }
 0x761   :  { %4595 = vmatmul.mubr.msk.f32.gmra.mrb[30].mxu1 %vm2958_vm5, %v3047_v55 }
 0x762   :  { %4613 = vmatprep.mubr.msk.f32.mxu1 %vm5125_vm10, %v5126_v61 }
 0x828   :  { %v4587_v56 = vpop.f32.mrb[24].mxu1 }
 0x829   :  { %v3170_v25 = vadd.f32 %v4587_v56, %v2628_v39  ;;  %v3164_v19 = vpop.f32.mrb[25].mxu1 }
 0x82a   :  { %v3165_v54 = vadd.f32 %v3164_v19, %v2627_v23 }
 0x82b   :  { %v3204_v42 = vmax.f32 %v3170_v25, 0.0 }
 0x82c   :  { %v3203_v43 = vmax.f32 %v3165_v54, 0.0  ;;  %v4590_v48 = vpop.f32.mrb[26].mxu1 }
 0x82d   :  { %v3180_v20 = vadd.f32 %v4590_v48, %v2630_v3  ;;  %v3174_v45 = vpop.f32.mrb[27].mxu1 }
 0x82e   :  { %v7220_v30 = vpack.c.bf16 %v3204_v42, %v3203_v43  ;;  %v3175_v26 = vadd.f32 %v3174_v45, %v2629_v16 }
 0x82f   :  { %v3206_v12 = vmax.f32 %v3180_v20, 0.0 }
 0x830   :  { %v3205_v0 = vmax.f32 %v3175_v26, 0.0  ;;  %v4593_v49 = vpop.f32.mrb[28].mxu1  ;;  %4877 = vmatpush3.bf16.msra.mxu1 %v7220_v30  ;;  %4903 = vmatpush3.bf16.msra.mxu0 %v7220_v30 }
 0x831   :  { %v3190_v1 = vadd.f32 %v4593_v49, %v2632_v13  ;;  %v3184_v23 = vpop.f32.mrb[29].mxu1  ;;  %4878 = vmatprep.subr.bf16.mxu1 %v5124_v15  ;;  %4904 = vmatprep.subr.bf16.mxu0 %v5124_v15 }
 0x832   :  { %v7230_v39 = vpack.c.bf16 %v3206_v12, %v3205_v0  ;;  %v3185_v27 = vadd.f32 %v3184_v23, %v2631_v62 }
 0x833   :  { %v3208_v59 = vmax.f32 %v3190_v1, 0.0 }
 0x834   :  { %v3207_v16 = vmax.f32 %v3185_v27, 0.0  ;;  %v4596_v3 = vpop.f32.mrb[30].mxu1  ;;  %4880 = vmatpush3.bf16.msra.mxu1 %v7230_v39  ;;  %4906 = vmatpush3.bf16.msra.mxu0 %v7230_v39 }
 0x835   :  { %v3200_v37 = vadd.f32 %v4596_v3, %v2634_v6  ;;  %v3194_v13 = vpop.f32.mrb[31].mxu1  ;;  %4881 = vmatprep.subr.bf16.mxu1 %v5124_v15  ;;  %4907 = vmatprep.subr.bf16.mxu0 %v5124_v15  ;;  %v4063_v6 = vld [vmem:[%s7377_s10 + $0x8] sm:$0x1f] }
 0x836   :  { %v7240_v5 = vpack.c.bf16 %v3208_v59, %v3207_v16  ;;  %v3195_v60 = vadd.f32 %v3194_v13, %v2633_v22  ;;  %v4066_v22 = vld [vmem:[%s7377_s10 + $0x10] sm:$0x1f]  ;;  %s5130_s10 = smov 122  }
 0x837   :  { %v3210_v62 = vmax.f32 %v3200_v37, 0.0 }
 0x838   :  { %v3209_v47 = vmax.f32 %v3195_v60, 0.0  ;;  %4883 = vmatpush3.bf16.msra.mxu1 %v7240_v5  ;;  %4909 = vmatpush3.bf16.msra.mxu0 %v7240_v5 }
 0x839   :  { %4884 = vmatprep.subr.bf16.mxu1 %v5124_v15  ;;  %4910 = vmatprep.subr.bf16.mxu0 %v5124_v15 }
 0x83a   :  { %v7248_v63 = vpack.c.bf16 %v3210_v62, %v3209_v47 }
 0x83c   :  { %4887 = vmatpush3.bf16.msk.msra.mxu1 %vm7186_vm9, %v7248_v63  ;;  %4913 = vmatpush3.bf16.msk.msra.mxu0 %vm7186_vm9, %v7248_v63 }
 0x83d   :  { %4888 = vmatprep.subr.bf16.mxu1 %v5124_v15  ;;  %4927 = vmatprep.subr.bf16.mxu0 %v5124_v15 }
 0x83f   :  { %4614 = vmatmul.mubr.msk.f32.vlgmr.msra.gmra.mrb[32].mxu1 %vm2958_vm5, %v3212_v32  ;;  %4652 = vmatmul.mubr.msk.f32.vlgmr.msra.gmra.mrb[8].mxu0 %vm2958_vm5, %v4066_v22 }
 0x840   :  { %4890 = vmatpush3.bf16.msra.mxu1 %v7220_v30  ;;  %4929 = vmatpush3.bf16.msra.mxu0 %v7220_v30 }
 0x841   :  { %4891 = vmatprep.subr.bf16.mxu1 %v5124_v15  ;;  %4930 = vmatprep.subr.bf16.mxu0 %v5124_v15 }
 0x842   :  { %4632 = vmatprep.mubr.msk.f32.mxu1 %vm5125_vm10, %v5126_v61  ;;  %4689 = vmatprep.mubr.msk.f32.mxu0 %vm5125_vm10, %v5126_v61 }
 0x844   :  { %4893 = vmatpush3.bf16.msra.mxu1 %v7230_v39  ;;  %4932 = vmatpush3.bf16.msra.mxu0 %v7230_v39 }
 0x845   :  { %4894 = vmatprep.subr.bf16.mxu1 %v5124_v15  ;;  %4933 = vmatprep.subr.bf16.mxu0 %v5124_v15 }
 0x848   :  { %4896 = vmatpush3.bf16.msra.mxu1 %v7240_v5  ;;  %4935 = vmatpush3.bf16.msra.mxu0 %v7240_v5 }
 0x849   :  { %4897 = vmatprep.subr.bf16.mxu1 %v5124_v15  ;;  %4936 = vmatprep.subr.bf16.mxu0 %v5124_v15 }
 0x84c   :  { %4900 = vmatpush3.bf16.msk.msra.mxu1 %vm7186_vm9, %v7248_v63  ;;  %4939 = vmatpush3.bf16.msk.msra.mxu0 %vm7186_vm9, %v7248_v63 }
 0x84d   :  { %4914 = vmatprep.subr.bf16.mxu1 %v5124_v15  ;;  %4953 = vmatprep.subr.bf16.mxu0 %v5124_v15 }
 0x84f   :  { %4633 = vmatmul.mubr.msk.f32.vlgmr.msra.gmra.mrb[34].mxu1 %vm2958_vm5, %v4063_v6  ;;  %4690 = vmatmul.mubr.msk.f32.vlgmr.msra.gmra.mrb[10].mxu0 %vm2958_vm5, %v4072_v29 }
 0x850   :  { %4916 = vmatpush3.bf16.msra.mxu1 %v7220_v30  ;;  %4955 = vmatpush3.bf16.msra.mxu0 %v7220_v30 }
 0x851   :  { %4917 = vmatprep.subr.bf16.mxu1 %v5124_v15  ;;  %4956 = vmatprep.subr.bf16.mxu0 %v5124_v15 }
 0x852   :  { %4670 = vmatprep.mubr.msk.f32.mxu1 %vm5125_vm10, %v5126_v61  ;;  %4727 = vmatprep.mubr.msk.f32.mxu0 %vm5125_vm10, %v5126_v61 }
 0x854   :  { %4919 = vmatpush3.bf16.msra.mxu1 %v7230_v39  ;;  %4958 = vmatpush3.bf16.msra.mxu0 %v7230_v39 }
 0x855   :  { %4920 = vmatprep.subr.bf16.mxu1 %v5124_v15  ;;  %4959 = vmatprep.subr.bf16.mxu0 %v5124_v15 }
 0x858   :  { %4922 = vmatpush3.bf16.msra.mxu1 %v7240_v5  ;;  %4961 = vmatpush3.bf16.msra.mxu0 %v7240_v5 }
 0x859   :  { %4923 = vmatprep.subr.bf16.mxu1 %v5124_v15  ;;  %4962 = vmatprep.subr.bf16.mxu0 %v5124_v15 }
 0x85c   :  { %4926 = vmatpush3.bf16.msk.msra.mxu1 %vm7186_vm9, %v7248_v63  ;;  %4965 = vmatpush3.bf16.msk.msra.mxu0 %vm7186_vm9, %v7248_v63 }
 0x85d   :  { %4940 = vmatprep.subr.bf16.mxu1 %v5124_v15 }
 0x85f   :  { %4671 = vmatmul.mubr.msk.f32.vlgmr.msra.gmra.mrb[36].mxu1 %vm2958_vm5, %v4069_v11  ;;  %4728 = vmatmul.mubr.msk.f32.vlgmr.msra.gmra.mrb[12].mxu0 %vm2958_vm5, %v4078_v28 }
 0x860   :  { %4942 = vmatpush3.bf16.msra.mxu1 %v7220_v30  ;;  %4708 = vmatprep.mubr.msk.f32.mxu1 %vm5125_vm10, %v5126_v61 }
 0x861   :  { %4943 = vmatprep.subr.bf16.mxu1 %v5124_v15 }
 0x864   :  { %4945 = vmatpush3.bf16.msra.mxu1 %v7230_v39 }
 0x865   :  { %4946 = vmatprep.subr.bf16.mxu1 %v5124_v15 }
 0x868   :  { %4948 = vmatpush3.bf16.msra.mxu1 %v7240_v5 }
 0x869   :  { %4949 = vmatprep.subr.bf16.mxu1 %v5124_v15 }
 0x86c   :  { %4952 = vmatpush3.bf16.msk.msra.mxu1 %vm7186_vm9, %v7248_v63 }
 0x86d   :  { %4966 = vmatprep.subr.bf16.mxu1 %v5124_v15 }
 0x86f   :  { %4709 = vmatmul.mubr.msk.f32.vlgmr.msra.gmra.mrb[38].mxu1 %vm2958_vm5, %v4075_v2 }
 0x870   :  { %4968 = vmatpush3.bf16.msra.mxu1 %v7220_v30  ;;  %4746 = vmatprep.mubr.msk.f32.mxu1 %vm5125_vm10, %v5126_v61 }
 0x871   :  { %4969 = vmatprep.subr.bf16.mxu1 %v5124_v15 }
 0x874   :  { %4971 = vmatpush3.bf16.msra.mxu1 %v7230_v39 }
 0x875   :  { %4972 = vmatprep.subr.bf16.mxu1 %v5124_v15 }
 0x878   :  { %4974 = vmatpush3.bf16.msra.mxu1 %v7240_v5 }
 0x879   :  { %4975 = vmatprep.subr.bf16.mxu1 %v5124_v15 }
 0x87c   :  { %4978 = vmatpush3.bf16.msk.msra.mxu1 %vm7186_vm9, %v7248_v63 }
 0x87f   :  { %4747 = vmatmul.mubr.msk.f32.vlgmr.msra.gmra.mrb[40].mxu1 %vm2958_vm5, %v4081_v36 }
 0x912   :  { %v3285_v38 = vpop.f32.mrb[32].mxu1  ;;  %v3441_v50 = vpop.f32.mrb[8].mxu0 }
 0x913   :  { %v4615_v57 = vpop.f32.mrb[33].mxu1  ;;  %v4653_v52 = vpop.f32.mrb[9].mxu0  ;;  %v3289_v35 = vadd.f32 %v3285_v38, %v3211_v7 }
 0x922   :  { %v3361_v8 = vpop.f32.mrb[34].mxu1  ;;  %v3601_v46 = vpop.f32.mrb[10].mxu0 }
 0x923   :  { %3366 = vrot.lane.b32.xlu1 %v3361_v8, %s5120_s20  ;;  %v4634_v9 = vpop.f32.mrb[35].mxu1  ;;  %v4691_v4 = vpop.f32.mrb[11].mxu0  ;;  %s5132_s20 = smov 121  }
 0x927   :  { %3446 = vrot.lane.b32.xlu1 %v3441_v50, %s5127_s1 }
 0x92b   :  { %3606 = vrot.lane.b32.xlu1 %v3601_v46, %s5128_s2 }
 0x932   :  { %v3521_v21 = vpop.f32.mrb[36].mxu1  ;;  %v3761_v53 = vpop.f32.mrb[12].mxu0 }
 0x933   :  { %3526 = vrot.lane.b32.xlu0 %v3521_v21, %s5129_s30  ;;  %v4672_v17 = vpop.f32.mrb[37].mxu1  ;;  %3766 = vrot.lane.b32.xlu1 %v3761_v53, %s5130_s10  ;;  %v4729_v24 = vpop.f32.mrb[13].mxu0 }
 0x942   :  { %v3681_v31 = vpop.f32.mrb[38].mxu1 }
 0x943   :  { %3686 = vrot.lane.b32.xlu0 %v3681_v31, %s5131_s13  ;;  %v4710_v34 = vpop.f32.mrb[39].mxu1 }
 0x952   :  { %v3841_v41 = vpop.f32.mrb[40].mxu1 }
 0x953   :  { %3846 = vrot.lane.b32.xlu0 %v3841_v41, %s5132_s20  ;;  %v4748_v44 = vpop.f32.mrb[41].mxu1 }
 0x995   :  { %v3367_v10 = vpop.permute.xlu1 %3366 }
 0x996   :  { %v3369_v51 = vadd.f32 %v3367_v10, %v3289_v35 }
 0x999   :  { %v3447_v14 = vpop.permute.xlu1 %3446 }
 0x99a   :  { %v3449_v58 = vadd.f32 %v3447_v14, %v3369_v51 }
 0x99d   :  { %v3607_v33 = vpop.permute.xlu1 %3606 }
 0x9a5   :  { %v3527_v40 = vpop.permute.xlu0 %3526  ;;  %v3767_v56 = vpop.permute.xlu1 %3766 }
 0x9a6   :  { %v3529_v18 = vadd.f32 %v3527_v40, %v3449_v58 }
 0x9a8   :  { %v3609_v15 = vadd.f32 %v3607_v33, %v3529_v18 }
 0x9b5   :  { %v3687_v55 = vpop.permute.xlu0 %3686 }
 0x9b6   :  { %v3689_v61 = vadd.f32 %v3687_v55, %v3609_v15 }
 0x9b8   :  { %v3769_v25 = vadd.f32 %v3767_v56, %v3689_v61 }
 0x9c5   :  { %v3847_v19 = vpop.permute.xlu0 %3846 }
 0x9c6   :  { %v3849_v54 = vadd.f32 %v3847_v19, %v3769_v25 }
 0x9c8   :  { %3851 = vst.msk [vmem:[%s7379_s12] sm:$0x1f] %vm3850_vm11, %v3849_v54 }
 0x9c9   :  { %3856 = vsyncpa [#allocation3], 1 }
 0x9ca   :  { %3857 = vsyncpa [#allocation5], 1 }

</bundles_post_ra>
